<compile_context>
chip_gen: v6e
topology: v6e:2x2x1
jax: 0.10.0
libtpu: 0.0.40
codegen_flags: <defaults>
</compile_context>

<pallas_src>
import jax
import jax.numpy as jnp
from jax import lax
from jax.experimental import pallas as pl
from jax.experimental.pallas import tpu as pltpu


LANE = 128
POOL_KS = (5, 9, 13)  # reproduced exactly by three sequential 5x5 pools


def _round_up(v, m):
    return (v + m - 1) // m * m


def _silu(x):
    # x * sigmoid(x); the reciprocal rides the EUP slot (approx), not the VPU.
    return x * pl.reciprocal(1.0 + jnp.exp(-x), approx=True)


def _maxpool5_same(z):
    """(5,5) max-pool, stride 1, pad 2 with -inf (PyTorch semantics), separable.

    z: (H, W, C).  Only 2-wide -inf pads per axis (k=5), done in z's dtype.
    """
    H, W, C = z.shape
    # rows (axis 0)
    neg_h = jnp.full((2, W, C), -jnp.inf, z.dtype)
    zp = jnp.concatenate([neg_h, z, neg_h], axis=0)
    out = zp[0:H]
    for d in range(1, 5):
        out = jnp.maximum(out, zp[d:d + H])
    # cols (axis 1)
    neg_w = jnp.full((H, 2, C), -jnp.inf, out.dtype)
    op = jnp.concatenate([neg_w, out, neg_w], axis=1)
    res = op[:, 0:W]
    for d in range(1, 5):
        res = jnp.maximum(res, op[:, d:d + W])
    return res


def spp_kernel(x_ref, w1_ref, s1_ref, b1_ref, w2_ref, s2_ref, b2_ref, o_ref):
    # x_ref : (1, H, W, C1p) bf16      w1_ref: (C1p, cp)     bf16
    # w2_ref: (4, cp, C2p)   bf16      s*/b* : f32 (1, ...)
    # o_ref : (1, H, W, C2p) f32
    _, H, W, C1p = x_ref.shape
    C2p = o_ref.shape[3]
    cp = w1_ref.shape[1]

    xm = x_ref[0].reshape(H * W, C1p)

    # cv1: 1x1 conv (bf16 MXU, f32 accumulate) + folded BN + SiLU (f32)
    y = jnp.dot(xm, w1_ref[...], preferred_element_type=jnp.float32)
    y = _silu(y * s1_ref[...] + b1_ref[...])
    y_bf = y.astype(jnp.bfloat16).reshape(H, W, cp)

    # cv2 accumulated per pyramid level (SPPF identity: pool5 applied 1/2/3
    # times == pools 5/9/13).  No concat buffer; only {y, current pool, acc}
    # are live at any time.
    acc = jnp.dot(y_bf.reshape(H * W, cp), w2_ref[0],
                  preferred_element_type=jnp.float32)
    p = y_bf
    for lvl in range(1, 4):
        p = _maxpool5_same(p)
        acc += jnp.dot(p.reshape(H * W, cp), w2_ref[lvl],
                       preferred_element_type=jnp.float32)

    z = _silu(acc * s2_ref[...] + b2_ref[...])
    o_ref[0] = z.reshape(H, W, C2p)


def spp_pallas_nhwc(x_nhwc, w1, s1, b1, w2, s2, b2):
    """x_nhwc: (N, H, W, C1) -> (N, H, W, C2).  NHWC end-to-end (no relayout)."""
    N, H, W, C1 = x_nhwc.shape
    c_ = w1.shape[1]
    C2 = w2.shape[1]

    C1p = _round_up(C1, LANE)
    cp = _round_up(c_, LANE)
    C2p = _round_up(C2, LANE)

    # bf16 activations/weights for the MXU; scale/bias stay f32.
    xp = jnp.pad(x_nhwc, ((0, 0), (0, 0), (0, 0), (0, C1p - C1)))
    xp = xp.astype(jnp.bfloat16)

    w1p = jnp.pad(w1, ((0, C1p - C1), (0, cp - c_))).astype(jnp.bfloat16)
    s1p = jnp.pad(jnp.reshape(s1, (1, c_)), ((0, 0), (0, cp - c_))).astype(jnp.float32)
    b1p = jnp.pad(jnp.reshape(b1, (1, c_)), ((0, 0), (0, cp - c_))).astype(jnp.float32)

    # Split cv2 weight by pyramid level: rows ordered [y | pool5 | pool9 | pool13].
    w2b = jnp.reshape(w2, (len(POOL_KS) + 1, c_, C2))
    w2p = jnp.pad(w2b, ((0, 0), (0, cp - c_), (0, C2p - C2))).astype(jnp.bfloat16)
    s2p = jnp.pad(jnp.reshape(s2, (1, C2)), ((0, 0), (0, C2p - C2))).astype(jnp.float32)
    b2p = jnp.pad(jnp.reshape(b2, (1, C2)), ((0, 0), (0, C2p - C2))).astype(jnp.float32)

    # VMEM budget: double-buffered I/O blocks + weights + pooling/acc intermediates,
    # with 2x headroom, clamped to [32 MiB, 64 MiB] (safe on v5e/v6e/v7x).
    blk_bytes = H * W * (C1p * 2 + C2p * 4)
    wt_bytes = (C1p * cp + (len(POOL_KS) + 1) * cp * C2p) * 2
    inter_bytes = H * W * (4 * cp * 2 + C2p * 4)
    vmem_limit = int(min(max(2 * (2 * blk_bytes + wt_bytes + inter_bytes),
                             32 * 1024 * 1024), 64 * 1024 * 1024))

    out = pl.pallas_call(
        spp_kernel,
        out_shape=jax.ShapeDtypeStruct((N, H, W, C2p), jnp.float32),
        grid_spec=pltpu.PrefetchScalarGridSpec(
            num_scalar_prefetch=0,
            grid=(N,),
            in_specs=[
                pl.BlockSpec((1, H, W, C1p), lambda n: (n, 0, 0, 0)),
                pl.BlockSpec((C1p, cp), lambda n: (0, 0)),
                pl.BlockSpec((1, cp), lambda n: (0, 0)),
                pl.BlockSpec((1, cp), lambda n: (0, 0)),
                pl.BlockSpec((len(POOL_KS) + 1, cp, C2p), lambda n: (0, 0, 0)),
                pl.BlockSpec((1, C2p), lambda n: (0, 0)),
                pl.BlockSpec((1, C2p), lambda n: (0, 0)),
            ],
            out_specs=pl.BlockSpec((1, H, W, C2p), lambda n: (n, 0, 0, 0)),
        ),
        compiler_params=pltpu.CompilerParams(
            dimension_semantics=("parallel",),
            vmem_limit_bytes=vmem_limit),
    )(xp, w1p, s1p, b1p, w2p, s2p, b2p)

    return out[..., :C2]


def spp_pallas(x_nchw, w1, s1, b1, w2, s2, b2):
    """PyTorch-layout wrapper: (N, C1, H, W) -> (N, C2, H, W)."""
    x_nhwc = jnp.transpose(x_nchw, (0, 2, 3, 1))
    out = spp_pallas_nhwc(x_nhwc, w1, s1, b1, w2, s2, b2)
    return jnp.transpose(out, (0, 3, 1, 2))


# ---------------- pure-JAX reference (f32, for correctness check) ----------------
def spp_reference(x_nchw, w1, s1, b1, w2, s2, b2):
    x = jnp.transpose(x_nchw, (0, 2, 3, 1)).astype(jnp.float32)   # NHWC
    y = jnp.einsum('nhwc,cd->nhwd', x, w1) * s1 + b1
    y = jax.nn.silu(y)

    def pool(z, k):
        r = k // 2
        return lax.reduce_window(z, -jnp.inf, lax.max,
                                 (1, k, k, 1), (1, 1, 1, 1),
                                 [(0, 0), (r, r), (r, r), (0, 0)])

    cat = jnp.concatenate([y] + [pool(y, k) for k in POOL_KS], axis=-1)
    z = jnp.einsum('nhwc,cd->nhwd', cat, w2) * s2 + b2
    z = jax.nn.silu(z)
    return jnp.transpose(z, (0, 3, 1, 2))


def fold_bn(gamma, beta, mean, var, eps=1e-5):
    scale = gamma / jnp.sqrt(var + eps)
    bias = beta - mean * scale
    return scale[None, :], bias[None, :]


if __name__ == "__main__":
    N, C1, H, W = 2, 4, 16, 16
    C2 = 8
    c_ = C1 // 2

    key = jax.random.PRNGKey(0)
    ks = jax.random.split(key, 11)

    x = jax.random.normal(ks[0], (N, C1, H, W), jnp.float32)

    # cv1: Conv2d(C1, c_, 1, bias=False) + BN(c_)
    w1 = 0.2 * jax.random.normal(ks[1], (C1, c_), jnp.float32)
    g1 = 0.5 + jax.random.uniform(ks[2], (c_,), jnp.float32)
    be1 = 0.1 * jax.random.normal(ks[3], (c_,), jnp.float32)
    m1 = 0.1 * jax.random.normal(ks[4], (c_,), jnp.float32)
    v1 = 0.5 + jax.random.uniform(ks[5], (c_,), jnp.float32)
    s1, b1 = fold_bn(g1, be1, m1, v1)

    # cv2: Conv2d(4*c_, C2, 1, bias=False) + BN(C2)
    w2 = 0.2 * jax.random.normal(ks[6], ((len(POOL_KS) + 1) * c_, C2), jnp.float32)
    g2 = 0.5 + jax.random.uniform(ks[7], (C2,), jnp.float32)
    be2 = 0.1 * jax.random.normal(ks[8], (C2,), jnp.float32)
    m2 = 0.1 * jax.random.normal(ks[9], (C2,), jnp.float32)
    v2 = 0.5 + jax.random.uniform(ks[10], (C2,), jnp.float32)
    s2, b2 = fold_bn(g2, be2, m2, v2)

    out = spp_pallas(x, w1, s1, b1, w2, s2, b2)
    out = jax.block_until_ready(out)

    ref = jax.block_until_ready(spp_reference(x, w1, s1, b1, w2, s2, b2))
    assert out.shape == (N, C2, H, W), out.shape
    # bf16 MXU inputs + approx reciprocal -> loosened tolerance vs f32 reference.
    if not jnp.allclose(out, ref, atol=2e-2, rtol=2e-2):
        raise AssertionError("Pallas SPP does not match reference")

    print("KERNEL_OK")
</pallas_src>

<mosaic_0001>
module attributes {stable_mosaic.version = 11 : i64} {
  func.func @spp_kernel(%arg0: i32, %arg1: memref<1x16x16x128xbf16, #tpu.memory_space<vmem>>, %arg2: memref<128x128xbf16, #tpu.memory_space<vmem>>, %arg3: memref<1x128xf32, #tpu.memory_space<vmem>>, %arg4: memref<1x128xf32, #tpu.memory_space<vmem>>, %arg5: memref<4x128x128xbf16, #tpu.memory_space<vmem>>, %arg6: memref<1x128xf32, #tpu.memory_space<vmem>>, %arg7: memref<1x128xf32, #tpu.memory_space<vmem>>, %arg8: memref<1x16x16x128xf32, #tpu.memory_space<vmem>>) attributes {dimension_semantics = [#tpu.dimension_semantics<parallel>], iteration_bounds = array<i64: 2>, scalar_prefetch = 0 : i64, scratch_operands = 0 : i64, tpu.core_type = #tpu.core_type<tc>, window_params = [{transform_indices = @transform_0, window_bounds = array<i64: 1, 16, 16, 128>}, {pipeline_mode = #tpu.pipeline_mode<synchronous>, transform_indices = @transform_1, window_bounds = array<i64: 128, 128>}, {pipeline_mode = #tpu.pipeline_mode<synchronous>, transform_indices = @transform_2, window_bounds = array<i64: 1, 128>}, {pipeline_mode = #tpu.pipeline_mode<synchronous>, transform_indices = @transform_3, window_bounds = array<i64: 1, 128>}, {pipeline_mode = #tpu.pipeline_mode<synchronous>, transform_indices = @transform_4, window_bounds = array<i64: 4, 128, 128>}, {pipeline_mode = #tpu.pipeline_mode<synchronous>, transform_indices = @transform_5, window_bounds = array<i64: 1, 128>}, {pipeline_mode = #tpu.pipeline_mode<synchronous>, transform_indices = @transform_6, window_bounds = array<i64: 1, 128>}, {transform_indices = @transform_7, window_bounds = array<i64: 1, 16, 16, 128>}]} {
    %c0 = arith.constant 0 : index
    %c0_0 = arith.constant 0 : index
    %c0_1 = arith.constant 0 : index
    %c0_2 = arith.constant 0 : index
    %0 = vector.load %arg1[%c0, %c0_0, %c0_1, %c0_2] : memref<1x16x16x128xbf16, #tpu.memory_space<vmem>>, vector<1x16x16x128xbf16>
    %1 = vector.shape_cast %0 : vector<1x16x16x128xbf16> to vector<16x16x128xbf16>
    %2 = vector.shape_cast %1 : vector<16x16x128xbf16> to vector<256x128xbf16>
    %c0_3 = arith.constant 0 : index
    %c0_4 = arith.constant 0 : index
    %3 = vector.load %arg2[%c0_3, %c0_4] : memref<128x128xbf16, #tpu.memory_space<vmem>>, vector<128x128xbf16>
    %cst = arith.constant dense<0.000000e+00> : vector<256x128xf32>
    %4 = tpu.matmul %2, %3, %cst {dimension_numbers = #tpu.dot_dimension_numbers<[1], [0], [0], [1], [0, 0, 1, 1], [], []>} : vector<256x128xbf16>, vector<128x128xbf16>, vector<256x128xf32> -> vector<256x128xf32>
    %c0_5 = arith.constant 0 : index
    %c0_6 = arith.constant 0 : index
    %5 = vector.load %arg3[%c0_5, %c0_6] : memref<1x128xf32, #tpu.memory_space<vmem>>, vector<1x128xf32>
    %6 = vector.broadcast %5 : vector<1x128xf32> to vector<256x128xf32>
    %7 = arith.mulf %4, %6 : vector<256x128xf32>
    %c0_7 = arith.constant 0 : index
    %c0_8 = arith.constant 0 : index
    %8 = vector.load %arg4[%c0_7, %c0_8] : memref<1x128xf32, #tpu.memory_space<vmem>>, vector<1x128xf32>
    %9 = vector.broadcast %8 : vector<1x128xf32> to vector<256x128xf32>
    %10 = arith.addf %7, %9 : vector<256x128xf32>
    %cst_9 = arith.constant 0.000000e+00 : f32
    %11 = vector.broadcast %cst_9 : f32 to vector<256x128xf32>
    %12 = arith.subf %11, %10 : vector<256x128xf32>
    %13 = math.exp %12 : vector<256x128xf32>
    %cst_10 = arith.constant 1.000000e+00 : f32
    %14 = vector.broadcast %cst_10 : f32 to vector<256x128xf32>
    %15 = arith.addf %14, %13 : vector<256x128xf32>
    %16 = tpu.reciprocal %15 {approx = true} : vector<256x128xf32> -> vector<256x128xf32>
    %17 = arith.mulf %10, %16 : vector<256x128xf32>
    %18 = arith.truncf %17 : vector<256x128xf32> to vector<256x128xbf16>
    %19 = vector.shape_cast %18 : vector<256x128xbf16> to vector<16x16x128xbf16>
    %20 = vector.shape_cast %19 : vector<16x16x128xbf16> to vector<256x128xbf16>
    %c0_11 = arith.constant 0 : index
    %c0_12 = arith.constant 0 : index
    %c0_13 = arith.constant 0 : index
    %21 = vector.load %arg5[%c0_11, %c0_12, %c0_13] : memref<4x128x128xbf16, #tpu.memory_space<vmem>>, vector<1x128x128xbf16>
    %22 = vector.shape_cast %21 : vector<1x128x128xbf16> to vector<128x128xbf16>
    %cst_14 = arith.constant dense<0.000000e+00> : vector<256x128xf32>
    %23 = tpu.matmul %20, %22, %cst_14 {dimension_numbers = #tpu.dot_dimension_numbers<[1], [0], [0], [1], [0, 0, 1, 1], [], []>} : vector<256x128xbf16>, vector<128x128xbf16>, vector<256x128xf32> -> vector<256x128xf32>
    %cst_15 = arith.constant 0xFF80 : bf16
    %24 = vector.broadcast %cst_15 : bf16 to vector<2x16x128xbf16>
    %25 = tpu.concatenate %24, %19, %24 in 0 : vector<2x16x128xbf16>, vector<16x16x128xbf16>, vector<2x16x128xbf16> -> vector<20x16x128xbf16>
    %26 = vector.extract_strided_slice %25 {offsets = [0, 0, 0], sizes = [16, 16, 128], strides = [1, 1, 1]} : vector<20x16x128xbf16> to vector<16x16x128xbf16>
    %27 = vector.extract_strided_slice %25 {offsets = [1, 0, 0], sizes = [16, 16, 128], strides = [1, 1, 1]} : vector<20x16x128xbf16> to vector<16x16x128xbf16>
    %28 = arith.maximumf %26, %27 : vector<16x16x128xbf16>
    %29 = vector.extract_strided_slice %25 {offsets = [2, 0, 0], sizes = [16, 16, 128], strides = [1, 1, 1]} : vector<20x16x128xbf16> to vector<16x16x128xbf16>
    %30 = arith.maximumf %28, %29 : vector<16x16x128xbf16>
    %31 = vector.extract_strided_slice %25 {offsets = [3, 0, 0], sizes = [16, 16, 128], strides = [1, 1, 1]} : vector<20x16x128xbf16> to vector<16x16x128xbf16>
    %32 = arith.maximumf %30, %31 : vector<16x16x128xbf16>
    %33 = vector.extract_strided_slice %25 {offsets = [4, 0, 0], sizes = [16, 16, 128], strides = [1, 1, 1]} : vector<20x16x128xbf16> to vector<16x16x128xbf16>
    %34 = arith.maximumf %32, %33 : vector<16x16x128xbf16>
    %cst_16 = arith.constant 0xFF80 : bf16
    %35 = vector.broadcast %cst_16 : bf16 to vector<16x2x128xbf16>
    %36 = tpu.concatenate %35, %34, %35 in 1 : vector<16x2x128xbf16>, vector<16x16x128xbf16>, vector<16x2x128xbf16> -> vector<16x20x128xbf16>
    %37 = vector.extract_strided_slice %36 {offsets = [0, 0, 0], sizes = [16, 16, 128], strides = [1, 1, 1]} : vector<16x20x128xbf16> to vector<16x16x128xbf16>
    %38 = vector.extract_strided_slice %36 {offsets = [0, 1, 0], sizes = [16, 16, 128], strides = [1, 1, 1]} : vector<16x20x128xbf16> to vector<16x16x128xbf16>
    %39 = arith.maximumf %37, %38 : vector<16x16x128xbf16>
    %40 = vector.extract_strided_slice %36 {offsets = [0, 2, 0], sizes = [16, 16, 128], strides = [1, 1, 1]} : vector<16x20x128xbf16> to vector<16x16x128xbf16>
    %41 = arith.maximumf %39, %40 : vector<16x16x128xbf16>
    %42 = vector.extract_strided_slice %36 {offsets = [0, 3, 0], sizes = [16, 16, 128], strides = [1, 1, 1]} : vector<16x20x128xbf16> to vector<16x16x128xbf16>
    %43 = arith.maximumf %41, %42 : vector<16x16x128xbf16>
    %44 = vector.extract_strided_slice %36 {offsets = [0, 4, 0], sizes = [16, 16, 128], strides = [1, 1, 1]} : vector<16x20x128xbf16> to vector<16x16x128xbf16>
    %45 = arith.maximumf %43, %44 : vector<16x16x128xbf16>
    %46 = vector.shape_cast %45 : vector<16x16x128xbf16> to vector<256x128xbf16>
    %c1 = arith.constant 1 : index
    %c0_17 = arith.constant 0 : index
    %c0_18 = arith.constant 0 : index
    %47 = vector.load %arg5[%c1, %c0_17, %c0_18] : memref<4x128x128xbf16, #tpu.memory_space<vmem>>, vector<1x128x128xbf16>
    %48 = vector.shape_cast %47 : vector<1x128x128xbf16> to vector<128x128xbf16>
    %cst_19 = arith.constant dense<0.000000e+00> : vector<256x128xf32>
    %49 = tpu.matmul %46, %48, %cst_19 {dimension_numbers = #tpu.dot_dimension_numbers<[1], [0], [0], [1], [0, 0, 1, 1], [], []>} : vector<256x128xbf16>, vector<128x128xbf16>, vector<256x128xf32> -> vector<256x128xf32>
    %50 = arith.addf %23, %49 : vector<256x128xf32>
    %cst_20 = arith.constant 0xFF80 : bf16
    %51 = vector.broadcast %cst_20 : bf16 to vector<2x16x128xbf16>
    %52 = tpu.concatenate %51, %45, %51 in 0 : vector<2x16x128xbf16>, vector<16x16x128xbf16>, vector<2x16x128xbf16> -> vector<20x16x128xbf16>
    %53 = vector.extract_strided_slice %52 {offsets = [0, 0, 0], sizes = [16, 16, 128], strides = [1, 1, 1]} : vector<20x16x128xbf16> to vector<16x16x128xbf16>
    %54 = vector.extract_strided_slice %52 {offsets = [1, 0, 0], sizes = [16, 16, 128], strides = [1, 1, 1]} : vector<20x16x128xbf16> to vector<16x16x128xbf16>
    %55 = arith.maximumf %53, %54 : vector<16x16x128xbf16>
    %56 = vector.extract_strided_slice %52 {offsets = [2, 0, 0], sizes = [16, 16, 128], strides = [1, 1, 1]} : vector<20x16x128xbf16> to vector<16x16x128xbf16>
    %57 = arith.maximumf %55, %56 : vector<16x16x128xbf16>
    %58 = vector.extract_strided_slice %52 {offsets = [3, 0, 0], sizes = [16, 16, 128], strides = [1, 1, 1]} : vector<20x16x128xbf16> to vector<16x16x128xbf16>
    %59 = arith.maximumf %57, %58 : vector<16x16x128xbf16>
    %60 = vector.extract_strided_slice %52 {offsets = [4, 0, 0], sizes = [16, 16, 128], strides = [1, 1, 1]} : vector<20x16x128xbf16> to vector<16x16x128xbf16>
    %61 = arith.maximumf %59, %60 : vector<16x16x128xbf16>
    %cst_21 = arith.constant 0xFF80 : bf16
    %62 = vector.broadcast %cst_21 : bf16 to vector<16x2x128xbf16>
    %63 = tpu.concatenate %62, %61, %62 in 1 : vector<16x2x128xbf16>, vector<16x16x128xbf16>, vector<16x2x128xbf16> -> vector<16x20x128xbf16>
    %64 = vector.extract_strided_slice %63 {offsets = [0, 0, 0], sizes = [16, 16, 128], strides = [1, 1, 1]} : vector<16x20x128xbf16> to vector<16x16x128xbf16>
    %65 = vector.extract_strided_slice %63 {offsets = [0, 1, 0], sizes = [16, 16, 128], strides = [1, 1, 1]} : vector<16x20x128xbf16> to vector<16x16x128xbf16>
    %66 = arith.maximumf %64, %65 : vector<16x16x128xbf16>
    %67 = vector.extract_strided_slice %63 {offsets = [0, 2, 0], sizes = [16, 16, 128], strides = [1, 1, 1]} : vector<16x20x128xbf16> to vector<16x16x128xbf16>
    %68 = arith.maximumf %66, %67 : vector<16x16x128xbf16>
    %69 = vector.extract_strided_slice %63 {offsets = [0, 3, 0], sizes = [16, 16, 128], strides = [1, 1, 1]} : vector<16x20x128xbf16> to vector<16x16x128xbf16>
    %70 = arith.maximumf %68, %69 : vector<16x16x128xbf16>
    %71 = vector.extract_strided_slice %63 {offsets = [0, 4, 0], sizes = [16, 16, 128], strides = [1, 1, 1]} : vector<16x20x128xbf16> to vector<16x16x128xbf16>
    %72 = arith.maximumf %70, %71 : vector<16x16x128xbf16>
    %73 = vector.shape_cast %72 : vector<16x16x128xbf16> to vector<256x128xbf16>
    %c2 = arith.constant 2 : index
    %c0_22 = arith.constant 0 : index
    %c0_23 = arith.constant 0 : index
    %74 = vector.load %arg5[%c2, %c0_22, %c0_23] : memref<4x128x128xbf16, #tpu.memory_space<vmem>>, vector<1x128x128xbf16>
    %75 = vector.shape_cast %74 : vector<1x128x128xbf16> to vector<128x128xbf16>
    %cst_24 = arith.constant dense<0.000000e+00> : vector<256x128xf32>
    %76 = tpu.matmul %73, %75, %cst_24 {dimension_numbers = #tpu.dot_dimension_numbers<[1], [0], [0], [1], [0, 0, 1, 1], [], []>} : vector<256x128xbf16>, vector<128x128xbf16>, vector<256x128xf32> -> vector<256x128xf32>
    %77 = arith.addf %50, %76 : vector<256x128xf32>
    %cst_25 = arith.constant 0xFF80 : bf16
    %78 = vector.broadcast %cst_25 : bf16 to vector<2x16x128xbf16>
    %79 = tpu.concatenate %78, %72, %78 in 0 : vector<2x16x128xbf16>, vector<16x16x128xbf16>, vector<2x16x128xbf16> -> vector<20x16x128xbf16>
    %80 = vector.extract_strided_slice %79 {offsets = [0, 0, 0], sizes = [16, 16, 128], strides = [1, 1, 1]} : vector<20x16x128xbf16> to vector<16x16x128xbf16>
    %81 = vector.extract_strided_slice %79 {offsets = [1, 0, 0], sizes = [16, 16, 128], strides = [1, 1, 1]} : vector<20x16x128xbf16> to vector<16x16x128xbf16>
    %82 = arith.maximumf %80, %81 : vector<16x16x128xbf16>
    %83 = vector.extract_strided_slice %79 {offsets = [2, 0, 0], sizes = [16, 16, 128], strides = [1, 1, 1]} : vector<20x16x128xbf16> to vector<16x16x128xbf16>
    %84 = arith.maximumf %82, %83 : vector<16x16x128xbf16>
    %85 = vector.extract_strided_slice %79 {offsets = [3, 0, 0], sizes = [16, 16, 128], strides = [1, 1, 1]} : vector<20x16x128xbf16> to vector<16x16x128xbf16>
    %86 = arith.maximumf %84, %85 : vector<16x16x128xbf16>
    %87 = vector.extract_strided_slice %79 {offsets = [4, 0, 0], sizes = [16, 16, 128], strides = [1, 1, 1]} : vector<20x16x128xbf16> to vector<16x16x128xbf16>
    %88 = arith.maximumf %86, %87 : vector<16x16x128xbf16>
    %cst_26 = arith.constant 0xFF80 : bf16
    %89 = vector.broadcast %cst_26 : bf16 to vector<16x2x128xbf16>
    %90 = tpu.concatenate %89, %88, %89 in 1 : vector<16x2x128xbf16>, vector<16x16x128xbf16>, vector<16x2x128xbf16> -> vector<16x20x128xbf16>
    %91 = vector.extract_strided_slice %90 {offsets = [0, 0, 0], sizes = [16, 16, 128], strides = [1, 1, 1]} : vector<16x20x128xbf16> to vector<16x16x128xbf16>
    %92 = vector.extract_strided_slice %90 {offsets = [0, 1, 0], sizes = [16, 16, 128], strides = [1, 1, 1]} : vector<16x20x128xbf16> to vector<16x16x128xbf16>
    %93 = arith.maximumf %91, %92 : vector<16x16x128xbf16>
    %94 = vector.extract_strided_slice %90 {offsets = [0, 2, 0], sizes = [16, 16, 128], strides = [1, 1, 1]} : vector<16x20x128xbf16> to vector<16x16x128xbf16>
    %95 = arith.maximumf %93, %94 : vector<16x16x128xbf16>
    %96 = vector.extract_strided_slice %90 {offsets = [0, 3, 0], sizes = [16, 16, 128], strides = [1, 1, 1]} : vector<16x20x128xbf16> to vector<16x16x128xbf16>
    %97 = arith.maximumf %95, %96 : vector<16x16x128xbf16>
    %98 = vector.extract_strided_slice %90 {offsets = [0, 4, 0], sizes = [16, 16, 128], strides = [1, 1, 1]} : vector<16x20x128xbf16> to vector<16x16x128xbf16>
    %99 = arith.maximumf %97, %98 : vector<16x16x128xbf16>
    %100 = vector.shape_cast %99 : vector<16x16x128xbf16> to vector<256x128xbf16>
    %c3 = arith.constant 3 : index
    %c0_27 = arith.constant 0 : index
    %c0_28 = arith.constant 0 : index
    %101 = vector.load %arg5[%c3, %c0_27, %c0_28] : memref<4x128x128xbf16, #tpu.memory_space<vmem>>, vector<1x128x128xbf16>
    %102 = vector.shape_cast %101 : vector<1x128x128xbf16> to vector<128x128xbf16>
    %cst_29 = arith.constant dense<0.000000e+00> : vector<256x128xf32>
    %103 = tpu.matmul %100, %102, %cst_29 {dimension_numbers = #tpu.dot_dimension_numbers<[1], [0], [0], [1], [0, 0, 1, 1], [], []>} : vector<256x128xbf16>, vector<128x128xbf16>, vector<256x128xf32> -> vector<256x128xf32>
    %104 = arith.addf %77, %103 : vector<256x128xf32>
    %c0_30 = arith.constant 0 : index
    %c0_31 = arith.constant 0 : index
    %105 = vector.load %arg6[%c0_30, %c0_31] : memref<1x128xf32, #tpu.memory_space<vmem>>, vector<1x128xf32>
    %106 = vector.broadcast %105 : vector<1x128xf32> to vector<256x128xf32>
    %107 = arith.mulf %104, %106 : vector<256x128xf32>
    %c0_32 = arith.constant 0 : index
    %c0_33 = arith.constant 0 : index
    %108 = vector.load %arg7[%c0_32, %c0_33] : memref<1x128xf32, #tpu.memory_space<vmem>>, vector<1x128xf32>
    %109 = vector.broadcast %108 : vector<1x128xf32> to vector<256x128xf32>
    %110 = arith.addf %107, %109 : vector<256x128xf32>
    %cst_34 = arith.constant 0.000000e+00 : f32
    %111 = vector.broadcast %cst_34 : f32 to vector<256x128xf32>
    %112 = arith.subf %111, %110 : vector<256x128xf32>
    %113 = math.exp %112 : vector<256x128xf32>
    %cst_35 = arith.constant 1.000000e+00 : f32
    %114 = vector.broadcast %cst_35 : f32 to vector<256x128xf32>
    %115 = arith.addf %114, %113 : vector<256x128xf32>
    %116 = tpu.reciprocal %115 {approx = true} : vector<256x128xf32> -> vector<256x128xf32>
    %117 = arith.mulf %110, %116 : vector<256x128xf32>
    %118 = vector.shape_cast %117 : vector<256x128xf32> to vector<16x16x128xf32>
    %c0_36 = arith.constant 0 : index
    %c0_37 = arith.constant 0 : index
    %c0_38 = arith.constant 0 : index
    %c0_39 = arith.constant 0 : index
    %119 = vector.load %arg8[%c0_36, %c0_37, %c0_38, %c0_39] : memref<1x16x16x128xf32, #tpu.memory_space<vmem>>, vector<1x16x16x128xf32>
    %120 = vector.shape_cast %119 : vector<1x16x16x128xf32> to vector<16x16x128xf32>
    %121 = vector.shape_cast %118 : vector<16x16x128xf32> to vector<1x16x16x128xf32>
    tpu.vector_store %arg8[%c0_36, %c0_37, %c0_38, %c0_39], %121 {strides = array<i32>} : memref<1x16x16x128xf32, #tpu.memory_space<vmem>>, vector<1x16x16x128xf32>,
    return
  }
  func.func @transform_0(%arg0: i32) -> (i32, i32, i32, i32) {
    %c0_i32 = arith.constant 0 : i32
    %c0_i32_0 = arith.constant 0 : i32
    %c0_i32_1 = arith.constant 0 : i32
    %c0_i32_2 = arith.constant 0 : i32
    return %arg0, %c0_i32, %c0_i32_0, %c0_i32_1 : i32, i32, i32, i32
  }
  func.func @transform_1(%arg0: i32) -> (i32, i32) {
    %c0_i32 = arith.constant 0 : i32
    %c0_i32_0 = arith.constant 0 : i32
    %c0_i32_1 = arith.constant 0 : i32
    return %c0_i32, %c0_i32_0 : i32, i32
  }
  func.func @transform_2(%arg0: i32) -> (i32, i32) {
    %c0_i32 = arith.constant 0 : i32
    %c0_i32_0 = arith.constant 0 : i32
    %c0_i32_1 = arith.constant 0 : i32
    return %c0_i32, %c0_i32_0 : i32, i32
  }
  func.func @transform_3(%arg0: i32) -> (i32, i32) {
    %c0_i32 = arith.constant 0 : i32
    %c0_i32_0 = arith.constant 0 : i32
    %c0_i32_1 = arith.constant 0 : i32
    return %c0_i32, %c0_i32_0 : i32, i32
  }
  func.func @transform_4(%arg0: i32) -> (i32, i32, i32) {
    %c0_i32 = arith.constant 0 : i32
    %c0_i32_0 = arith.constant 0 : i32
    %c0_i32_1 = arith.constant 0 : i32
    %c0_i32_2 = arith.constant 0 : i32
    return %c0_i32, %c0_i32_0, %c0_i32_1 : i32, i32, i32
  }
  func.func @transform_5(%arg0: i32) -> (i32, i32) {
    %c0_i32 = arith.constant 0 : i32
    %c0_i32_0 = arith.constant 0 : i32
    %c0_i32_1 = arith.constant 0 : i32
    return %c0_i32, %c0_i32_0 : i32, i32
  }
  func.func @transform_6(%arg0: i32) -> (i32, i32) {
    %c0_i32 = arith.constant 0 : i32
    %c0_i32_0 = arith.constant 0 : i32
    %c0_i32_1 = arith.constant 0 : i32
    return %c0_i32, %c0_i32_0 : i32, i32
  }
  func.func @transform_7(%arg0: i32) -> (i32, i32, i32, i32) {
    %c0_i32 = arith.constant 0 : i32
    %c0_i32_0 = arith.constant 0 : i32
    %c0_i32_1 = arith.constant 0 : i32
    %c0_i32_2 = arith.constant 0 : i32
    return %arg0, %c0_i32, %c0_i32_0, %c0_i32_1 : i32, i32, i32, i32
  }
}

</mosaic_0001>

<bundles_post_ra>
// kernel: tpu_custom_call.1
= control target key start
LH: loop header
LB: loop body
LE: loop exit
PB: predicated region body
PF: predicated region fallthrough
CT: control target
= control target key end

     0   :  { %s8012_s0 = inlined_call_operand.hbm [shape: bf16[2,16,16,128], index: 0, kind: input, shape index: {}]   ;;  %s8013_s1 = inlined_call_operand.hbm [shape: bf16[128,128], index: 1, kind: input, shape index: {}]   ;;  %s8014_s2 = inlined_call_operand.vmem [shape: f32[1,128], index: 2, kind: input, shape index: {}]   ;;  %s8015_s3 = inlined_call_operand.vmem [shape: f32[1,128], index: 3, kind: input, shape index: {}]   ;;  %s8016_s4 = inlined_call_operand.hbm [shape: bf16[4,128,128], index: 4, kind: input, shape index: {}]   ;;  %s8017_s5 = inlined_call_operand.vmem [shape: f32[1,128], index: 5, kind: input, shape index: {}]   ;;  %s8018_s6 = inlined_call_operand.vmem [shape: f32[1,128], index: 6, kind: input, shape index: {}]   ;;  %s8019_s7 = inlined_call_operand.hbm [shape: f32[2,16,16,128], index: 7, kind: output, shape index: {}]  }
   0x1   :  { %8085 = sst [smem:[#allocation48_spill]] %s8013_s1 }
   0x2   :  { %12 = vsyncpa [#allocation3], 0 }
   0x3   :  { %14 = vsyncpa [#allocation3 + $0x1], 0 }
   0x4   :  { %15 = vsyncpa [#allocation6], 0 }
   0x5   :  { %16 = vsyncpa [#allocation4], 0 }
   0x6   :  { %18 = vsyncpa [#allocation4 + $0x1], 0  ;;  %s5513_s24 = smov 0   ;;  %s5515_s25 = smov 0  }
   0x7   :  { %s5517_s26 = smov 0   ;;  %s5519_s27 = smov 0  }
   0x8 LB: > { %s5534_s28 = sadd.s32 4294967295, %s5463_s27   ;;  %s4475_s29 = sadd.s32 4294967294, %s5463_s27   ;;  %s5463_s27 = sphi %s5519_s27, %s8321_s27   ;;  %s5459_s26 = sphi %s5517_s26, %s8320_s26   ;;  %s5455_s25 = sphi %s5515_s25, %s8319_s25   ;;  %s5451_s24 = sphi %s5513_s24, %s8318_s24  }
   0x9   : > { %p44_p0 = scmp.ne.s32.totalorder %s5455_s25, %s5451_s24  ;;  %p8021_p1 = scmp.eq.s32.totalorder %s5534_s28, 0 }
   0xa   : > { %p194_p2 = scmp.eq.s32.totalorder %s5534_s28, 1  ;;  %p200_p3 = scmp.eq.s32.totalorder %s4475_s29, 1 }
   0xb   : > { %p5543_p4 = por %p8021_p1, %p44_p0  ;;  %p4476_p5 = scmp.ge.s32.totalorder %s5463_s27, 1 }
   0xc   : > { %p5548_p6 = por %p200_p3, %p44_p0  ;;  %p207_p7 = scmp.lt.s32.totalorder %s5463_s27, 3 }
   0xd   : > { %s8086_s30 = scalar_select %p5543_p4, 1, 0 }
   0xe   : > { %s8087_s8 = scalar_select %p5548_p6, 1, 0 }
   0xf   : > { %p5553_p8 = pnand %p4476_p5, %p207_p7  ;;  %s5465_s10 = smov [#allocation5]  }
  0x10   : > { %s219_s11 = sshll.u32 %s5465_s10, 4  ;;  %s5466_s13 = smov [#allocation7]   ;;  %s220_s11 = int_to_ptr.vmem [resolvable:$true] %s219_s11 }
  0x11   : > { %s8088_s9 = scalar_select %p5553_p8, 1, 0 }
  0x12   : > { %p4943_p9 = pneg %p5553_p8  ;;  %s238_s14 = sshll.u32 %s5466_s13, 4  ;;  %s239_s14 = int_to_ptr.vmem [resolvable:$true] %s238_s14 }
  0x13   : > { %s5326_s15 = scalar_lea.vmem %s220_s11, 1024  ;;  %p5334_p5 = scmp.lt.s32.totalorder %s220_s11, %s220_s11 }
  0x14   : > { %p5562_p11 = pnand %p4943_p9, %p8021_p1  ;;  %p5327_p13 = scmp.ne.s32.totalorder %s220_s11, %s5326_s15 }
  0x15   : > { %p5335_p7 = scmp.lt.s32.totalorder %s5326_s15, %s5326_s15 }
  0x16   : > { %p5317_p12 = pneg %p5562_p11 }
  0x17   : > { %p5336_p10 = por %p5335_p7, %p5334_p5 }
  0x18   : > { %p5329_p0 = pnand %p5327_p13, %p5317_p12 }
  0x1a   : > { %p5330_p3 = pneg %p5329_p0 }
  0x1c   : > { %p5337_p9 = pnand %p5336_p10, %p5330_p3 }
  0x1e   : > { %5340 = shalt.err (!%p5337_p9)
}
  0x1f   : > { %s8020_s16 = smov 64   ;;  %s8022_s17 = smov 4  }
  0x20   : > { %s8090_s1 = sld [smem:[#allocation48_spill]]  ;;  %s5352_s20 = scalar_lea.vmem %s239_s14, 4096 }
  0x21   : > { %p5353_p13 = scmp.ne.s32.totalorder %s239_s14, %s5352_s20  ;;  %p5360_p10 = scmp.lt.s32.totalorder %s239_s14, %s239_s14 }
  0x22   : > { %p5361_p3 = scmp.lt.s32.totalorder %s5352_s20, %s5352_s20 }
  0x23   : > { %p5355_p0 = pnand %p5353_p13, %p5317_p12 }
  0x24   : > { %p5362_p7 = por %p5361_p3, %p5360_p10 }
  0x25   : > { %p5356_p5 = pneg %p5355_p0 }
  0x26   : > { %4946 = dma.hbm_to_vmem [thread:$0]  (!%p5562_p11), %s8090_s1, 1024, %s220_s11, [#allocation6], %s8020_s16, %s8020_s16, %s8022_s17  }
  0x27   : > { %p5363_p9 = pnand %p5362_p7, %p5356_p5 }
  0x29   : > { %5366 = shalt.err (!%p5363_p9)
}
  0x2a   : > { %4949 = dma.hbm_to_vmem [thread:$0]  (!%p5562_p11), %s8016_s4, 4096, %s239_s14, [#allocation6], %s8020_s16, %s8020_s16, %s8022_s17  }
  0x2b   : > { %s5591_s23 = sadd.s32 1, %s5463_s27   ;;  %s31_s29 = sadd.s32 1, %s5459_s26 }
  0x2c   : > { %s28_s10 = ssub.s32 %s5463_s27, %s5591_s23  ;;  %p38_p12 = scmp.ne.s32.totalorder %s5459_s26, %s5455_s25 }
  0x2d   : > { %p29_p13 = scmp.eq.s32.totalorder %s28_s10, 0  ;;  %p39_p0 = scmp.eq.s32.totalorder %s5463_s27, 0 }
  0x2e   : > { %p5601_p5 = por %p194_p2, %p38_p12  ;;  %p4960_p10 = scmp.lt.s32.totalorder %s5463_s27, 2 }
  0x2f   : > { %s5607_s12 = scalar_select %p29_p13, %s5459_s26, %s31_s29  }
  0x30   : > { %s8091_s11 = scalar_select %p5601_p5, 1, 0 }
  0x31   : > { %p40_p3 = por %p39_p0, %p38_p12  ;;  %s258_s13 = sand.u32 1, %s5459_s26  }
  0x32   : > { %s4480_s15 = sshll.u32 %s258_s13, 7  ;;  %s4553_s14 = sshll.u32 %s5463_s27, 11 }
  0x33   : > { %s5614_s20 = scalar_lea.hbm %s8012_s0, %s4553_s14  ;;  %s262_s21 = scalar_lea.vmem [#allocation2], %s4480_s15 }
  0x34   : > { %s269_s22 = sshll.u32 %s262_s21, 4  ;;  %p5618_p2 = pnand %p4960_p10, %p40_p3  ;;  %s5616_s22 = int_to_ptr.vmem [resolvable:$true] %s269_s22 }
  0x35   : > { %s5622_s29 = scalar_lea.sflag [#allocation3], %s258_s13  ;;  %s5367_s16 = scalar_lea.hbm %s5614_s20, 2048 }
  0x36   : > { %p5368_p11 = scmp.ne.s32.totalorder %s5614_s20, %s5367_s16  ;;  %p5369_p7 = pneg %p5618_p2 }
  0x37   : > { %s5372_s15 = scalar_lea.hbm %s8012_s0, 4096  ;;  %p5373_p13 = scmp.lt.s32.totalorder %s5614_s20, %s8012_s0 }
  0x38   : > { %p5370_p9 = pnand %p5369_p7, %p5368_p11  ;;  %p5374_p0 = scmp.lt.s32.totalorder %s5372_s15, %s5367_s16 }
  0x3a   : > { %p5371_p12 = pneg %p5370_p9  ;;  %p5375_p10 = por %p5374_p0, %p5373_p13 }
  0x3c   : > { %p5376_p3 = pnand %p5375_p10, %p5371_p12 }
  0x3e   : > { %5379 = shalt.err (!%p5376_p3)
}
  0x3f   : > { %s5380_s13 = scalar_lea.vmem %s5616_s22, 2048  ;;  %s5469_s17 = smov [#allocation2]  }
  0x40   : > { %p5381_p1 = scmp.ne.s32.totalorder %s5616_s22, %s5380_s13  ;;  %s5385_s1 = sshll.u32 %s5469_s17, 4  ;;  %s5386_s1 = int_to_ptr.vmem [resolvable:$false] %s5385_s1 }
  0x41   : > { %s5387_s14 = scalar_lea.vmem %s5386_s1, 4096  ;;  %p5388_p9 = scmp.lt.s32.totalorder %s5616_s22, %s5386_s1 }
  0x42   : > { %p5383_p6 = pnand %p5381_p1, %p5369_p7  ;;  %p5389_p5 = scmp.lt.s32.totalorder %s5387_s14, %s5380_s13 }
  0x44   : > { %p5384_p11 = pneg %p5383_p6  ;;  %p5390_p4 = por %p5389_p5, %p5388_p9 }
  0x46   : > { %p5391_p8 = pnand %p5390_p4, %p5384_p11 }
  0x48   : > { %5394 = shalt.err (!%p5391_p8)
}
  0x49   : > { %s8093_s16 = smov 4   ;;  %s8094_s18 = smov 64  }
  0x4a   : > { %4953 = dma.hbm_to_vmem [thread:$0]  (!%p5618_p2), %s5614_s20, 2048, %s5616_s22, %s5622_s29, %s8094_s18, %s8094_s18, %s8093_s16  }
  0x4b   : > { %p8095_p1 = scmp.ne.s32.totalorder %s8088_s9, 0 }
  0x4d   : > { %281 = sbr.rel (%p8095_p1) target bundleno = 1048 (0x418), region = 48 }
  0x52   : > { %s5649_s17 = sand.u32 1, %s5455_s25   ;;  %p8096_p4 = scmp.ne.s32.totalorder %s8086_s30, 0 }
  0x53   : > { %s4484_s1 = sshll.u32 %s5649_s17, 7  ;;  %s284_s15 = scalar_lea.sflag [#allocation3], %s5649_s17 }
  0x54   : > { %s5653_s19 = scalar_lea.vmem [#allocation2], %s4484_s1 }
  0x55   : > { %5438 = dma.done.wait (%p8096_p4), %s284_s15, 2048  }
  0x56   : > { %5440 = vsyncadd (%p8096_p4), %s284_s15, 4294965248  ;;  %p8097_p6 = scmp.eq.s32.totalorder %s5534_s28, 0 }
  0x58   : > { %5442 = dma.done.wait (%p8097_p6), [#allocation6], 5120   ;;  %p8098_p8 = pmov %p8097_p6 }
  0x59   : > { %v5002_v0 = vld [vmem:[#allocation5 + $0x38] sm:$0xff]   ;;  %v5003_v1 = vld [vmem:[#allocation5 + $0x30] sm:$0xff]   ;;  %v5004_v2 = vld [vmem:[#allocation5 + $0x28] sm:$0xff]   ;;  %vm1068_vm0 = vcmask 1040384   ;;  %vm1134_vm1 = vsmask.f32 7424 }
  0x5a   : > { %5444 = vsyncadd (%p8098_p8), [#allocation6], 4294962176  ;;  %4675 = vmatprep.subr.bf16.mxu0 %v5002_v0  ;;  %4915 = vmatprep.subr.bf16.mxu1 %v5002_v0  ;;  %v5005_v3 = vld [vmem:[#allocation5 + $0x20] sm:$0xff]   ;;  %v5006_v6 = vld [vmem:[#allocation5 + $0x18] sm:$0xff]   ;;  %vm1359_vm2 = vcmask 1046528   ;;  %vm1617_vm3 = vcmask 1045504  }
  0x5b   : > { %4676 = vmatpush3.bf16.msra.mxu0 %v5002_v0  ;;  %4923 = vmatpush3.bf16.msra.mxu1 %v5002_v0  ;;  %v5010_v4 = vld [vmem:[%s5653_s19] sm:$0xff]   ;;  %v5007_v7 = vld [vmem:[#allocation5 + $0x10] sm:$0xff]   ;;  %v5008_v8 = vld [vmem:[#allocation5 + $0x8] sm:$0xff]   ;;  %vm1440_vm4 = vsmask.f32 6400  ;;  %s4487_s14 = sshll.u32 %s5649_s17, 8 }
  0x5c   : > { %4677 = vmatprep.subr.bf16.mxu0 %v5003_v1  ;;  %4916 = vmatprep.subr.bf16.mxu1 %v5003_v1  ;;  %v5011_v5 = vld [vmem:[%s5653_s19 + $0x40] sm:$0xff]   ;;  %v5012_v10 = vld [vmem:[%s5653_s19 + $0x8] sm:$0xff]   ;;  %v5014_v12 = vld [vmem:[%s5653_s19 + $0x10] sm:$0xff]   ;;  %s7725_s16 = scalar_lea.vmem [#allocation8], %s4487_s14  ;;  %s4554_s18 = sshll.u32 %s5534_s28, 12 }
  0x5d   : > { %4691 = vmatprep.mubr.bf16.mxu0 %v5010_v4  ;;  %4707 = vmatprep.mubr.bf16.mxu1 %v5011_v5  ;;  %v5009_v9 = vld [vmem:[#allocation5] sm:$0xff]   ;;  %v5013_v11 = vld [vmem:[%s5653_s19 + $0x48] sm:$0xff]   ;;  %v5015_v13 = vld [vmem:[%s5653_s19 + $0x50] sm:$0xff]   ;;  %s4383_s1 = sshll.u32 %s7725_s16, 4  ;;  %s7966_s30 = scalar_lea.hbm %s8019_s7, %s4554_s18  ;;  %s7968_s1 = int_to_ptr.vmem [resolvable:$true] %s4383_s1 }
  0x5e   : > { %v5016_v14 = vld [vmem:[%s5653_s19 + $0x18] sm:$0xff]   ;;  %v5018_v16 = vld [vmem:[%s5653_s19 + $0x20] sm:$0xff]   ;;  %v5020_v18 = vld [vmem:[%s5653_s19 + $0x28] sm:$0xff]   ;;  %s4370_s9 = scalar_lea.sflag [#allocation4], %s5649_s17  ;;  %s5395_s28 = scalar_lea.vmem %s7968_s1, 4096 }
  0x5f   : > { %4678 = vmatpush3.bf16.msra.mxu0 %v5003_v1  ;;  %4924 = vmatpush3.bf16.msra.mxu1 %v5003_v1  ;;  %v5017_v15 = vld [vmem:[%s5653_s19 + $0x58] sm:$0xff]   ;;  %v5019_v17 = vld [vmem:[%s5653_s19 + $0x60] sm:$0xff]   ;;  %v5021_v19 = vld [vmem:[%s5653_s19 + $0x68] sm:$0xff]   ;;  %p5396_p5 = scmp.ne.s32.totalorder %s7968_s1, %s5395_s28  ;;  %p8315_p2 = scmp.ne.s32.totalorder %s8091_s11, 0 }
  0x60   : > { %4679 = vmatprep.subr.bf16.mxu0 %v5004_v2  ;;  %4917 = vmatprep.subr.bf16.mxu1 %v5004_v2  ;;  %v5022_v20 = vld [vmem:[%s5653_s19 + $0x30] sm:$0xff]   ;;  %v5024_v22 = vld [vmem:[%s5653_s19 + $0x38] sm:$0xff]   ;;  %v5028_v26 = vld [vmem:[#allocation7 + $0x28] sm:$0xff]   ;;  %s5470_s20 = smov [#allocation8]  }
  0x61   : > { %v5023_v21 = vld [vmem:[%s5653_s19 + $0x70] sm:$0xff]   ;;  %v5025_v23 = vld [vmem:[%s5653_s19 + $0x78] sm:$0xff]   ;;  %v5029_v27 = vld [vmem:[#allocation7 + $0x20] sm:$0xff]   ;;  %p5397_p7 = pnand %p5396_p5, %p8315_p2  ;;  %s5399_s22 = sshll.u32 %s5470_s20, 4  ;;  %s5400_s22 = int_to_ptr.vmem [resolvable:$false] %s5399_s22 }
  0x62   : > { %v5026_v24 = vld [vmem:[#allocation7 + $0x38] sm:$0xff]   ;;  %v5027_v25 = vld [vmem:[#allocation7 + $0x30] sm:$0xff]   ;;  %v5032_v30 = vld [vmem:[#allocation7 + $0x8] sm:$0xff]   ;;  %s5401_s10 = scalar_lea.vmem %s5400_s22, 8192  ;;  %p5402_p13 = scmp.lt.s32.totalorder %s7968_s1, %s5400_s22 }
  0x63   : > { %4680 = vmatpush3.bf16.msra.mxu0 %v5004_v2  ;;  %4925 = vmatpush3.bf16.msra.mxu1 %v5004_v2  ;;  %v5030_v28 = vld [vmem:[#allocation7 + $0x18] sm:$0xff]   ;;  %v5031_v29 = vld [vmem:[#allocation7 + $0x10] sm:$0xff]   ;;  %v5034_v31 = vld [vmem:[#allocation7] sm:$0xff]   ;;  %p5398_p12 = pneg %p5397_p7  ;;  %p5403_p0 = scmp.lt.s32.totalorder %s5401_s10, %s5395_s28 }
  0x64   : > { %4681 = vmatprep.subr.bf16.mxu0 %v5005_v3  ;;  %4918 = vmatprep.subr.bf16.mxu1 %v5005_v3  ;;  %v5033_v32 = vld [vmem:[#allocation7 + $0x78] sm:$0xff]   ;;  %v5035_v33 = vld [vmem:[#allocation7 + $0x70] sm:$0xff]   ;;  %v5036_v34 = vld [vmem:[#allocation7 + $0x68] sm:$0xff]  }
  0x65   : > { %v5037_v35 = vld [vmem:[#allocation7 + $0x60] sm:$0xff]   ;;  %v5038_v36 = vld [vmem:[#allocation7 + $0x58] sm:$0xff]   ;;  %v5039_v37 = vld [vmem:[#allocation7 + $0x50] sm:$0xff]   ;;  %p5404_p10 = por %p5403_p0, %p5402_p13 }
  0x66   : > { %v5040_v38 = vld [vmem:[#allocation7 + $0x48] sm:$0xff]   ;;  %v5041_v39 = vld [vmem:[#allocation7 + $0x40] sm:$0xff]   ;;  %v5042_v44 = vld [vmem:[#allocation7 + $0xb8] sm:$0xff]  }
  0x67   : > { %4682 = vmatpush3.bf16.msra.mxu0 %v5005_v3  ;;  %4926 = vmatpush3.bf16.msra.mxu1 %v5005_v3  ;;  %v5682_v40 = vld [vmem:[%s8014_s2] ss:$0 sm:$0xff]  ;;  %v5691_v47 = vld [vmem:[#allocation7 + $0xf8] sm:$0xff]   ;;  %p5405_p3 = pnand %p5404_p10, %p5398_p12 }
  0x68   : > { %4683 = vmatprep.subr.bf16.mxu0 %v5006_v6  ;;  %4919 = vmatprep.subr.bf16.mxu1 %v5006_v6  ;;  %v5687_v42 = vld [vmem:[%s8015_s3] ss:$0 sm:$0xff] }
  0x6b   : > { %4684 = vmatpush3.bf16.msra.mxu0 %v5006_v6  ;;  %4927 = vmatpush3.bf16.msra.mxu1 %v5006_v6 }
  0x6c   : > { %4685 = vmatprep.subr.bf16.mxu0 %v5007_v7  ;;  %4920 = vmatprep.subr.bf16.mxu1 %v5007_v7 }
  0x6f   : > { %4686 = vmatpush3.bf16.msra.mxu0 %v5007_v7  ;;  %4928 = vmatpush3.bf16.msra.mxu1 %v5007_v7 }
  0x70   : > { %4687 = vmatprep.subr.bf16.mxu0 %v5008_v8  ;;  %4921 = vmatprep.subr.bf16.mxu1 %v5008_v8 }
  0x73   : > { %4688 = vmatpush3.bf16.msra.mxu0 %v5008_v8  ;;  %4929 = vmatpush3.bf16.msra.mxu1 %v5008_v8 }
  0x74   : > { %4689 = vmatprep.subr.bf16.mxu0 %v5009_v9  ;;  %4922 = vmatprep.subr.bf16.mxu1 %v5009_v9 }
  0x77   : > { %4690 = vmatpush3.bf16.msra.mxu0 %v5009_v9  ;;  %4930 = vmatpush3.bf16.msra.mxu1 %v5009_v9 }
  0x78   : > { %4771 = vmatprep.subr.bf16.mxu0 %v5026_v24  ;;  %4723 = vmatprep.subr.bf16.mxu1 %v5033_v32 }
  0x7a   : > { %4692 = vmatmul.mubr.bf16.vlgmr.msra.gmra.mxu0 %v5012_v10  ;;  %4708 = vmatmul.mubr.bf16.vlgmr.msra.gmra.mxu1 %v5013_v11 }
  0x7b   : > { %4695 = vmatprep.mubr.bf16.mxu0 %v5014_v12  ;;  %4711 = vmatprep.mubr.bf16.mxu1 %v5015_v13 }
  0x7c   : > { %4772 = vmatpush3.bf16.msra.mxu0 %v5026_v24  ;;  %4724 = vmatpush3.bf16.msra.mxu1 %v5033_v32 }
  0x7d   : > { %4773 = vmatprep.subr.bf16.mxu0 %v5027_v25  ;;  %4725 = vmatprep.subr.bf16.mxu1 %v5035_v33 }
  0x80   : > { %4774 = vmatpush3.bf16.msra.mxu0 %v5027_v25  ;;  %4726 = vmatpush3.bf16.msra.mxu1 %v5035_v33 }
  0x81   : > { %4775 = vmatprep.subr.bf16.mxu0 %v5028_v26  ;;  %4727 = vmatprep.subr.bf16.mxu1 %v5036_v34 }
  0x82   : > { %4696 = vmatmul.mubr.bf16.gmra.mxu0 %v5016_v14  ;;  %4712 = vmatmul.mubr.bf16.gmra.mxu1 %v5017_v15 }
  0x83   : > { %4699 = vmatprep.mubr.bf16.mxu0 %v5018_v16  ;;  %4715 = vmatprep.mubr.bf16.mxu1 %v5019_v17 }
  0x84   : > { %4776 = vmatpush3.bf16.msra.mxu0 %v5028_v26  ;;  %4728 = vmatpush3.bf16.msra.mxu1 %v5036_v34 }
  0x85   : > { %4777 = vmatprep.subr.bf16.mxu0 %v5029_v27  ;;  %4729 = vmatprep.subr.bf16.mxu1 %v5037_v35 }
  0x88   : > { %4778 = vmatpush3.bf16.msra.mxu0 %v5029_v27  ;;  %4730 = vmatpush3.bf16.msra.mxu1 %v5037_v35 }
  0x89   : > { %4779 = vmatprep.subr.bf16.mxu0 %v5030_v28  ;;  %4731 = vmatprep.subr.bf16.mxu1 %v5038_v36 }
  0x8a   : > { %4700 = vmatmul.mubr.bf16.gmra.mxu0 %v5020_v18  ;;  %4716 = vmatmul.mubr.bf16.gmra.mxu1 %v5021_v19 }
  0x8b   : > { %4703 = vmatprep.mubr.bf16.mxu0 %v5022_v20  ;;  %4719 = vmatprep.mubr.bf16.mxu1 %v5023_v21 }
  0x8c   : > { %4780 = vmatpush3.bf16.msra.mxu0 %v5030_v28  ;;  %4732 = vmatpush3.bf16.msra.mxu1 %v5038_v36 }
  0x8d   : > { %4781 = vmatprep.subr.bf16.mxu0 %v5031_v29  ;;  %4733 = vmatprep.subr.bf16.mxu1 %v5039_v37 }
  0x90   : > { %4782 = vmatpush3.bf16.msra.mxu0 %v5031_v29  ;;  %4734 = vmatpush3.bf16.msra.mxu1 %v5039_v37 }
  0x91   : > { %4783 = vmatprep.subr.bf16.mxu0 %v5032_v30  ;;  %4735 = vmatprep.subr.bf16.mxu1 %v5040_v38 }
  0x92   : > { %4704 = vmatmul.mubr.bf16.gmra.mxu0 %v5024_v22  ;;  %4720 = vmatmul.mubr.bf16.gmra.mxu1 %v5025_v23 }
  0x94   : > { %4784 = vmatpush3.bf16.msra.mxu0 %v5032_v30  ;;  %4736 = vmatpush3.bf16.msra.mxu1 %v5040_v38 }
  0x95   : > { %4785 = vmatprep.subr.bf16.mxu0 %v5034_v31  ;;  %4737 = vmatprep.subr.bf16.mxu1 %v5041_v39 }
  0x98   : > { %4786 = vmatpush3.bf16.msra.mxu0 %v5034_v31  ;;  %4738 = vmatpush3.bf16.msra.mxu1 %v5041_v39 }
  0x99   : > { %4819 = vmatprep.subr.bf16.mxu1 %v5042_v44  ;;  %4867 = vmatprep.subr.bf16.mxu0 %v5691_v47 }
 0x13a   : > { %v4693_v41 = vpop.f32.mrf.mxu0  ;;  %v4709_v43 = vpop.f32.mrf.mxu1 }
 0x13b   : > { %v690_v45 = vmul.f32 %v4693_v41, %v5682_v40  ;;  %v706_v46 = vmul.f32 %v4709_v43, %v5682_v40 }
 0x13c   : > { %v554_v48 = vpop.f32.mrf.mxu0  ;;  %v618_v49 = vpop.f32.mrf.mxu1 }
 0x13d   : > { %v5694_v50 = vadd.f32 %v5687_v42, %v690_v45  ;;  %v5697_v51 = vadd.f32 %v5687_v42, %v706_v46  ;;  %v688_v52 = vmul.f32 %v5682_v40, %v554_v48  ;;  %v704_v53 = vmul.f32 %v5682_v40, %v618_v49 }
 0x13e   : > { %v4694_v54 = vpop.f32.mrf.mxu0  ;;  %v4710_v55 = vpop.f32.mrf.mxu1 }
 0x13f   : > { %v761_v56 = vsub.f32 0.0, %v5694_v50  ;;  %v777_v57 = vsub.f32 0.0, %v5697_v51  ;;  %v5705_v58 = vadd.f32 %v5687_v42, %v688_v52  ;;  %v5708_v59 = vadd.f32 %v5687_v42, %v704_v53 }
 0x140   : > { %v691_v60 = vmul.f32 %v4694_v54, %v5682_v40  ;;  %v707_v61 = vmul.f32 %v4710_v55, %v5682_v40  ;;  %v557_v62 = vpop.f32.mrf.mxu0  ;;  %v621_v63 = vpop.f32.mrf.mxu1 }
 0x141   : > { %v795_v0 = vmul.f32 1.442695, %v761_v56  ;;  %v827_v1 = vmul.f32 1.442695, %v777_v57  ;;  %v759_v2 = vsub.f32 0.0, %v5705_v58  ;;  %v775_v3 = vsub.f32 0.0, %v5708_v59 }
 0x142   : > { %v5715_v4 = vadd.f32 %v5687_v42, %v691_v60  ;;  %v5718_v5 = vadd.f32 %v5687_v42, %v707_v61  ;;  %v689_v6 = vmul.f32 %v5682_v40, %v557_v62  ;;  %v705_v7 = vmul.f32 %v5682_v40, %v621_v63  ;;  %v4697_v8 = vpop.f32.mrf.mxu0  ;;  %v4713_v9 = vpop.f32.mrf.mxu1 }
 0x143   : > { %5058 = vpow2.f32 %v795_v0  ;;  %v791_v10 = vmul.f32 1.442695, %v759_v2  ;;  %v823_v11 = vmul.f32 1.442695, %v775_v3  ;;  %v694_v12 = vmul.f32 %v4697_v8, %v5682_v40 }
 0x144   : > { %5060 = vpow2.f32 %v827_v1  ;;  %v762_v13 = vsub.f32 0.0, %v5715_v4  ;;  %v778_v14 = vsub.f32 0.0, %v5718_v5  ;;  %v5726_v15 = vadd.f32 %v5687_v42, %v689_v6  ;;  %v570_v16 = vpop.f32.mrf.mxu0  ;;  %v634_v17 = vpop.f32.mrf.mxu1 }
 0x145   : > { %5062 = vpow2.f32 %v791_v10  ;;  %v5729_v18 = vadd.f32 %v5687_v42, %v705_v7  ;;  %v5732_v19 = vadd.f32 %v5687_v42, %v694_v12  ;;  %v710_v20 = vmul.f32 %v4713_v9, %v5682_v40 }
 0x146   : > { %5064 = vpow2.f32 %v823_v11  ;;  %v797_v21 = vmul.f32 1.442695, %v762_v13  ;;  %v829_v22 = vmul.f32 1.442695, %v778_v14  ;;  %v760_v23 = vsub.f32 0.0, %v5726_v15  ;;  %v4698_v24 = vpop.f32.mrf.mxu0  ;;  %v4714_v25 = vpop.f32.mrf.mxu1 }
 0x147   : > { %v776_v26 = vsub.f32 0.0, %v5729_v18  ;;  %v765_v27 = vsub.f32 0.0, %v5732_v19  ;;  %v5739_v28 = vadd.f32 %v5687_v42, %v710_v20  ;;  %v692_v29 = vmul.f32 %v5682_v40, %v570_v16 }
 0x148   : > { %5066 = vpow2.f32 %v797_v21  ;;  %v793_v30 = vmul.f32 1.442695, %v760_v23  ;;  %v708_v31 = vmul.f32 %v5682_v40, %v634_v17  ;;  %v695_v32 = vmul.f32 %v4698_v24, %v5682_v40  ;;  %v573_v33 = vpop.f32.mrf.mxu0  ;;  %v637_v34 = vpop.f32.mrf.mxu1 }
 0x149   : > { %5068 = vpow2.f32 %v829_v22  ;;  %v825_v35 = vmul.f32 1.442695, %v776_v26  ;;  %v803_v36 = vmul.f32 1.442695, %v765_v27  ;;  %v781_v37 = vsub.f32 0.0, %v5739_v28 }
 0x14a   : > { %5070 = vpow2.f32 %v793_v30  ;;  %v5746_v38 = vadd.f32 %v5687_v42, %v692_v29  ;;  %v5749_v39 = vadd.f32 %v5687_v42, %v708_v31  ;;  %v5752_v41 = vadd.f32 %v5687_v42, %v695_v32  ;;  %v4701_v43 = vpop.f32.mrf.mxu0  ;;  %v4717_v44 = vpop.f32.mrf.mxu1 }
 0x14b   : > { %5072 = vpow2.f32 %v825_v35  ;;  %v835_v45 = vmul.f32 1.442695, %v781_v37  ;;  %v711_v46 = vmul.f32 %v4714_v25, %v5682_v40  ;;  %v693_v48 = vmul.f32 %v5682_v40, %v573_v33 }
 0x14c   : > { %5074 = vpow2.f32 %v803_v36  ;;  %v763_v49 = vsub.f32 0.0, %v5746_v38  ;;  %v779_v52 = vsub.f32 0.0, %v5749_v39  ;;  %v766_v53 = vsub.f32 0.0, %v5752_v41  ;;  %v586_v56 = vpop.f32.mrf.mxu0  ;;  %v650_v63 = vpop.f32.mrf.mxu1 }
 0x14d   : > { %5076 = vpow2.f32 %v835_v45  ;;  %v5760_v54 = vadd.f32 %v5687_v42, %v711_v46  ;;  %v709_v55 = vmul.f32 %v5682_v40, %v637_v34  ;;  %v698_v62 = vmul.f32 %v4701_v43, %v5682_v40 }
 0x14e   : > { %v799_v57 = vmul.f32 1.442695, %v763_v49  ;;  %v831_v60 = vmul.f32 1.442695, %v779_v52  ;;  %v805_v61 = vmul.f32 1.442695, %v766_v53  ;;  %v714_v1 = vmul.f32 %v4717_v44, %v5682_v40  ;;  %v4702_v11 = vpop.f32.mrf.mxu0  ;;  %v4718_v16 = vpop.f32.mrf.mxu1 }
 0x14f   : > { %v782_v0 = vsub.f32 0.0, %v5760_v54  ;;  %v5767_v3 = vadd.f32 %v5687_v42, %v693_v48  ;;  %v5770_v6 = vadd.f32 %v5687_v42, %v709_v55  ;;  %v5773_v9 = vadd.f32 %v5687_v42, %v698_v62 }
 0x150   : > { %v5059_v2 = vpop.eup %5058  ;;  %5078 = vpow2.f32 %v799_v57  ;;  %v712_v10 = vmul.f32 %v5682_v40, %v650_v63  ;;  %v696_v14 = vmul.f32 %v5682_v40, %v586_v56  ;;  %v5778_v22 = vadd.f32 %v5687_v42, %v714_v1  ;;  %v589_v30 = vpop.f32.mrf.mxu0 }
 0x151   : > { %v5061_v7 = vpop.eup %5060  ;;  %v857_v8 = vadd.f32 1.0, %v5059_v2  ;;  %5080 = vpow2.f32 %v831_v60  ;;  %v837_v21 = vmul.f32 1.442695, %v782_v0  ;;  %v764_v24 = vsub.f32 0.0, %v5767_v3  ;;  %v653_v35 = vpop.f32.mrf.mxu1 }
 0x152   : > { %v5063_v12 = vpop.eup %5062  ;;  %v873_v13 = vadd.f32 1.0, %v5061_v7  ;;  %5082 = vpow2.f32 %v805_v61  ;;  %v780_v25 = vsub.f32 0.0, %v5770_v6  ;;  %v769_v27 = vsub.f32 0.0, %v5773_v9  ;;  %v4705_v56 = vpop.f32.mrf.mxu0 }
 0x153   : > { %v5065_v17 = vpop.eup %5064  ;;  %5084 = vrcp.f32 %v857_v8  ;;  %v855_v20 = vadd.f32 1.0, %v5063_v12  ;;  %v5784_v29 = vadd.f32 %v5687_v42, %v712_v10  ;;  %v699_v33 = vmul.f32 %v4702_v11, %v5682_v40  ;;  %v4721_v63 = vpop.f32.mrf.mxu1 }
 0x154   : > { %5086 = vrcp.f32 %v873_v13  ;;  %v871_v23 = vadd.f32 1.0, %v5065_v17  ;;  %v715_v34 = vmul.f32 %v4718_v16, %v5682_v40  ;;  %v5789_v43 = vadd.f32 %v5687_v42, %v696_v14  ;;  %v602_v16 = vpop.f32.mrf.mxu0 }
 0x155   : > { %v5067_v26 = vpop.eup %5066  ;;  %5088 = vrcp.f32 %v855_v20  ;;  %v801_v46 = vmul.f32 1.442695, %v764_v24  ;;  %v833_v48 = vmul.f32 1.442695, %v780_v25  ;;  %v5792_v53 = vadd.f32 %v5687_v42, %v699_v33  ;;  %v666_v24 = vpop.f32.mrf.mxu1 }
 0x156   : > { %v5069_v31 = vpop.eup %5068  ;;  %5090 = vrcp.f32 %v871_v23  ;;  %v858_v32 = vadd.f32 1.0, %v5067_v26  ;;  %v5795_v55 = vadd.f32 %v5687_v42, %v715_v34  ;;  %v811_v61 = vmul.f32 1.442695, %v769_v27 }
 0x157   : > { %v5071_v36 = vpop.eup %5070  ;;  %v874_v37 = vadd.f32 1.0, %v5069_v31  ;;  %5092 = vpow2.f32 %v837_v21  ;;  %v697_v62 = vmul.f32 %v5682_v40, %v589_v30  ;;  %v785_v1 = vsub.f32 0.0, %v5778_v22 }
 0x158   : > { %v5073_v44 = vpop.eup %5072  ;;  %5094 = vrcp.f32 %v858_v32  ;;  %v856_v45 = vadd.f32 1.0, %v5071_v36  ;;  %v767_v2 = vsub.f32 0.0, %v5789_v43  ;;  %v783_v7 = vsub.f32 0.0, %v5784_v29 }
 0x159   : > { %v5075_v49 = vpop.eup %5074  ;;  %5096 = vrcp.f32 %v874_v37  ;;  %v872_v52 = vadd.f32 1.0, %v5073_v44  ;;  %v713_v8 = vmul.f32 %v5682_v40, %v653_v35  ;;  %v702_v10 = vmul.f32 %v4705_v56, %v5682_v40  ;;  %v4706_v37 = vpop.f32.mrf.mxu0 }
 0x15a   : > { %v5077_v57 = vpop.eup %5076  ;;  %5098 = vrcp.f32 %v856_v45  ;;  %v861_v60 = vadd.f32 1.0, %v5075_v49  ;;  %v770_v12 = vsub.f32 0.0, %v5792_v53  ;;  %v786_v13 = vsub.f32 0.0, %v5795_v55  ;;  %v4722_v49 = vpop.f32.mrf.mxu1 }
 0x15b   : > { %5100 = vrcp.f32 %v872_v52  ;;  %v877_v0 = vadd.f32 1.0, %v5077_v57  ;;  %v718_v14 = vmul.f32 %v4721_v63, %v5682_v40  ;;  %v5807_v21 = vadd.f32 %v5687_v42, %v697_v62 }
 0x15c   : > { %5102 = vrcp.f32 %v861_v60  ;;  %v5810_v23 = vadd.f32 %v5687_v42, %v713_v8  ;;  %v5813_v27 = vadd.f32 %v5687_v42, %v702_v10  ;;  %v843_v33 = vmul.f32 1.442695, %v785_v1 }
 0x15d   : > { %v5079_v11 = vpop.eup %5078  ;;  %5104 = vrcp.f32 %v877_v0  ;;  %v5816_v30 = vadd.f32 %v5687_v42, %v718_v14  ;;  %v807_v35 = vmul.f32 1.442695, %v767_v2  ;;  %v700_v36 = vmul.f32 %v5682_v40, %v602_v16 }
 0x15e   : > { %v5081_v17 = vpop.eup %5080  ;;  %v859_v20 = vadd.f32 1.0, %v5079_v11  ;;  %5106 = vpow2.f32 %v801_v46  ;;  %v839_v45 = vmul.f32 1.442695, %v783_v7  ;;  %v813_v46 = vmul.f32 1.442695, %v770_v12 }
 0x15f   : > { %v5083_v25 = vpop.eup %5082  ;;  %v875_v26 = vadd.f32 1.0, %v5081_v17  ;;  %5108 = vpow2.f32 %v833_v48  ;;  %v768_v48 = vsub.f32 0.0, %v5807_v21  ;;  %v845_v56 = vmul.f32 1.442695, %v786_v13 }
 0x160   : > { %v5085_v31 = vpop.eup %5084  ;;  %5110 = vrcp.f32 %v859_v20  ;;  %v862_v32 = vadd.f32 1.0, %v5083_v25  ;;  %v784_v57 = vsub.f32 0.0, %v5810_v23  ;;  %v773_v60 = vsub.f32 0.0, %v5813_v27 }
 0x161   : > { %v5818_v34 = vpop.eup %5086  ;;  %5112 = vrcp.f32 %v875_v26  ;;  %v5827_v63 = vadd.f32 %v5687_v42, %v700_v36  ;;  %v716_v0 = vmul.f32 %v5682_v40, %v666_v24  ;;  %v703_v1 = vmul.f32 %v4706_v37, %v5682_v40 }
 0x162   : > { %v5089_v44 = vpop.eup %5088  ;;  %5114 = vrcp.f32 %v862_v32  ;;  %v789_v8 = vsub.f32 0.0, %v5816_v30  ;;  %v809_v11 = vmul.f32 1.442695, %v768_v48  ;;  %v841_v16 = vmul.f32 1.442695, %v784_v57  ;;  %v605_v57 = vpop.f32.mrf.mxu0 }
 0x163   : > { %v5822_v52 = vpop.eup %5090  ;;  %5116 = vpow2.f32 %v811_v61  ;;  %v719_v61 = vmul.f32 %v4722_v49, %v5682_v40  ;;  %v5836_v12 = vadd.f32 %v5687_v42, %v716_v0  ;;  %v5839_v13 = vadd.f32 %v5687_v42, %v703_v1 }
 0x164   : > { %v5093_v62 = vpop.eup %5092  ;;  %5118 = vpow2.f32 %v843_v33  ;;  %v819_v24 = vmul.f32 1.442695, %v773_v60  ;;  %v771_v25 = vsub.f32 0.0, %v5827_v63  ;;  %v851_v32 = vmul.f32 1.442695, %v789_v8 }
 0x165   : > { %v5095_v2 = vpop.eup %5094  ;;  %v878_v7 = vadd.f32 1.0, %v5093_v62  ;;  %5120 = vpow2.f32 %v807_v35  ;;  %v5842_v17 = vadd.f32 %v5687_v42, %v719_v61  ;;  %v787_v33 = vsub.f32 0.0, %v5836_v12 }
 0x166   : > { %v5833_v10 = vpop.eup %5096  ;;  %5122 = vpow2.f32 %v839_v45  ;;  %v774_v37 = vsub.f32 0.0, %v5839_v13  ;;  %v669_v45 = vpop.f32.mrf.mxu1  ;;  %v921_v49 = vmul.f32 %v5085_v31, %v5694_v50  ;;  %v815_v0 = vmul.f32 1.442695, %v771_v25 }
 0x167   : > { %v5099_v14 = vpop.eup %5098  ;;  %5124 = vrcp.f32 %v878_v7  ;;  %v847_v7 = vmul.f32 1.442695, %v787_v33  ;;  %v717_v8 = vmul.f32 %v5682_v40, %v669_v45 }
 0x168   : > { %v5844_v20 = vpop.eup %5100  ;;  %5126 = vpow2.f32 %v813_v46  ;;  %v920_v36 = vmul.f32 %v5099_v14, %v5726_v15  ;;  %v922_v46 = vmul.f32 %v5095_v2, %v5715_v4  ;;  %v821_v50 = vmul.f32 1.442695, %v774_v37  ;;  %v5045_v14 = vld [vmem:[#allocation7 + $0xf0] sm:$0xff]  }
 0x169   : > { %v5847_v26 = vpop.eup %5102  ;;  %5128 = vpow2.f32 %v845_v56  ;;  %v919_v56 = vmul.f32 %v5089_v44, %v5705_v58  ;;  %v701_v4 = vmul.f32 %v5682_v40, %v605_v57  ;;  %v790_v44 = vsub.f32 0.0, %v5842_v17 }
 0x16a   : > { %v5105_v35 = vpop.eup %5104  ;;  %5130 = vpow2.f32 %v809_v11  ;;  %v5863_v58 = vpack.c.bf16 %v922_v46, %v921_v49  ;;  %v5867_v11 = vadd.f32 %v5687_v42, %v717_v8 }
 0x16b   : > { %v5107_v48 = vpop.eup %5106  ;;  %5132 = vpow2.f32 %v841_v16  ;;  %v5861_v31 = vpack.c.bf16 %v920_v36, %v919_v56  ;;  %v5872_v33 = vadd.f32 %v5687_v42, %v701_v4  ;;  %v853_v45 = vmul.f32 1.442695, %v790_v44 }
 0x16c   : > { %v5109_v60 = vpop.eup %5108  ;;  %v860_v62 = vadd.f32 1.0, %v5107_v48  ;;  %5134 = vpow2.f32 %v819_v24  ;;  %v5047_v48 = vld [vmem:[#allocation7 + $0xe8] sm:$0xff]   ;;  %v936_v42 = vmul.f32 %v5844_v20, %v5729_v18  ;;  %v938_v18 = vmul.f32 %v5833_v10, %v5718_v5 }
 0x16d   : > { %v5855_v1 = vpop.eup %5110  ;;  %v876_v15 = vadd.f32 1.0, %v5109_v60  ;;  %5136 = vpow2.f32 %v851_v32  ;;  %4787 = vmatprep.mubr.bf16.mxu0 %v5861_v31  ;;  %v941_v60 = vmul.f32 %v5105_v35, %v5739_v28  ;;  %v937_v4 = vmul.f32 %v5818_v34, %v5697_v51 }
 0x16e   : > { %v5858_v61 = vpop.eup %5112  ;;  %5138 = vrcp.f32 %v860_v62  ;;  %4788 = vmatmul.mubr.bf16.vlgmr.msra.gmra.mxu0 %v5863_v58  ;;  %v923_v51 = vmul.f32 %v5855_v1, %v5746_v38 }
 0x16f   : > { %v5115_v2 = vpop.eup %5114  ;;  %5140 = vrcp.f32 %v876_v15  ;;  %4868 = vmatpush3.bf16.msra.mxu0 %v5691_v47 }
 0x170   : > { %v5117_v16 = vpop.eup %5116  ;;  %5142 = vpow2.f32 %v815_v0  ;;  %4869 = vmatprep.subr.bf16.mxu0 %v5045_v14  ;;  %v772_v0 = vsub.f32 0.0, %v5872_v33 }
 0x171   : > { %v5119_v24 = vpop.eup %5118  ;;  %v865_v25 = vadd.f32 1.0, %v5117_v16  ;;  %5144 = vpow2.f32 %v847_v7 }
 0x172   : > { %v5121_v40 = vpop.eup %5120  ;;  %v881_v32 = vadd.f32 1.0, %v5119_v24  ;;  %5146 = vpow2.f32 %v821_v50  ;;  %v788_v50 = vsub.f32 0.0, %v5867_v11 }
 0x173   : > { %v5123_v36 = vpop.eup %5122  ;;  %5148 = vrcp.f32 %v865_v25  ;;  %v863_v37 = vadd.f32 1.0, %v5121_v40  ;;  %4870 = vmatpush3.bf16.msra.mxu0 %v5045_v14  ;;  %v817_v25 = vmul.f32 1.442695, %v772_v0 }
 0x174   : > { %v5125_v49 = vpop.eup %5124  ;;  %5150 = vrcp.f32 %v881_v32  ;;  %v879_v46 = vadd.f32 1.0, %v5123_v36  ;;  %4871 = vmatprep.subr.bf16.mxu0 %v5047_v48  ;;  %v5892_v32 = vpack.c.bf16 %v938_v18, %v937_v4 }
 0x175   : > { %v5127_v57 = vpop.eup %5126  ;;  %v942_v56 = vmul.f32 %v5125_v49, %v5760_v54  ;;  %5152 = vrcp.f32 %v863_v37  ;;  %v935_v54 = vmul.f32 %v5822_v52, %v5708_v59  ;;  %v926_v59 = vmul.f32 %v5115_v2, %v5752_v41 }
 0x176   : > { %v5129_v62 = vpop.eup %5128  ;;  %5154 = vrcp.f32 %v879_v46  ;;  %v866_v47 = vadd.f32 1.0, %v5127_v57  ;;  %v849_v52 = vmul.f32 1.442695, %v788_v50  ;;  %v925_v37 = vmul.f32 %v5847_v26, %v5732_v19 }
 0x177   : > { %v5131_v15 = vpop.eup %5130  ;;  %v5880_v7 = vpack.c.bf16 %v942_v56, %v941_v60  ;;  %v882_v8 = vadd.f32 1.0, %v5129_v62  ;;  %5156 = vpow2.f32 %v853_v45  ;;  %v5889_v16 = vpack.c.bf16 %v936_v42, %v935_v54  ;;  %4872 = vmatpush3.bf16.msra.mxu0 %v5047_v48 }
 0x178   : > { %v5133_v28 = vpop.eup %5132  ;;  %5158 = vrcp.f32 %v866_v47  ;;  %v864_v20 = vadd.f32 1.0, %v5131_v15  ;;  %v939_v45 = vmul.f32 %v5858_v61, %v5749_v39  ;;  %v5906_v1 = vpack.c.bf16 %v926_v59, %v925_v37  ;;  %v5049_v15 = vld [vmem:[#allocation7 + $0xe0] sm:$0xff]  }
 0x179   : > { %v5135_v35 = vpop.eup %5134  ;;  %5160 = vrcp.f32 %v882_v8  ;;  %v880_v44 = vadd.f32 1.0, %v5133_v28  ;;  %v991_v48 = vmax.bf16 %v5892_v32, %v5889_v16  ;;  %v983_v61 = vmax.bf16 %v5863_v58, %v5861_v31  ;;  %4873 = vmatprep.subr.bf16.mxu0 %v5049_v15 }
 0x17a   : > { %v5137_v14 = vpop.eup %5136  ;;  %5162 = vrcp.f32 %v864_v20  ;;  %v869_v24 = vadd.f32 1.0, %v5135_v35 }
 0x17b   : > { %v5139_v40 = vpop.eup %5138  ;;  %5164 = vrcp.f32 %v880_v44  ;;  %v885_v5 = vadd.f32 1.0, %v5137_v14  ;;  %4874 = vmatpush3.bf16.msra.mxu0 %v5049_v15 }
 0x17c   : > { %v5141_v10 = vpop.eup %5140  ;;  %v924_v34 = vmul.f32 %v5139_v40, %v5767_v3  ;;  %5166 = vrcp.f32 %v869_v24 }
 0x17d   : > { %v5143_v36 = vpop.eup %5142  ;;  %v940_v41 = vmul.f32 %v5141_v10, %v5770_v6  ;;  %5168 = vrcp.f32 %v885_v5 }
 0x17e   : > { %v5145_v2 = vpop.eup %5144  ;;  %v5904_v49 = vpack.c.bf16 %v924_v34, %v923_v51  ;;  %v867_v38 = vadd.f32 1.0, %v5143_v36  ;;  %5170 = vpow2.f32 %v817_v25 }
 0x17f   : > { %v5147_v3 = vpop.eup %5146  ;;  %v5908_v46 = vpack.c.bf16 %v940_v41, %v939_v45  ;;  %v883_v19 = vadd.f32 1.0, %v5145_v2  ;;  %5172 = vpow2.f32 %v849_v52 }
 0x180   : > { %v5149_v26 = vpop.eup %5148  ;;  %v984_v39 = vmax.bf16 %v5904_v49, %v5863_v58  ;;  %5174 = vrcp.f32 %v867_v38  ;;  %v870_v6 = vadd.f32 1.0, %v5147_v3  ;;  %4791 = vmatprep.mubr.bf16.mxu0 %v5904_v49  ;;  %v997_v42 = vmax.bf16 %v983_v61, %v5904_v49 }
 0x181   : > { %v5151_v57 = vpop.eup %5150  ;;  %v992_v60 = vmax.bf16 %v5908_v46, %v5892_v32  ;;  %v5918_v56 = vmax.bf16 %v991_v48, %v5908_v46  ;;  %4792 = vmatmul.mubr.bf16.gmra.mxu0 %v5906_v1  ;;  %5176 = vrcp.f32 %v883_v19  ;;  %v985_v31 = vmax.bf16 %v5906_v1, %v5904_v49 }
 0x182   : > { %v5153_v62 = vpop.eup %5152  ;;  %v993_v58 = vmax.bf16 %v5880_v7, %v5908_v46  ;;  %v929_v0 = vmul.f32 %v5149_v26, %v5773_v9  ;;  %5178 = vrcp.f32 %v870_v6  ;;  %v998_v50 = vmax.bf16 %v984_v39, %v5906_v1 }
 0x183   : > { %v5155_v47 = vpop.eup %5154  ;;  %v945_v28 = vmul.f32 %v5151_v57, %v5778_v22  ;;  %v5930_v54 = vmax.bf16 %v997_v42, %v5906_v1  ;;  %v1052_v18 = vrot.slane %v997_v42, 7  ;;  %v927_v35 = vmul.f32 %v5153_v62, %v5789_v43 }
 0x184   : > { %v5157_v8 = vpop.eup %5156  ;;  %v1006_v4 = vmax.bf16 %v992_v60, %v5880_v7  ;;  %v1019_v44 = vmax.bf16 %v5918_v56, %v5880_v7  ;;  %v943_v24 = vmul.f32 %v5155_v47, %v5784_v29 }
 0x185   : > { %v5159_v20 = vpop.eup %5158  ;;  %v886_v9 = vadd.f32 1.0, %v5157_v8  ;;  %v1053_v22 = vrot.slane %v5930_v54, 7  ;;  %v5940_v40 = vsel %vm1068_vm0, 4286644096, %v1052_v18  ;;  %v5944_v5 = vsel %vm1068_vm0, %v1052_v18, 4286644096 }
 0x186   : > { %v5161_v14 = vpop.eup %5160  ;;  %v930_v25 = vmul.f32 %v5159_v20, %v5792_v53  ;;  %v1135_v52 = vshrl.u32 %v5940_v40, 16  ;;  %v1137_v34 = vshll.u32 %v5940_v40, 16 }
 0x187   : > { %v5163_v59 = vpop.eup %5162  ;;  %v946_v43 = vmul.f32 %v5161_v14, %v5795_v55  ;;  %5180 = vrcp.f32 %v886_v9  ;;  %v5949_v53 = vsel %vm1068_vm0, 4286644096, %v1053_v22  ;;  %v5952_v51 = vsel %vm1068_vm0, %v1053_v22, 4286644096 }
 0x188   : > { %v5165_v10 = vpop.eup %5164  ;;  %v928_v29 = vmul.f32 %v5163_v59, %v5807_v21  ;;  %v5955_v37 = vpack.c.bf16 %v930_v25, %v929_v0  ;;  %v8029_v41 = vshll.u32 %v5949_v53, 16  ;;  %v8030_v49 = vshrl.u32 %v5949_v53, 16 }
 0x189   : > { %v5167_v36 = vpop.eup %5166  ;;  %v5957_v55 = vpack.c.bf16 %v946_v43, %v945_v28  ;;  %v944_v45 = vmul.f32 %v5165_v10, %v5810_v23  ;;  %v8028_v38 = vshll.u32 %v5952_v51, 16  ;;  %v1364_v39 = vrot.slane %v5952_v51, 1 }
 0x18a   : > { %v5169_v2 = vpop.eup %5168  ;;  %v5961_v48 = vpack.c.bf16 %v928_v29, %v927_v35  ;;  %v933_v21 = vmul.f32 %v5167_v36, %v5813_v27  ;;  %v5973_v23 = vrot.slane %v8029_v41, 1  ;;  %v1453_v15 = vshrl.u32 %v5952_v51, 16 }
 0x18b   : > { %8099 = vst [vmem:[#allocation12_spill] sm:$0xff] %v5957_v55  ;;  %v5171_v3 = vpop.eup %5170  ;;  %v5966_v19 = vpack.c.bf16 %v944_v45, %v943_v24  ;;  %v5969_v26 = vmul.f32 %v5169_v2, %v5816_v30 }
 0x18c   : > { %v5173_v6 = vpop.eup %5172  ;;  %v986_v27 = vmax.bf16 %v5961_v48, %v5906_v1  ;;  %v987_v61 = vmax.bf16 %v5955_v37, %v5961_v48  ;;  %v5981_v57 = vmax.bf16 %v985_v31, %v5961_v48  ;;  %v1012_v60 = vmax.bf16 %v998_v50, %v5961_v48  ;;  %4795 = vmatprep.mubr.bf16.mxu0 %v5961_v48 }
 0x18d   : > { %v5175_v30 = vpop.eup %5174  ;;  %v1020_v56 = vmax.bf16 %v1006_v4, %v5966_v19  ;;  %v5987_v62 = vmax.bf16 %v1019_v44, %v5966_v19  ;;  %v868_v42 = vadd.f32 1.0, %v5171_v3  ;;  %v884_v47 = vadd.f32 1.0, %v5173_v6  ;;  %4796 = vmatmul.mubr.bf16.gmra.mxu0 %v5955_v37 }
 0x18e   : > { %v1025_v1 = vmax.bf16 %v1012_v60, %v5955_v37  ;;  %v5992_v0 = vmul.f32 %v5175_v30, %v5827_v63  ;;  %v5995_v31 = vmax.bf16 %v986_v27, %v5955_v37  ;;  %v5177_v8 = vpop.eup %5176  ;;  %v994_v18 = vmax.bf16 %v5966_v19, %v5880_v7 }
 0x18f   : > { %v5999_v50 = vmax.bf16 %v1020_v56, %v5957_v55  ;;  %v8027_v28 = vrot.slane %v5987_v62, 7  ;;  %5182 = vrcp.f32 %v868_v42  ;;  %v5179_v20 = vpop.eup %5178  ;;  %v1013_v63 = vmax.bf16 %v5981_v57, %v5955_v37 }
 0x190   : > { %v1055_v35 = vrot.slane %v1025_v1, 7  ;;  %5184 = vrcp.f32 %v884_v47  ;;  %v995_v4 = vmax.bf16 %v5957_v55, %v5966_v19  ;;  %v6015_v14 = vmul.f32 %v5177_v8, %v5836_v12 }
 0x191   : > { %v8026_v44 = vrot.slane %v5999_v50, 7  ;;  %v6012_v9 = vsel %vm1068_vm0, 4286644096, %v8027_v28  ;;  %v934_v24 = vmul.f32 %v5179_v20, %v5839_v13  ;;  %v6028_v59 = vmax.bf16 %v993_v58, %v5966_v19 }
 0x192   : > { %v6019_v25 = vsel %vm1068_vm0, 4286644096, %v1055_v35  ;;  %v6022_v22 = vsel %vm1068_vm0, %v1055_v35, 4286644096  ;;  %v6031_v43 = vmax.bf16 %v994_v18, %v5957_v55  ;;  %v1024_v29 = vmax.bf16 %v5930_v54, %v5961_v48 }
 0x193   : > { %v1165_v12 = vshrl.u32 %v6019_v25, 16  ;;  %v1167_v10 = vshll.u32 %v6019_v25, 16  ;;  %v1171_v13 = vshll.u32 %v6022_v22, 16  ;;  %v1471_v58 = vshrl.u32 %v6022_v22, 16 }
 0x194   : > { %v5181_v36 = vpop.eup %5180  ;;  %v6051_v47 = vpack.c.bf16 %v934_v24, %v933_v21  ;;  %v1021_v18 = vmax.bf16 %v6028_v59, %v5957_v55  ;;  %v1054_v20 = vrot.slane %v1024_v29, 7  ;;  %v1153_v21 = vrot.slane %v8028_v38, 1  ;;  %v5051_v24 = vld [vmem:[#allocation7 + $0xd8] sm:$0xff]  }
 0x195   : > { %v1169_v6 = vrot.slane %v1167_v10, 1  ;;  %v1173_v27 = vrot.slane %v1171_v13, 1  ;;  %v6042_v60 = vrot.slane %v1165_v12, 1  ;;  %v6045_v56 = vrot.slane %v1167_v10, 2  ;;  %4875 = vmatprep.subr.bf16.mxu0 %v5051_v24 }
 0x196   : > { %v6047_v42 = vrot.slane %v1471_v58, 1  ;;  %v6049_v54 = vrot.slane %v1171_v13, 2  ;;  %v950_v8 = vmul.f32 %v5181_v36, %v5842_v17  ;;  %v6061_v10 = vsel %vm1068_vm0, 4286644096, %v8026_v44  ;;  %4876 = vmatpush3.bf16.msra.mxu0 %v5051_v24 }
 0x197   : > { %v1170_v1 = vor.u32 %v1169_v6, %v1165_v12  ;;  %v990_v13 = vmax.bf16 %v5889_v16, %v6051_v47  ;;  %v6074_v12 = vsel %vm1068_vm0, %v1054_v20, 4286644096  ;;  %v6076_v29 = vrot.slane %v1453_v15, 1 }
 0x198   : > { %v6071_v59 = vpack.c.bf16 %v950_v8, %v5969_v26  ;;  %v6084_v6 = vsel %vm1068_vm0, 4286644096, %v1054_v20  ;;  %v1141_v26 = vshll.u32 %v5944_v5, 16  ;;  %v1150_v15 = vor.u32 %v5973_v23, %v8030_v49 }
 0x199   : > { %v6068_v17 = vsel %vm1134_vm1, %v1170_v1, %v1173_v27  ;;  %v6081_v58 = vmax.bf16 %v990_v13, %v5892_v32  ;;  %v1139_v27 = vrot.slane %v1137_v34, 1  ;;  %v1360_v1 = vrot.slane %v5940_v40, 1 }
 0x19a   : > { %8100 = vst [vmem:[#allocation13_spill] sm:$0xff] %v6071_v59  ;;  %v1361_v8 = vrot.slane %v5944_v5, 1  ;;  %v1363_v3 = vrot.slane %v5949_v53, 1  ;;  %v1143_v23 = vrot.slane %v1141_v26, 1  ;;  %v1154_v36 = vsel %vm1134_vm1, %v1150_v15, %v1153_v21 }
 0x19b   : > { %v1140_v28 = vor.u32 %v1139_v27, %v1135_v52  ;;  %v6104_v24 = vrot.slane %v1135_v52, 1  ;;  %v1312_v20 = vmax.bf16 %v1154_v36, %v5949_v53  ;;  %v6120_v52 = vrot.slane %v1137_v34, 2 }
 0x19c   : > { %v5183_v13 = vpop.eup %5182  ;;  %v6109_v44 = vsel %vm1359_vm2, %v1360_v1, %v1361_v8  ;;  %v1365_v27 = vsel %vm1359_vm2, %v1363_v3, %v1364_v39  ;;  %v6130_v39 = vrot.slane %v1141_v26, 2 }
 0x19d   : > { %v5185_v30 = vpop.eup %5184  ;;  %v932_v35 = vmul.f32 %v5183_v13, %v5872_v33  ;;  %v6116_v13 = vsel %vm1134_vm1, %v1140_v28, %v1143_v23  ;;  %v6128_v36 = vmax.bf16 %v1365_v27, %v1312_v20 }
 0x19e   : > { %v948_v45 = vmul.f32 %v5185_v30, %v5867_v11 }
 0x19f   : > { %v957_v33 = vpack.c.bf16 %v932_v35, %v5992_v0 }
 0x1a0   : > { %v6124_v30 = vpack.c.bf16 %v948_v45, %v6015_v14 }
 0x1a1   : > { %v988_v0 = vmax.bf16 %v957_v33, %v5955_v37  ;;  %v989_v28 = vmax.bf16 %v6051_v47, %v957_v33  ;;  %v1001_v34 = vmax.bf16 %v987_v61, %v957_v33  ;;  %v1014_v3 = vmax.bf16 %v5995_v31, %v957_v33  ;;  %4799 = vmatprep.mubr.bf16.mxu0 %v957_v33 }
 0x1a2   : > { %8101 = vst [vmem:[#allocation14_spill] sm:$0xff] %v6124_v30  ;;  %v1026_v14 = vmax.bf16 %v1013_v63, %v957_v33  ;;  %v1009_v35 = vmax.bf16 %v995_v4, %v6124_v30  ;;  %v1022_v26 = vmax.bf16 %v6031_v43, %v6124_v30  ;;  %4800 = vmatmul.mubr.bf16.gmra.mxu0 %v6051_v47 }
 0x1a3   : > { %v6151_v48 = vmax.bf16 %v988_v0, %v6051_v47  ;;  %v6154_v61 = vmax.bf16 %v989_v28, %v5889_v16  ;;  %v1015_v37 = vmax.bf16 %v1001_v34, %v6051_v47  ;;  %v6158_v57 = vmax.bf16 %v1014_v3, %v6051_v47  ;;  %4803 = vmatprep.mubr.bf16.mxu0 %v5889_v16  ;;  %v5053_v3 = vld [vmem:[#allocation7 + $0xd0] sm:$0xff]  }
 0x1a4   : > { %v1056_v31 = vrot.slane %v1026_v14, 7  ;;  %v1034_v63 = vmax.bf16 %v1021_v18, %v6124_v30  ;;  %v1035_v4 = vmax.bf16 %v1022_v26, %v6071_v59  ;;  %v1023_v8 = vmax.bf16 %v1009_v35, %v6071_v59  ;;  %4877 = vmatprep.subr.bf16.mxu0 %v5053_v3 }
 0x1a5   : > { %v8031_v47 = vrot.slane %v6158_v57, 7  ;;  %v6172_v20 = vmax.bf16 %v1015_v37, %v5889_v16  ;;  %4878 = vmatpush3.bf16.msra.mxu0 %v5053_v3 }
 0x1a6   : > { %v1083_v18 = vsel %vm1068_vm0, 4286644096, %v1056_v31  ;;  %v1122_v23 = vsel %vm1068_vm0, %v1056_v31, 4286644096  ;;  %v1064_v27 = vrot.slane %v1034_v63, 7  ;;  %v1065_v34 = vrot.slane %v1035_v4, 7 }
 0x1a7   : > { %v1175_v33 = vshrl.u32 %v1083_v18, 16  ;;  %v1177_v0 = vshll.u32 %v1083_v18, 16  ;;  %v1181_v28 = vshll.u32 %v1122_v23, 16  ;;  %v1372_v14 = vrot.slane %v1083_v18, 1 }
 0x1a8   : > { %v1373_v26 = vrot.slane %v1122_v23, 1  ;;  %v1480_v45 = vshrl.u32 %v1122_v23, 16  ;;  %v1630_v1 = vrot.slane %v1083_v18, 2  ;;  %v6179_v35 = vsel %vm1068_vm0, 4286644096, %v8031_v47 }
 0x1a9   : > { %v1179_v37 = vrot.slane %v1177_v0, 1  ;;  %v1477_v15 = vrot.slane %v1175_v33, 1  ;;  %v1478_v2 = vrot.slane %v1177_v0, 2  ;;  %v1183_v31 = vrot.slane %v1181_v28, 1 }
 0x1aa   : > { %v1482_v63 = vrot.slane %v1480_v45, 1  ;;  %v1483_v43 = vrot.slane %v1181_v28, 2  ;;  %v1631_v38 = vrot.slane %v1122_v23, 2  ;;  %4804 = vmatmul.mubr.bf16.gmra.mxu0 %v5892_v32  ;;  %v6182_v49 = vrot.slane %v1023_v8, 7 }
 0x1ab   : > { %v1180_v4 = vor.u32 %v1179_v37, %v1175_v33  ;;  %v1479_v41 = vor.u32 %v1478_v2, %v1477_v15  ;;  %v6185_v11 = vsel %vm1068_vm0, 4286644096, %v1064_v27  ;;  %4807 = vmatprep.mubr.bf16.mxu0 %v5908_v46  ;;  %v1374_v47 = vsel %vm1359_vm2, %v1372_v14, %v1373_v26 }
 0x1ac   : > { %v1484_v0 = vor.u32 %v1483_v43, %v1482_v63  ;;  %v6190_v21 = vsel %vm1617_vm3, %v1630_v1, %v1631_v38  ;;  %v6193_v45 = vsel %vm1068_vm0, %v1064_v27, 4286644096  ;;  %v6197_v2 = vsel %vm1068_vm0, 4286644096, %v1065_v34 }
 0x1ad   : > { %v1184_v23 = vsel %vm1134_vm1, %v1180_v4, %v1183_v31  ;;  %v6201_v15 = vsel %vm1068_vm0, 4286644096, %v6182_v49  ;;  %v6204_v8 = vsel %vm1068_vm0, %v1065_v34, 4286644096  ;;  %v8033_v38 = vshll.u32 %v6185_v11, 16 }
 0x1ae   : > { %v1315_v33 = vmax.bf16 %v1184_v23, %v1083_v18  ;;  %v8032_v1 = vshll.u32 %v6193_v45, 16  ;;  %v6210_v27 = vsel %vm1440_vm4, %v1479_v41, %v1484_v0  ;;  %v1552_v14 = vshrl.u32 %v6193_v45, 16 }
 0x1af   : > { %v6219_v18 = vrot.slane %v8033_v38, 1  ;;  %v8102_v34 = vmax.bf16 %v6116_v13, %v5940_v40  ;;  %v8103_v41 = vshrl.u32 %v5944_v5, 16  ;;  %v8104_v4 = vshrl.u32 %v5949_v53, 16 }
 0x1b0   : > { %v6215_v26 = vmax.bf16 %v1374_v47, %v1315_v33  ;;  %v6229_v63 = vrot.slane %v8032_v1, 1  ;;  %v8105_v0 = vshll.u32 %v5949_v53, 16  ;;  %v8106_v33 = vshll.u32 %v5952_v51, 16 }
 0x1b1   : > { %v1424_v37 = vmax.bf16 %v6109_v44, %v8102_v34  ;;  %v1446_v31 = vrot.slane %v8103_v41, 1  ;;  %v1450_v47 = vrot.slane %v8104_v4, 1  ;;  %v6237_v3 = vrot.slane %v1552_v14, 1 }
 0x1b2   : > { %v1451_v23 = vrot.slane %v8105_v0, 2  ;;  %v1456_v28 = vrot.slane %v8106_v33, 2  ;;  %v1618_v13 = vrot.slane %v5940_v40, 2  ;;  %v1619_v34 = vrot.slane %v5944_v5, 2  ;;  %4808 = vmatmul.mubr.bf16.gmra.mxu0 %v5880_v7  ;;  %v5055_v33 = vld [vmem:[#allocation7 + $0xc8] sm:$0xff]  }
 0x1b3   : > { %v1448_v44 = vor.u32 %v6130_v39, %v1446_v31  ;;  %v1621_v4 = vrot.slane %v5949_v53, 2  ;;  %v1622_v0 = vrot.slane %v5952_v51, 2  ;;  %4811 = vmatprep.mubr.bf16.mxu0 %v5966_v19  ;;  %v1605_v14 = vmax.bf16 %v6210_v27, %v6215_v26  ;;  %4879 = vmatprep.subr.bf16.mxu0 %v5055_v33 }
 0x1b4   : > { %v1452_v41 = vor.u32 %v1451_v23, %v1450_v47  ;;  %v1457_v1 = vor.u32 %v1456_v28, %v6076_v29  ;;  %v8107_v40 = vor.u32 %v6120_v52, %v6104_v24  ;;  %v1155_v39 = vshrl.u32 %v6084_v6, 16  ;;  %4880 = vmatpush3.bf16.msra.mxu0 %v5055_v33  ;;  %v5044_v33 = vld [vmem:[#allocation7 + $0xb0] sm:$0xff]  }
 0x1b5   : > { %v1157_v31 = vshll.u32 %v6084_v6, 16  ;;  %v1620_v51 = vsel %vm1617_vm3, %v1618_v13, %v1619_v34  ;;  %v1623_v19 = vsel %vm1617_vm3, %v1621_v4, %v1622_v0  ;;  %v1366_v26 = vrot.slane %v6084_v6, 1 }
 0x1b6   : > { %v1449_v5 = vsel %vm1440_vm4, %v8107_v40, %v1448_v44  ;;  %v1458_v29 = vsel %vm1440_vm4, %v1452_v41, %v1457_v1  ;;  %v1367_v24 = vrot.slane %v6074_v12, 1  ;;  %v8108_v47 = vrot.slane %v6022_v22, 1 }
 0x1b7   : > { %v1601_v53 = vmax.bf16 %v1449_v5, %v1424_v37  ;;  %v1602_v28 = vmax.bf16 %v1458_v29, %v6128_v36  ;;  %v1159_v27 = vrot.slane %v1157_v31, 1  ;;  %v8109_v1 = vrot.slane %v6019_v25, 1 }
 0x1b8   : > { %v1459_v23 = vrot.slane %v1155_v39, 1  ;;  %v1460_v44 = vrot.slane %v1157_v31, 2  ;;  %v8110_v36 = vshll.u32 %v6074_v12, 16  ;;  %v8111_v4 = vmax.bf16 %v6068_v17, %v6019_v25 }
 0x1b9   : > { %v6261_v52 = vmax.bf16 %v1620_v51, %v1601_v53  ;;  %v1371_v37 = vsel %vm1359_vm2, %v8109_v1, %v8108_v47  ;;  %v6268_v13 = vmax.bf16 %v1623_v19, %v1602_v28  ;;  %v1160_v34 = vor.u32 %v1159_v27, %v1155_v39  ;;  %v5314_v28 = vld [vmem:[#allocation7 + $0xb8] sm:$0xff]  }
 0x1ba   : > { %v1163_v41 = vrot.slane %v8110_v36, 1  ;;  %v1427_v0 = vmax.bf16 %v1371_v37, %v8111_v4  ;;  %v1368_v40 = vsel %vm1359_vm2, %v1366_v26, %v1367_v24  ;;  %v1462_v5 = vshrl.u32 %v6074_v12, 16  ;;  %4812 = vmatmul.mubr.bf16.gmra.mxu0 %v5957_v55 }
 0x1bb   : > { %4739 = vmatprep.mubr.bf16.mxu1 %v6261_v52  ;;  %v8112_v29 = vmov %v8110_v36  ;;  %v1470_v39 = vor.u32 %v6045_v56, %v6042_v60  ;;  %v2133_v53 = vmax.bf16 %v6268_v13, %v6261_v52  ;;  %v1624_v51 = vrot.slane %v6084_v6, 2  ;;  %4815 = vmatprep.mubr.bf16.mxu0 %v6124_v30 }
 0x1bc   : > { %v1465_v31 = vrot.slane %v8112_v29, 2  ;;  %4740 = vmatmul.mubr.bf16.vlgmr.msra.gmra.mxu1 %v6268_v13  ;;  %v1164_v17 = vsel %vm1134_vm1, %v1160_v34, %v1163_v41  ;;  %v1625_v19 = vrot.slane %v6074_v12, 2  ;;  %v1461_v26 = vor.u32 %v1460_v44, %v1459_v23 }
 0x1bd   : > { %4820 = vmatpush3.bf16.msra.mxu1 %v5314_v28  ;;  %v1313_v27 = vmax.bf16 %v1164_v17, %v6084_v6  ;;  %v1464_v24 = vrot.slane %v1462_v5, 1  ;;  %v8113_v60 = vor.u32 %v6049_v54, %v6047_v42  ;;  %v8114_v12 = vrot.slane %v6022_v22, 2  ;;  %v5046_v6 = vld [vmem:[#allocation7 + $0xa8] sm:$0xff]   ;;  %v5048_v28 = vld [vmem:[#allocation7 + $0xa0] sm:$0xff]  }
 0x1be   : > { %v1626_v47 = vsel %vm1617_vm3, %v1624_v51, %v1625_v19  ;;  %v8115_v1 = vrot.slane %v6019_v25, 2  ;;  %4821 = vmatprep.subr.bf16.mxu1 %v5044_v33  ;;  %v8116_v23 = vrot.slane %v6158_v57, 7  ;;  %v1185_v34 = vshrl.u32 %v6179_v35, 16 }
 0x1bf   : > { %v1476_v56 = vsel %vm1440_vm4, %v1470_v39, %v8113_v60  ;;  %v1426_v42 = vmax.bf16 %v1368_v40, %v1313_v27  ;;  %v1466_v54 = vor.u32 %v1465_v31, %v1464_v24  ;;  %v1187_v36 = vshll.u32 %v6179_v35, 16 }
 0x1c0   : > { %v1604_v52 = vmax.bf16 %v1476_v56, %v1427_v0  ;;  %v1629_v37 = vsel %vm1617_vm3, %v8115_v1, %v8114_v12  ;;  %v1123_v44 = vsel %vm1068_vm0, %v8116_v23, 4286644096  ;;  %v6307_v41 = vmax.bf16 %v6190_v21, %v1605_v14 }
 0x1c1   : > { %v1191_v22 = vshll.u32 %v1123_v44, 16  ;;  %v1375_v25 = vrot.slane %v6179_v35, 1  ;;  %v1376_v4 = vrot.slane %v1123_v44, 1  ;;  %v1467_v0 = vsel %vm1440_vm4, %v1461_v26, %v1466_v54  ;;  %4822 = vmatpush3.bf16.msra.mxu1 %v5044_v33  ;;  %v5050_v54 = vld [vmem:[#allocation7 + $0x98] sm:$0xff]  }
 0x1c2   : > { %v1189_v5 = vrot.slane %v1187_v36, 1  ;;  %v1486_v57 = vrot.slane %v1185_v34, 1  ;;  %v1487_v29 = vrot.slane %v1187_v36, 2  ;;  %v1603_v39 = vmax.bf16 %v1467_v0, %v1426_v42  ;;  %4823 = vmatprep.subr.bf16.mxu1 %v5046_v6  ;;  %4816 = vmatmul.mubr.bf16.gmra.mxu0 %v6071_v59 }
 0x1c3   : > { %v6311_v40 = vmax.bf16 %v1629_v37, %v1604_v52  ;;  %v1193_v31 = vrot.slane %v1191_v22, 1  ;;  %v1489_v17 = vshrl.u32 %v1123_v44, 16  ;;  %v1377_v21 = vsel %vm1359_vm2, %v1375_v25, %v1376_v4 }
 0x1c4   : > { %v1190_v51 = vor.u32 %v1189_v5, %v1185_v34  ;;  %v1492_v14 = vrot.slane %v1191_v22, 2  ;;  %v1633_v19 = vrot.slane %v6179_v35, 2  ;;  %v1684_v27 = vmax.bf16 %v1626_v47, %v1603_v39  ;;  %v5056_v47 = vld [vmem:[#allocation7 + $0xc0] sm:$0xff]  }
 0x1c5   : > { %v1491_v24 = vrot.slane %v1489_v17, 1  ;;  %v1634_v26 = vrot.slane %v1123_v44, 2  ;;  %v1488_v56 = vor.u32 %v1487_v29, %v1486_v57  ;;  %4824 = vmatpush3.bf16.msra.mxu1 %v5046_v6  ;;  %v1058_v52 = vrot.slane %v6172_v20, 7  ;;  %4881 = vmatprep.subr.bf16.mxu0 %v5056_v47  ;;  %v5052_v29 = vld [vmem:[#allocation7 + $0x90] sm:$0xff]  }
 0x1c6   : > { %v1194_v60 = vsel %vm1134_vm1, %v1190_v51, %v1193_v31  ;;  %v8117_v12 = vmax.bf16 %v6151_v48, %v5889_v16  ;;  %4743 = vmatprep.mubr.bf16.mxu1 %v1684_v27  ;;  %v2134_v37 = vmax.bf16 %v1684_v27, %v6268_v13  ;;  %v2135_v23 = vmax.bf16 %v6311_v40, %v1684_v27 }
 0x1c7   : > { %v2147_v44 = vmax.bf16 %v2133_v53, %v1684_v27  ;;  %v1316_v42 = vmax.bf16 %v1194_v60, %v6179_v35  ;;  %4744 = vmatmul.mubr.bf16.gmra.mxu1 %v6311_v40  ;;  %v1493_v6 = vor.u32 %v1492_v14, %v1491_v24  ;;  %v6331_v20 = vsel %vm1617_vm3, %v1633_v19, %v1634_v26 }
 0x1c8   : > { %v6324_v1 = vmax.bf16 %v8117_v12, %v5892_v32  ;;  %v6334_v16 = vsel %vm1068_vm0, 4286644096, %v1058_v52  ;;  %4825 = vmatprep.subr.bf16.mxu1 %v5048_v28  ;;  %v8118_v48 = vmax.bf16 %v6154_v61, %v5892_v32  ;;  %v6343_v53 = vmax.bf16 %v2134_v37, %v6311_v40  ;;  %4747 = vmatprep.mubr.bf16.mxu1 %v6307_v41 }
 0x1c9   : > { %v6346_v35 = vmax.bf16 %v2135_v23, %v6307_v41  ;;  %v2161_v34 = vmax.bf16 %v2147_v44, %v6311_v40  ;;  %v2202_v36 = vrot.slane %v2147_v44, 7  ;;  %v6350_v22 = vmax.bf16 %v1377_v21, %v1316_v42  ;;  %4826 = vmatpush3.bf16.msra.mxu1 %v5048_v28  ;;  %4882 = vmatpush3.bf16.msra.mxu0 %v5056_v47 }
 0x1ca   : > { %v6340_v13 = vmax.bf16 %v8118_v48, %v5908_v46  ;;  %v6353_v25 = vsel %vm1440_vm4, %v1488_v56, %v1493_v6  ;;  %v6356_v32 = vsel %vm1068_vm0, %v1058_v52, 4286644096  ;;  %v1195_v61 = vshrl.u32 %v6334_v16, 16  ;;  %4827 = vmatprep.subr.bf16.mxu1 %v5050_v54  ;;  %v5054_v56 = vld [vmem:[#allocation7 + $0x88] sm:$0xff]  }
 0x1cb   : > { %v2174_v0 = vmax.bf16 %v2161_v34, %v6307_v41  ;;  %v2203_v5 = vrot.slane %v2161_v34, 7  ;;  %v6363_v57 = vsel %vm1068_vm0, 4286644096, %v2202_v36  ;;  %v6366_v39 = vsel %vm1068_vm0, %v2202_v36, 4286644096 }
 0x1cc   : > { %v2282_v31 = vshrl.u32 %v6363_v57, 16  ;;  %v2284_v17 = vshll.u32 %v6363_v57, 16  ;;  %v1197_v51 = vshll.u32 %v6334_v16, 16  ;;  %v2288_v28 = vshll.u32 %v6366_v39, 16 }
 0x1cd   : > { %v2204_v21 = vrot.slane %v2174_v0, 7  ;;  %v6372_v14 = vsel %vm1068_vm0, 4286644096, %v2203_v5  ;;  %v6375_v19 = vsel %vm1068_vm0, %v2203_v5, 4286644096  ;;  %4828 = vmatpush3.bf16.msra.mxu1 %v5050_v54  ;;  %v1636_v30 = vrot.slane %v6334_v16, 2 }
 0x1ce   : > { %v2286_v27 = vrot.slane %v2284_v17, 1  ;;  %v2294_v24 = vshll.u32 %v6372_v14, 16  ;;  %v2298_v26 = vshll.u32 %v6375_v19, 16  ;;  %v2290_v47 = vrot.slane %v2288_v28, 1  ;;  %4829 = vmatprep.subr.bf16.mxu1 %v5052_v29 }
 0x1cf   : > { %v6382_v52 = vsel %vm1068_vm0, 4286644096, %v2204_v21  ;;  %v6385_v12 = vsel %vm1068_vm0, %v2204_v21, 4286644096  ;;  %v2292_v37 = vshrl.u32 %v6372_v14, 16  ;;  %v6404_v36 = vrot.slane %v2282_v31, 1 }
 0x1d0   : > { %v2287_v23 = vor.u32 %v2286_v27, %v2282_v31  ;;  %v2296_v44 = vrot.slane %v2294_v24, 1  ;;  %v2300_v42 = vrot.slane %v2298_v26, 1  ;;  %v2302_v48 = vshrl.u32 %v6382_v52, 16 }
 0x1d1   : > { %v2304_v54 = vshll.u32 %v6382_v52, 16  ;;  %v2308_v34 = vshll.u32 %v6385_v12, 16  ;;  %4830 = vmatpush3.bf16.msra.mxu1 %v5052_v29  ;;  %v6411_v27 = vrot.slane %v2284_v17, 2  ;;  %v6413_v21 = vrot.slane %v2292_v37, 1 }
 0x1d2   : > { %v6394_v0 = vsel %vm1134_vm1, %v2287_v23, %v2290_v47  ;;  %v2297_v5 = vor.u32 %v2296_v44, %v2292_v37  ;;  %4831 = vmatprep.subr.bf16.mxu1 %v5054_v56  ;;  %v2589_v47 = vshrl.u32 %v6366_v39, 16  ;;  %v6407_v23 = vrot.slane %v2288_v28, 2 }
 0x1d3   : > { %v2306_v60 = vrot.slane %v2304_v54, 1  ;;  %v2310_v38 = vrot.slane %v2308_v34, 1  ;;  %v2598_v43 = vshrl.u32 %v6375_v19, 16  ;;  %v6420_v31 = vrot.slane %v2302_v48, 1 }
 0x1d4   : > { %v6402_v4 = vsel %vm1134_vm1, %v2297_v5, %v2300_v42  ;;  %8119 = vst [vmem:[#allocation15_spill] sm:$0xff] %v6407_v23  ;;  %v6415_v6 = vrot.slane %v2589_v47, 1  ;;  %v6418_v42 = vrot.slane %v2298_v26, 2  ;;  %v6427_v5 = vrot.slane %v2304_v54, 2  ;;  %v5057_v54 = vld [vmem:[#allocation7 + $0x80] sm:$0xff]  }
 0x1d5   : > { %v2307_v44 = vor.u32 %v2306_v60, %v2302_v48  ;;  %4832 = vmatpush3.bf16.msra.mxu1 %v5054_v56  ;;  %v6425_v60 = vrot.slane %v2294_v24, 2  ;;  %v2607_v17 = vshrl.u32 %v6385_v12, 16  ;;  %v6434_v26 = vrot.slane %v2598_v43, 1 }
 0x1d6   : > { %8120 = vst [vmem:[#allocation16_spill] sm:$0xff] %v6415_v6  ;;  %8121 = vst [vmem:[#allocation17_spill] sm:$0xff] %v6418_v42  ;;  %v6436_v48 = vrot.slane %v2308_v34, 2  ;;  %v1201_v24 = vshll.u32 %v6356_v32, 16  ;;  %v1378_v37 = vrot.slane %v6334_v16, 1  ;;  %v1495_v47 = vrot.slane %v1195_v61, 1  ;;  %4833 = vmatprep.subr.bf16.mxu1 %v5057_v54 }
 0x1d7   : > { %v6423_v28 = vsel %vm1134_vm1, %v2307_v44, %v2310_v38  ;;  %8122 = vst [vmem:[#allocation18_spill] sm:$0xff] %v6434_v26  ;;  %v6440_v56 = vrot.slane %v2607_v17, 1  ;;  %v1606_v38 = vmax.bf16 %v6353_v25, %v6350_v22  ;;  %v1199_v17 = vrot.slane %v1197_v51, 1 }
 0x1d8   : > { %v1496_v43 = vrot.slane %v1197_v51, 2  ;;  %v1379_v25 = vrot.slane %v6356_v32, 1  ;;  %v1498_v29 = vshrl.u32 %v6356_v32, 16  ;;  %v1203_v44 = vrot.slane %v1201_v24, 1 }
 0x1d9   : > { %v6463_v34 = vmax.bf16 %v6331_v20, %v1606_v38  ;;  %v1200_v22 = vor.u32 %v1199_v17, %v1195_v61  ;;  %v1501_v55 = vrot.slane %v1201_v24, 2  ;;  %4834 = vmatpush3.bf16.msra.mxu1 %v5057_v54  ;;  %v8123_v61 = vmax.bf16 %v6307_v41, %v6311_v40 }
 0x1da   : > { %v1497_v33 = vor.u32 %v1496_v43, %v1495_v47  ;;  %v8124_v47 = vmax.bf16 %v6343_v53, %v6307_v41  ;;  %v1500_v43 = vrot.slane %v1498_v29, 1  ;;  %v1637_v17 = vrot.slane %v6356_v32, 2 }
 0x1db   : > { %4748 = vmatmul.mubr.bf16.gmra.mxu1 %v6463_v34  ;;  %v2137_v20 = vmax.bf16 %v6463_v34, %v6307_v41  ;;  %v6477_v51 = vmax.bf16 %v8123_v61, %v6463_v34  ;;  %v2163_v38 = vmax.bf16 %v6346_v35, %v6463_v34  ;;  %v1204_v54 = vsel %vm1134_vm1, %v1200_v22, %v1203_v44 }
 0x1dc   : > { %v2175_v24 = vmax.bf16 %v8124_v47, %v6463_v34  ;;  %v1059_v59 = vrot.slane %v6324_v1, 7  ;;  %v1317_v40 = vmax.bf16 %v1204_v54, %v6334_v16  ;;  %v1380_v61 = vsel %vm1359_vm2, %v1378_v37, %v1379_v25 }
 0x1dd   : > { %v1060_v42 = vrot.slane %v6340_v13, 7  ;;  %v1502_v35 = vor.u32 %v1501_v55, %v1500_v43  ;;  %v8125_v53 = vmax.bf16 %v6081_v58, %v5908_v46  ;;  %v1638_v16 = vsel %vm1617_vm3, %v1636_v30, %v1637_v17 }
 0x1de   : > { %v2205_v26 = vrot.slane %v2175_v24, 7  ;;  %v1092_v6 = vsel %vm1068_vm0, 4286644096, %v1059_v59  ;;  %v1125_v41 = vsel %vm1068_vm0, %v1059_v59, 4286644096  ;;  %v1430_v32 = vmax.bf16 %v1380_v61, %v1317_v40 }
 0x1df   : > { %v6497_v29 = vmax.bf16 %v8125_v53, %v5880_v7  ;;  %v1205_v37 = vshrl.u32 %v1092_v6, 16  ;;  %v1503_v55 = vsel %vm1440_vm4, %v1497_v33, %v1502_v35  ;;  %v1207_v44 = vshll.u32 %v1092_v6, 16 }
 0x1e0   : > { %v6500_v1 = vsel %vm1068_vm0, %v2205_v26, 4286644096  ;;  %v6504_v13 = vsel %vm1068_vm0, 4286644096, %v2205_v26  ;;  %v1211_v59 = vshll.u32 %v1125_v41, 16  ;;  %v1607_v25 = vmax.bf16 %v1503_v55, %v1430_v32 }
 0x1e1   : > { %v1381_v46 = vrot.slane %v1092_v6, 1  ;;  %v1382_v7 = vrot.slane %v1125_v41, 1  ;;  %v1209_v58 = vrot.slane %v1207_v44, 1  ;;  %v1504_v47 = vrot.slane %v1205_v37, 1 }
 0x1e2   : > { %v1505_v24 = vrot.slane %v1207_v44, 2  ;;  %v1507_v54 = vshrl.u32 %v1125_v41, 16  ;;  %v6508_v43 = vmax.bf16 %v1638_v16, %v1607_v25  ;;  %v1213_v30 = vrot.slane %v1211_v59, 1 }
 0x1e3   : > { %v1510_v17 = vrot.slane %v1211_v59, 2  ;;  %v1639_v40 = vrot.slane %v1092_v6, 2  ;;  %v1210_v26 = vor.u32 %v1209_v58, %v1205_v37  ;;  %v1383_v61 = vsel %vm1359_vm2, %v1381_v46, %v1382_v7 }
 0x1e4   : > { %v1509_v33 = vrot.slane %v1507_v54, 1  ;;  %v1640_v35 = vrot.slane %v1125_v41, 2  ;;  %4751 = vmatprep.mubr.bf16.mxu1 %v6508_v43  ;;  %v2138_v53 = vmax.bf16 %v6508_v43, %v6463_v34  ;;  %v6515_v32 = vmax.bf16 %v2137_v20, %v6508_v43 }
 0x1e5   : > { %v2164_v16 = vmax.bf16 %v6477_v51, %v6508_v43  ;;  %v2176_v55 = vmax.bf16 %v2163_v38, %v6508_v43  ;;  %v1214_v44 = vsel %vm1134_vm1, %v1210_v26, %v1213_v30  ;;  %v1506_v37 = vor.u32 %v1505_v24, %v1504_v47 }
 0x1e6   : > { %v1511_v59 = vor.u32 %v1510_v17, %v1509_v33  ;;  %v1095_v25 = vsel %vm1068_vm0, 4286644096, %v1060_v42  ;;  %v1318_v46 = vmax.bf16 %v1214_v44, %v1092_v6  ;;  %v1641_v7 = vsel %vm1617_vm3, %v1639_v40, %v1640_v35 }
 0x1e7   : > { %v2206_v41 = vrot.slane %v2176_v55, 7  ;;  %v1126_v34 = vsel %vm1068_vm0, %v1060_v42, 4286644096  ;;  %v1215_v58 = vshrl.u32 %v1095_v25, 16  ;;  %v1217_v20 = vshll.u32 %v1095_v25, 16 }
 0x1e8   : > { %v1221_v54 = vshll.u32 %v1126_v34, 16  ;;  %v1384_v22 = vrot.slane %v1095_v25, 1  ;;  %v1431_v47 = vmax.bf16 %v1383_v61, %v1318_v46  ;;  %v1385_v24 = vrot.slane %v1126_v34, 1 }
 0x1e9   : > { %v6525_v51 = vsel %vm1068_vm0, 4286644096, %v2206_v41  ;;  %v6528_v38 = vsel %vm1068_vm0, %v2206_v41, 4286644096  ;;  %v1512_v42 = vsel %vm1440_vm4, %v1506_v37, %v1511_v59  ;;  %v1219_v35 = vrot.slane %v1217_v20, 1 }
 0x1ea   : > { %8126 = vst [vmem:[#allocation19_spill] sm:$0xff] %v6525_v51  ;;  %8127 = vst [vmem:[#allocation20_spill] sm:$0xff] %v6528_v38  ;;  %v8041_v6 = vshll.u32 %v6525_v51, 16  ;;  %v8042_v17 = vshll.u32 %v6528_v38, 16  ;;  %v2625_v26 = vshrl.u32 %v6528_v38, 16  ;;  %v1608_v33 = vmax.bf16 %v1512_v42, %v1431_v47 }
 0x1eb   : > { %v1223_v44 = vrot.slane %v1221_v54, 1  ;;  %v1513_v41 = vrot.slane %v1215_v58, 1  ;;  %v1220_v30 = vor.u32 %v1219_v35, %v1215_v58  ;;  %v1386_v37 = vsel %vm1359_vm2, %v1384_v22, %v1385_v24 }
 0x1ec   : > { %v6538_v55 = vrot.slane %v8041_v6, 1  ;;  %v6542_v61 = vrot.slane %v8042_v17, 1  ;;  %v6544_v46 = vmax.bf16 %v1641_v7, %v1608_v33  ;;  %v1514_v59 = vrot.slane %v1217_v20, 2 }
 0x1ed   : > { %v1516_v40 = vshrl.u32 %v1126_v34, 16  ;;  %v1519_v23 = vrot.slane %v1221_v54, 2  ;;  %v1642_v47 = vrot.slane %v1095_v25, 2  ;;  %v1643_v42 = vrot.slane %v1126_v34, 2 }
 0x1ee   : > { %8128 = vst [vmem:[#allocation21_spill] sm:$0xff] %v6538_v55  ;;  %8129 = vst [vmem:[#allocation22_spill] sm:$0xff] %v6542_v61  ;;  %4752 = vmatmul.mubr.bf16.gmra.mxu1 %v6544_v46  ;;  %v2139_v6 = vmax.bf16 %v6544_v46, %v6508_v43  ;;  %v6551_v17 = vmax.bf16 %v2138_v53, %v6544_v46  ;;  %v2165_v7 = vmax.bf16 %v6515_v32, %v6544_v46 }
 0x1ef   : > { %v2177_v58 = vmax.bf16 %v2164_v16, %v6544_v46  ;;  %v6556_v33 = vrot.slane %v2625_v26, 1  ;;  %v1224_v22 = vsel %vm1134_vm1, %v1220_v30, %v1223_v44  ;;  %v1515_v20 = vor.u32 %v1514_v59, %v1513_v41 }
 0x1f0   : > { %v1518_v54 = vrot.slane %v1516_v40, 1  ;;  %v1319_v24 = vmax.bf16 %v1224_v22, %v1095_v25  ;;  %v1061_v35 = vrot.slane %v6497_v29, 7  ;;  %v8131_v43 = vrot.slane %v5987_v62, 7 }
 0x1f1   : > { %8130 = vst [vmem:[#allocation23_spill] sm:$0xff] %v6556_v33  ;;  %v2207_v34 = vrot.slane %v2177_v58, 7  ;;  %v1644_v32 = vsel %vm1617_vm3, %v1642_v47, %v1643_v42  ;;  %v1390_v51 = vrot.slane %v6012_v9, 1 }
 0x1f2   : > { %v6563_v53 = vsel %vm1068_vm0, %v8131_v43, 4286644096  ;;  %v1520_v38 = vor.u32 %v1519_v23, %v1518_v54  ;;  %v1432_v25 = vmax.bf16 %v1386_v37, %v1319_v24  ;;  %v1098_v29 = vsel %vm1068_vm0, 4286644096, %v1061_v35 }
 0x1f3   : > { %v6569_v30 = vsel %vm1068_vm0, 4286644096, %v2207_v34  ;;  %v6572_v40 = vsel %vm1068_vm0, %v2207_v34, 4286644096  ;;  %v1241_v41 = vshll.u32 %v6563_v53, 16  ;;  %v1225_v58 = vshrl.u32 %v1098_v29, 16 }
 0x1f4   : > { %8132 = vst [vmem:[#allocation24_spill] sm:$0xff] %v6569_v30  ;;  %8133 = vst [vmem:[#allocation25_spill] sm:$0xff] %v6572_v40  ;;  %v8045_v44 = vshll.u32 %v6569_v30, 16  ;;  %v8048_v23 = vshll.u32 %v6572_v40, 16  ;;  %v2634_v59 = vshrl.u32 %v6572_v40, 16  ;;  %v1521_v47 = vsel %vm1440_vm4, %v1515_v20, %v1520_v38 }
 0x1f5   : > { %v1127_v42 = vsel %vm1068_vm0, %v1061_v35, 4286644096  ;;  %v1609_v54 = vmax.bf16 %v1521_v47, %v1432_v25  ;;  %v1227_v34 = vshll.u32 %v1098_v29, 16  ;;  %v1387_v62 = vrot.slane %v1098_v29, 1 }
 0x1f6   : > { %v6584_v37 = vrot.slane %v8045_v44, 1  ;;  %v6589_v24 = vrot.slane %v8048_v23, 1  ;;  %v1231_v43 = vshll.u32 %v1127_v42, 16  ;;  %v1388_v16 = vrot.slane %v1127_v42, 1 }
 0x1f7   : > { %v6591_v26 = vmax.bf16 %v1644_v32, %v1609_v54  ;;  %v1229_v38 = vrot.slane %v1227_v34, 1  ;;  %v1522_v20 = vrot.slane %v1225_v58, 1  ;;  %v1523_v35 = vrot.slane %v1227_v34, 2 }
 0x1f8   : > { %8134 = vst [vmem:[#allocation26_spill] sm:$0xff] %v6584_v37  ;;  %8135 = vst [vmem:[#allocation27_spill] sm:$0xff] %v6589_v24  ;;  %v6593_v33 = vrot.slane %v2634_v59, 1  ;;  %v1233_v44 = vrot.slane %v1231_v43, 1  ;;  %v1525_v37 = vshrl.u32 %v1127_v42, 16  ;;  %v1528_v30 = vrot.slane %v1231_v43, 2 }
 0x1f9   : > { %4755 = vmatprep.mubr.bf16.mxu1 %v6591_v26  ;;  %v2140_v25 = vmax.bf16 %v6591_v26, %v6544_v46  ;;  %v6599_v47 = vmax.bf16 %v2139_v6, %v6591_v26  ;;  %v2166_v32 = vmax.bf16 %v6551_v17, %v6591_v26  ;;  %v2178_v54 = vmax.bf16 %v2165_v7, %v6591_v26 }
 0x1fa   : > { %8136 = vst [vmem:[#allocation28_spill] sm:$0xff] %v6593_v33  ;;  %v1230_v22 = vor.u32 %v1229_v38, %v1225_v58  ;;  %v1389_v59 = vsel %vm1359_vm2, %v1387_v62, %v1388_v16  ;;  %v1527_v34 = vrot.slane %v1525_v37, 1  ;;  %v1645_v23 = vrot.slane %v1098_v29, 2 }
 0x1fb   : > { %v2208_v33 = vrot.slane %v2178_v54, 7  ;;  %v1524_v43 = vor.u32 %v1523_v35, %v1522_v20  ;;  %v1646_v24 = vrot.slane %v1127_v42, 2  ;;  %v8137_v40 = vshll.u32 %v6012_v9, 16 }
 0x1fc   : > { %v1234_v46 = vsel %vm1134_vm1, %v1230_v22, %v1233_v44  ;;  %v1529_v6 = vor.u32 %v1528_v30, %v1527_v34  ;;  %v1243_v55 = vrot.slane %v1241_v41, 1  ;;  %v1391_v62 = vrot.slane %v6563_v53, 1 }
 0x1fd   : > { %v1239_v61 = vrot.slane %v8137_v40, 1  ;;  %v6610_v17 = vsel %vm1068_vm0, 4286644096, %v2208_v33  ;;  %v6613_v7 = vsel %vm1068_vm0, %v2208_v33, 4286644096  ;;  %v1320_v16 = vmax.bf16 %v1234_v46, %v1098_v29 }
 0x1fe   : > { %v8053_v58 = vshll.u32 %v6610_v17, 16  ;;  %v8054_v40 = vshll.u32 %v6613_v7, 16  ;;  %v1647_v30 = vsel %vm1617_vm3, %v1645_v23, %v1646_v24  ;;  %v2643_v37 = vshrl.u32 %v6613_v7, 16 }
 0x1ff   : > { %v1433_v22 = vmax.bf16 %v1389_v59, %v1320_v16  ;;  %v8138_v38 = vshrl.u32 %v6012_v9, 16  ;;  %v1530_v35 = vsel %vm1440_vm4, %v1524_v43, %v1529_v6  ;;  %v1392_v59 = vsel %vm1359_vm2, %v1390_v51, %v1391_v62 }
 0x200   : > { %v6626_v29 = vrot.slane %v8053_v58, 1  ;;  %v6630_v20 = vrot.slane %v8054_v40, 1  ;;  %v1537_v58 = vrot.slane %v1241_v41, 2  ;;  %v1648_v40 = vrot.slane %v6012_v9, 2 }
 0x201   : > { %v1240_v33 = vor.u32 %v1239_v61, %v8138_v38  ;;  %v8139_v23 = vmov %v8138_v38  ;;  %v1610_v54 = vmax.bf16 %v1530_v35, %v1433_v22  ;;  %v8140_v61 = vshll.u32 %v6012_v9, 16 }
 0x202   : > { %v1531_v24 = vrot.slane %v8139_v23, 1  ;;  %v1534_v38 = vshrl.u32 %v6563_v53, 16  ;;  %v1649_v6 = vrot.slane %v6563_v53, 2  ;;  %v8141_v22 = vrot.slane %v5999_v50, 7 }
 0x203   : > { %v1244_v34 = vsel %vm1134_vm1, %v1240_v33, %v1243_v55  ;;  %v1532_v46 = vrot.slane %v8140_v61, 2  ;;  %v6642_v44 = vmax.bf16 %v1647_v30, %v1610_v54  ;;  %v1245_v33 = vshrl.u32 %v6061_v10, 16 }
 0x204   : > { %v1321_v16 = vmax.bf16 %v1244_v34, %v6012_v9  ;;  %v1129_v55 = vsel %vm1068_vm0, %v8141_v22, 4286644096  ;;  %v1536_v62 = vrot.slane %v1534_v38, 1  ;;  %v1247_v35 = vshll.u32 %v6061_v10, 16 }
 0x205   : > { %v1533_v43 = vor.u32 %v1532_v46, %v1531_v24  ;;  %4756 = vmatmul.mubr.bf16.gmra.mxu1 %v6642_v44  ;;  %v2141_v9 = vmax.bf16 %v6642_v44, %v6591_v26  ;;  %v6654_v41 = vmax.bf16 %v2140_v25, %v6642_v44  ;;  %v2167_v53 = vmax.bf16 %v6599_v47, %v6642_v44 }
 0x206   : > { %v1434_v51 = vmax.bf16 %v1392_v59, %v1321_v16  ;;  %v2179_v50 = vmax.bf16 %v2166_v32, %v6642_v44  ;;  %v6659_v30 = vrot.slane %v2643_v37, 1  ;;  %v1538_v23 = vor.u32 %v1537_v58, %v1536_v62 }
 0x207   : > { %v1249_v24 = vrot.slane %v1247_v35, 1  ;;  %v1251_v54 = vshll.u32 %v1129_v55, 16  ;;  %v1650_v59 = vsel %vm1617_vm3, %v1648_v40, %v1649_v6  ;;  %v1393_v61 = vrot.slane %v6061_v10, 1 }
 0x208   : > { %v2209_v34 = vrot.slane %v2179_v50, 7  ;;  %v1394_v46 = vrot.slane %v1129_v55, 1  ;;  %v1539_v26 = vsel %vm1440_vm4, %v1533_v43, %v1538_v23  ;;  %v1540_v16 = vrot.slane %v1245_v33, 1 }
 0x209   : > { %v1250_v25 = vor.u32 %v1249_v24, %v1245_v33  ;;  %v1541_v38 = vrot.slane %v1247_v35, 2  ;;  %v1611_v58 = vmax.bf16 %v1539_v26, %v1434_v51  ;;  %v1253_v37 = vrot.slane %v1251_v54, 1 }
 0x20a   : > { %v6665_v47 = vsel %vm1068_vm0, 4286644096, %v2209_v34  ;;  %v6668_v32 = vsel %vm1068_vm0, %v2209_v34, 4286644096  ;;  %v1395_v62 = vsel %vm1359_vm2, %v1393_v61, %v1394_v46  ;;  %v1543_v34 = vshrl.u32 %v1129_v55, 16 }
 0x20b   : > { %v8056_v40 = vshll.u32 %v6665_v47, 16  ;;  %v8055_v6 = vshll.u32 %v6668_v32, 16  ;;  %v2652_v33 = vshrl.u32 %v6668_v32, 16  ;;  %v6676_v35 = vmax.bf16 %v1650_v59, %v1611_v58 }
 0x20c   : > { %v1254_v50 = vsel %vm1134_vm1, %v1250_v25, %v1253_v37  ;;  %v1542_v24 = vor.u32 %v1541_v38, %v1540_v16  ;;  %v1545_v16 = vrot.slane %v1543_v34, 1  ;;  %v1546_v38 = vrot.slane %v1251_v54, 2 }
 0x20d   : > { %v6681_v51 = vrot.slane %v8056_v40, 1  ;;  %v1322_v23 = vmax.bf16 %v1254_v50, %v6061_v10  ;;  %v6686_v26 = vrot.slane %v8055_v6, 1  ;;  %4759 = vmatprep.mubr.bf16.mxu1 %v6676_v35  ;;  %v2142_v59 = vmax.bf16 %v6676_v35, %v6642_v44 }
 0x20e   : > { %v6692_v61 = vmax.bf16 %v2141_v9, %v6676_v35  ;;  %v2168_v46 = vmax.bf16 %v6654_v41, %v6676_v35  ;;  %v2180_v25 = vmax.bf16 %v2167_v53, %v6676_v35  ;;  %v1651_v37 = vrot.slane %v6061_v10, 2 }
 0x20f   : > { %v1435_v58 = vmax.bf16 %v1395_v62, %v1322_v23  ;;  %v1652_v50 = vrot.slane %v1129_v55, 2  ;;  %v8142_v6 = vshrl.u32 %v6185_v11, 16  ;;  %v1396_v44 = vrot.slane %v6185_v11, 1 }
 0x210   : > { %v2210_v43 = vrot.slane %v2180_v25, 7  ;;  %v1547_v9 = vor.u32 %v1546_v38, %v1545_v16  ;;  %v8144_v41 = vshll.u32 %v6185_v11, 16  ;;  %v6706_v62 = vrot.slane %v2652_v33, 1 }
 0x211   : > { %v1260_v40 = vor.u32 %v6219_v18, %v8142_v6  ;;  %v8143_v22 = vmov %v8142_v6  ;;  %v1653_v54 = vsel %vm1617_vm3, %v1651_v37, %v1652_v50  ;;  %v8145_v55 = vshll.u32 %v6193_v45, 16 }
 0x212   : > { %v1549_v42 = vrot.slane %v8143_v22, 1  ;;  %v1550_v53 = vrot.slane %v8144_v41, 2  ;;  %v6714_v6 = vsel %vm1068_vm0, 4286644096, %v2210_v43  ;;  %v6717_v23 = vsel %vm1068_vm0, %v2210_v43, 4286644096 }
 0x213   : > { %v1264_v10 = vsel %vm1134_vm1, %v1260_v40, %v6229_v63  ;;  %v1555_v18 = vrot.slane %v8145_v55, 2  ;;  %8146 = vst [vmem:[#allocation29_spill] sm:$0xff] %v6717_v23  ;;  %v8147_v34 = vrot.slane %v6193_v45, 1  ;;  %v8058_v16 = vshll.u32 %v6714_v6, 16 }
 0x214   : > { %v1323_v22 = vmax.bf16 %v1264_v10, %v6185_v11  ;;  %v8057_v63 = vshll.u32 %v6717_v23, 16  ;;  %v1548_v40 = vsel %vm1440_vm4, %v1542_v24, %v1547_v9  ;;  %v2661_v38 = vshrl.u32 %v6717_v23, 16 }
 0x215   : > { %v1398_v33 = vsel %vm1359_vm2, %v1396_v44, %v8147_v34  ;;  %v1612_v37 = vmax.bf16 %v1548_v40, %v1435_v58  ;;  %v1551_v43 = vor.u32 %v1550_v53, %v1549_v42  ;;  %v6730_v41 = vrot.slane %v8058_v16, 1 }
 0x216   : > { %v1436_v50 = vmax.bf16 %v1398_v33, %v1323_v22  ;;  %v1556_v44 = vor.u32 %v1555_v18, %v6237_v3  ;;  %v1654_v55 = vrot.slane %v6185_v11, 2  ;;  %v6737_v34 = vrot.slane %v8057_v63, 1 }
 0x217   : > { %v6739_v24 = vmax.bf16 %v1653_v54, %v1612_v37  ;;  %v1655_v58 = vrot.slane %v6193_v45, 2  ;;  %v1265_v42 = vshrl.u32 %v6197_v2, 16  ;;  %v6743_v9 = vrot.slane %v2661_v38, 1 }
 0x218   : > { %v1557_v53 = vsel %vm1440_vm4, %v1551_v43, %v1556_v44  ;;  %v1267_v22 = vshll.u32 %v6197_v2, 16  ;;  %v1399_v3 = vrot.slane %v6197_v2, 1  ;;  %v8149_v38 = vshll.u32 %v6204_v8, 16 }
 0x219   : > { %8148 = vst [vmem:[#allocation30_spill] sm:$0xff] %v6743_v9  ;;  %4760 = vmatmul.mubr.bf16.gmra.mxu1 %v6739_v24  ;;  %v6750_v11 = vmax.bf16 %v2142_v59, %v6739_v24  ;;  %v2169_v54 = vmax.bf16 %v6692_v61, %v6739_v24  ;;  %v2181_v45 = vmax.bf16 %v2168_v46, %v6739_v24  ;;  %v1400_v43 = vrot.slane %v6204_v8, 1 }
 0x21a   : > { %v1613_v18 = vmax.bf16 %v1557_v53, %v1436_v50  ;;  %v1656_v33 = vsel %vm1617_vm3, %v1654_v55, %v1655_v58  ;;  %v1269_v40 = vrot.slane %v1267_v22, 1  ;;  %v1273_v37 = vrot.slane %v8149_v38, 1 }
 0x21b   : > { %v2211_v44 = vrot.slane %v2181_v45, 7  ;;  %v1558_v10 = vrot.slane %v1265_v42, 1  ;;  %v1559_v59 = vrot.slane %v1267_v22, 2  ;;  %v1401_v25 = vsel %vm1359_vm2, %v1399_v3, %v1400_v43 }
 0x21c   : > { %v6759_v63 = vmax.bf16 %v1656_v33, %v1613_v18  ;;  %v1270_v16 = vor.u32 %v1269_v40, %v1265_v42  ;;  %v1561_v61 = vshrl.u32 %v6204_v8, 16  ;;  %v8150_v46 = vmov %v8149_v38 }
 0x21d   : > { %v1564_v50 = vrot.slane %v8150_v46, 2  ;;  %v6766_v55 = vsel %vm1068_vm0, 4286644096, %v2211_v44  ;;  %v6769_v58 = vsel %vm1068_vm0, %v2211_v44, 4286644096  ;;  %v1657_v18 = vrot.slane %v6197_v2, 2 }
 0x21e   : > { %8151 = vst [vmem:[#allocation31_spill] sm:$0xff] %v6766_v55  ;;  %8152 = vst [vmem:[#allocation32_spill] sm:$0xff] %v6769_v58  ;;  %4763 = vmatprep.mubr.bf16.mxu1 %v6759_v63  ;;  %v2170_v53 = vmax.bf16 %v6750_v11, %v6759_v63  ;;  %v2182_v42 = vmax.bf16 %v2169_v54, %v6759_v63  ;;  %v8060_v3 = vshll.u32 %v6766_v55, 16  ;;  %v8059_v45 = vshll.u32 %v6769_v58, 16 }
 0x21f   : > { %v2670_v40 = vshrl.u32 %v6769_v58, 16  ;;  %v1274_v43 = vsel %vm1134_vm1, %v1270_v16, %v1273_v37  ;;  %v1560_v44 = vor.u32 %v1559_v59, %v1558_v10  ;;  %v1563_v46 = vrot.slane %v1561_v61, 1 }
 0x220   : > { %v2212_v38 = vrot.slane %v2182_v42, 7  ;;  %v6784_v11 = vrot.slane %v8060_v3, 1  ;;  %v1324_v54 = vmax.bf16 %v1274_v43, %v6197_v2  ;;  %v6789_v22 = vrot.slane %v8059_v45, 1 }
 0x221   : > { %v1658_v16 = vrot.slane %v6204_v8, 2  ;;  %v6798_v37 = vrot.slane %v2670_v40, 1  ;;  %v1565_v45 = vor.u32 %v1564_v50, %v1563_v46  ;;  %v1132_v40 = vsel %vm1068_vm0, %v6182_v49, 4286644096 }
 0x222   : > { %8153 = vst [vmem:[#allocation33_spill] sm:$0xff] %v6784_v11  ;;  %8154 = vst [vmem:[#allocation34_spill] sm:$0xff] %v6789_v22  ;;  %v6792_v9 = vsel %vm1068_vm0, 4286644096, %v2212_v38  ;;  %v6795_v33 = vsel %vm1068_vm0, %v2212_v38, 4286644096  ;;  %v1437_v43 = vmax.bf16 %v1401_v25, %v1324_v54 }
 0x223   : > { %8155 = vst [vmem:[#allocation35_spill] sm:$0xff] %v6792_v9  ;;  %8156 = vst [vmem:[#allocation36_spill] sm:$0xff] %v6795_v33  ;;  %v8061_v2 = vshll.u32 %v6792_v9, 16  ;;  %v8066_v10 = vshll.u32 %v6795_v33, 16  ;;  %v2679_v61 = vshrl.u32 %v6795_v33, 16  ;;  %v1659_v8 = vsel %vm1617_vm3, %v1657_v18, %v1658_v16 }
 0x224   : > { %8157 = vst [vmem:[#allocation37_spill] sm:$0xff] %v6798_v37  ;;  %v1275_v42 = vshrl.u32 %v6201_v15, 16  ;;  %v1566_v59 = vsel %vm1440_vm4, %v1560_v44, %v1565_v45  ;;  %v1277_v25 = vshll.u32 %v6201_v15, 16  ;;  %v1281_v50 = vshll.u32 %v1132_v40, 16 }
 0x225   : > { %v6807_v38 = vrot.slane %v8061_v2, 1  ;;  %v6815_v3 = vrot.slane %v8066_v10, 1  ;;  %v1614_v54 = vmax.bf16 %v1566_v59, %v1437_v43  ;;  %v1402_v46 = vrot.slane %v6201_v15, 1 }
 0x226   : > { %v1403_v2 = vrot.slane %v1132_v40, 1  ;;  %v6820_v18 = vrot.slane %v2679_v61, 1  ;;  %v1279_v16 = vrot.slane %v1277_v25, 1  ;;  %v1568_v49 = vrot.slane %v1277_v25, 2 }
 0x227   : > { %8158 = vst [vmem:[#allocation38_spill] sm:$0xff] %v6807_v38  ;;  %8159 = vst [vmem:[#allocation39_spill] sm:$0xff] %v6815_v3  ;;  %v1567_v38 = vrot.slane %v1275_v42, 1  ;;  %v1570_v9 = vshrl.u32 %v1132_v40, 16  ;;  %v6822_v37 = vmax.bf16 %v1659_v8, %v1614_v54  ;;  %v1283_v33 = vrot.slane %v1281_v50, 1 }
 0x228   : > { %8160 = vst [vmem:[#allocation40_spill] sm:$0xff] %v6820_v18  ;;  %v1573_v10 = vrot.slane %v1281_v50, 2  ;;  %v1660_v3 = vrot.slane %v6201_v15, 2  ;;  %v1280_v45 = vor.u32 %v1279_v16, %v1275_v42  ;;  %v1661_v22 = vrot.slane %v1132_v40, 2 }
 0x229   : > { %v1569_v44 = vor.u32 %v1568_v49, %v1567_v38  ;;  %v1572_v58 = vrot.slane %v1570_v9, 1  ;;  %4764 = vmatmul.mubr.bf16.gmra.mxu1 %v6822_v37  ;;  %v2183_v59 = vmax.bf16 %v2170_v53, %v6822_v37  ;;  %v1404_v61 = vsel %vm1359_vm2, %v1402_v46, %v1403_v2 }
 0x22a   : > { %v2143_v43 = vmax.bf16 %v6739_v24, %v6676_v35  ;;  %v2314_v8 = vshll.u32 %v6504_v13, 16  ;;  %v1284_v25 = vsel %vm1134_vm1, %v1280_v45, %v1283_v33  ;;  %v1662_v54 = vsel %vm1617_vm3, %v1660_v3, %v1661_v22 }
 0x22b   : > { %v1574_v50 = vor.u32 %v1573_v10, %v1572_v58  ;;  %v2312_v42 = vshrl.u32 %v6504_v13, 16  ;;  %v2213_v9 = vrot.slane %v2183_v59, 7  ;;  %v1325_v38 = vmax.bf16 %v1284_v25, %v6201_v15 }
 0x22c   : > { %v2157_v40 = vmax.bf16 %v2143_v43, %v6759_v63  ;;  %v2316_v53 = vrot.slane %v2314_v8, 1  ;;  %v8161_v46 = vshll.u32 %v6500_v1, 16  ;;  %v8162_v16 = vrot.slane %v6366_v39, 1 }
 0x22d   : > { %v1575_v2 = vsel %vm1440_vm4, %v1569_v44, %v1574_v50  ;;  %v8163_v33 = vrot.slane %v6363_v57, 1  ;;  %v8164_v22 = vrot.slane %v6375_v19, 1  ;;  %v8165_v3 = vrot.slane %v6372_v14, 1 }
 0x22e   : > { %v2320_v35 = vrot.slane %v8161_v46, 1  ;;  %v6850_v10 = vsel %vm1068_vm0, 4286644096, %v2213_v9  ;;  %v6853_v49 = vsel %vm1068_vm0, %v2213_v9, 4286644096  ;;  %v1438_v45 = vmax.bf16 %v1404_v61, %v1325_v38 }
 0x22f   : > { %v2508_v58 = vsel %vm1359_vm2, %v8163_v33, %v8162_v16  ;;  %v2511_v15 = vsel %vm1359_vm2, %v8165_v3, %v8164_v22  ;;  %8166 = vst [vmem:[#allocation41_spill] sm:$0xff] %v6850_v10  ;;  %8167 = vst [vmem:[#allocation42_spill] sm:$0xff] %v6853_v49  ;;  %v2171_v44 = vmax.bf16 %v2157_v40, %v6822_v37  ;;  %v8069_v43 = vshll.u32 %v6850_v10, 16 }
 0x230   : > { %v8070_v25 = vshll.u32 %v6853_v49, 16  ;;  %v8168_v50 = vrot.slane %v6385_v12, 1  ;;  %v8169_v46 = vrot.slane %v6382_v52, 1  ;;  %v2688_v33 = vshrl.u32 %v6853_v49, 16 }
 0x231   : > { %v1615_v22 = vmax.bf16 %v1575_v2, %v1438_v45  ;;  %v2317_v9 = vor.u32 %v2316_v53, %v2312_v42  ;;  %v2515_v61 = vrot.slane %v6504_v13, 1  ;;  %v6868_v38 = vrot.slane %v8069_v43, 1 }
 0x232   : > { %v2514_v16 = vsel %vm1359_vm2, %v8169_v46, %v8168_v50  ;;  %v6872_v40 = vrot.slane %v8070_v25, 1  ;;  %v2516_v59 = vrot.slane %v6500_v1, 1  ;;  %v6876_v18 = vrot.slane %v2688_v33, 1 }
 0x233   : > { %8170 = vst [vmem:[#allocation43_spill] sm:$0xff] %v6868_v38  ;;  %v6878_v50 = vmax.bf16 %v1662_v54, %v1615_v22  ;;  %v2321_v53 = vsel %vm1134_vm1, %v2317_v9, %v2320_v35  ;;  %v8173_v2 = vmax.bf16 %v6394_v0, %v6363_v57  ;;  %v8174_v25 = vmax.bf16 %v6402_v4, %v6372_v14  ;;  %v8178_v9 = vld [vmem:[#allocation15_spill] sm:$0xff] }
 0x234   : > { %8171 = vst [vmem:[#allocation44_spill] sm:$0xff] %v6872_v40  ;;  %8172 = vst [vmem:[#allocation45_spill] sm:$0xff] %v6876_v18  ;;  %v2461_v46 = vmax.bf16 %v2321_v53, %v6504_v13  ;;  %v2517_v43 = vsel %vm1359_vm2, %v2515_v61, %v2516_v59  ;;  %v2588_v33 = vor.u32 %v6411_v27, %v6404_v36  ;;  %v2613_v22 = vrot.slane %v2312_v42, 1 }
 0x235   : > { %v2570_v45 = vmax.bf16 %v2508_v58, %v8173_v2  ;;  %v2571_v3 = vmax.bf16 %v2511_v15, %v8174_v25  ;;  %4767 = vmatprep.mubr.bf16.mxu1 %v6878_v50  ;;  %v2184_v54 = vmax.bf16 %v2171_v44, %v6878_v50  ;;  %v8175_v35 = vmax.bf16 %v6423_v28, %v6382_v52  ;;  %v8179_v28 = vld [vmem:[#allocation16_spill] sm:$0xff] }
 0x236   : > { %v2597_v58 = vor.u32 %v6425_v60, %v6413_v21  ;;  %v2573_v59 = vmax.bf16 %v2517_v43, %v2461_v46  ;;  %v8176_v4 = vor.u32 %v6436_v48, %v6440_v56  ;;  %v8177_v15 = vor.u32 %v6427_v5, %v6420_v31  ;;  %v8181_v21 = vld [vmem:[#allocation17_spill] sm:$0xff]  ;;  %v8182_v60 = vld [vmem:[#allocation18_spill] sm:$0xff] }
 0x237   : > { %v2572_v0 = vmax.bf16 %v2514_v16, %v8175_v35  ;;  %v2614_v27 = vrot.slane %v2314_v8, 2  ;;  %v2616_v44 = vshrl.u32 %v6500_v1, 16  ;;  %v2214_v25 = vrot.slane %v2184_v54, 7 }
 0x238   : > { %v2612_v36 = vsel %vm1440_vm4, %v8177_v15, %v8176_v4  ;;  %v8180_v16 = vor.u32 %v8178_v9, %v8179_v28  ;;  %v8183_v42 = vor.u32 %v8181_v21, %v8182_v60  ;;  %v8184_v48 = vshll.u32 %v6500_v1, 16 }
 0x239   : > { %v2615_v31 = vor.u32 %v2614_v27, %v2613_v22  ;;  %v2618_v5 = vrot.slane %v2616_v44, 1  ;;  %v6917_v2 = vsel %vm1068_vm0, 4286644096, %v2214_v25  ;;  %v6920_v46 = vsel %vm1068_vm0, %v2214_v25, 4286644096 }
 0x23a   : > { %v2594_v61 = vsel %vm1440_vm4, %v2588_v33, %v8180_v16  ;;  %v2603_v43 = vsel %vm1440_vm4, %v2597_v58, %v8183_v42  ;;  %v2619_v56 = vrot.slane %v8184_v48, 2  ;;  %8185 = vst [vmem:[#allocation15_spill] sm:$0xff] %v6917_v2  ;;  %8186 = vst [vmem:[#allocation16_spill] sm:$0xff] %v6920_v46  ;;  %v2748_v54 = vmax.bf16 %v2612_v36, %v2572_v0 }
 0x23b   : > { %v2746_v53 = vmax.bf16 %v2594_v61, %v2570_v45  ;;  %v2747_v8 = vmax.bf16 %v2603_v43, %v2571_v3  ;;  %v8187_v33 = vrot.slane %v6366_v39, 2  ;;  %v8188_v35 = vrot.slane %v6363_v57, 2 }
 0x23c   : > { %v2402_v4 = vshrl.u32 %v6917_v2, 16  ;;  %v2404_v22 = vshll.u32 %v6917_v2, 16  ;;  %v2408_v45 = vshll.u32 %v6920_v46, 16  ;;  %v2542_v3 = vrot.slane %v6917_v2, 1 }
 0x23d   : > { %v2764_v58 = vsel %vm1617_vm3, %v8188_v35, %v8187_v33  ;;  %v2543_v15 = vrot.slane %v6920_v46, 1  ;;  %v2697_v27 = vshrl.u32 %v6920_v46, 16  ;;  %v8189_v39 = vrot.slane %v6375_v19, 2 }
 0x23e   : > { %v8190_v57 = vrot.slane %v6372_v14, 2  ;;  %v2406_v44 = vrot.slane %v2404_v22, 1  ;;  %v6939_v25 = vrot.slane %v2402_v4, 1  ;;  %v6941_v9 = vrot.slane %v2404_v22, 2 }
 0x23f   : > { %v2410_v16 = vrot.slane %v2408_v45, 1  ;;  %v2544_v61 = vsel %vm1359_vm2, %v2542_v3, %v2543_v15  ;;  %v6945_v21 = vrot.slane %v2697_v27, 1  ;;  %v2620_v60 = vor.u32 %v2619_v56, %v2618_v5  ;;  %v8198_v27 = vld [vmem:[#allocation14_spill] sm:$0xff] }
 0x240   : > { %v2767_v36 = vsel %vm1617_vm3, %v8190_v57, %v8189_v39  ;;  %8191 = vst [vmem:[#allocation17_spill] sm:$0xff] %v6939_v25  ;;  %8192 = vst [vmem:[#allocation18_spill] sm:$0xff] %v6941_v9  ;;  %v2407_v42 = vor.u32 %v2406_v44, %v2402_v4  ;;  %v6949_v14 = vrot.slane %v2408_v45, 2  ;;  %v2771_v43 = vrot.slane %v6504_v13, 2 }
 0x241   : > { %8193 = vst [vmem:[#allocation46_spill] sm:$0xff] %v6945_v21  ;;  %v2621_v48 = vsel %vm1440_vm4, %v2615_v31, %v2620_v60  ;;  %v8195_v33 = vrot.slane %v6385_v12, 2  ;;  %v8196_v35 = vrot.slane %v6382_v52, 2  ;;  %v2772_v3 = vrot.slane %v6500_v1, 2  ;;  %v8197_v12 = vld [vmem:[#allocation13_spill] sm:$0xff]  ;;  %v8199_v52 = vld [vmem:[#allocation12_spill] sm:$0xff] }
 0x242   : > { %8194 = vst [vmem:[#allocation47_spill] sm:$0xff] %v6949_v14  ;;  %v6959_v15 = vmax.bf16 %v2764_v58, %v2746_v53  ;;  %v2411_v56 = vsel %vm1134_vm1, %v2407_v42, %v2410_v16  ;;  %v2749_v5 = vmax.bf16 %v2621_v48, %v2573_v59  ;;  %v6962_v4 = vmax.bf16 %v2767_v36, %v2747_v8  ;;  %v8201_v16 = vld [vmem:[#allocation19_spill] sm:$0xff]  ;;  %v8203_v60 = vld [vmem:[#allocation21_spill] sm:$0xff] }
 0x243   : > { %v2770_v22 = vsel %vm1617_vm3, %v8196_v35, %v8195_v33  ;;  %v2470_v13 = vmax.bf16 %v2411_v56, %v6917_v2  ;;  %v2773_v31 = vsel %vm1617_vm3, %v2771_v43, %v2772_v3  ;;  %v8200_v39 = vmax.bf16 %v8198_v27, %v8199_v52 }
 0x244   : > { %v6964_v45 = vmax.bf16 %v2770_v22, %v2748_v54  ;;  %v2144_v1 = vmax.bf16 %v6759_v63, %v6739_v24  ;;  %v6974_v53 = vmax.bf16 %v2773_v31, %v2749_v5  ;;  %v3100_v59 = vmax.bf16 %v6962_v4, %v6959_v15 }
 0x245   : > { %v1010_v57 = vmax.bf16 %v8200_v39, %v8197_v12  ;;  %v2145_v8 = vmax.bf16 %v6822_v37, %v6759_v63  ;;  %v8202_v24 = vshrl.u32 %v8201_v16, 16  ;;  %v6990_v43 = vmax.bf16 %v2544_v61, %v2470_v13  ;;  %v8206_v12 = vld [vmem:[#allocation22_spill] sm:$0xff] }
 0x246   : > { %v6985_v44 = vmax.bf16 %v2144_v1, %v6822_v37  ;;  %v3114_v48 = vmax.bf16 %v3100_v59, %v6964_v45 }
 0x247   : > { %v1067_v36 = vrot.slane %v1010_v57, 7  ;;  %v2327_v42 = vor.u32 %v8203_v60, %v8202_v24  ;;  %8204 = vst [vmem:[#allocation13_spill] sm:$0xff] %v6990_v43  ;;  %v6994_v63 = vmax.bf16 %v2145_v8, %v6878_v50  ;;  %v8205_v56 = vmov %v8202_v24 }
 0x248   : > { %v7007_v61 = vrot.slane %v8205_v56, 1  ;;  %v7010_v5 = vmax.bf16 %v3114_v48, %v6974_v53  ;;  %v3169_v13 = vrot.slane %v3114_v48, 7 }
 0x249   : > { %v6998_v35 = vsel %vm1068_vm0, 4286644096, %v1067_v36  ;;  %v7001_v22 = vsel %vm1068_vm0, %v1067_v36, 4286644096  ;;  %v7015_v27 = vsel %vm1134_vm1, %v2327_v42, %v8206_v12 }
 0x24a   : > { %v1287_v31 = vshll.u32 %v6998_v35, 16  ;;  %v1285_v52 = vshrl.u32 %v6998_v35, 16  ;;  %v1291_v39 = vshll.u32 %v7001_v22, 16  ;;  %v1405_v57 = vrot.slane %v6998_v35, 1 }
 0x24b   : > { %v1406_v1 = vrot.slane %v7001_v22, 1  ;;  %v3170_v59 = vrot.slane %v7010_v5, 7  ;;  %v3186_v8 = vsel %vm1068_vm0, 4286644096, %v3169_v13  ;;  %v3233_v36 = vsel %vm1068_vm0, %v3169_v13, 4286644096 }
 0x24c   : > { %v1289_v24 = vrot.slane %v1287_v31, 1  ;;  %v3249_v60 = vshrl.u32 %v3186_v8, 16  ;;  %v3251_v48 = vshll.u32 %v3186_v8, 16  ;;  %v3255_v56 = vshll.u32 %v3233_v36, 16 }
 0x24d   : > { %v3473_v42 = vrot.slane %v3186_v8, 1  ;;  %v3474_v12 = vrot.slane %v3233_v36, 1  ;;  %v3556_v0 = vshrl.u32 %v3233_v36, 16  ;;  %v3729_v28 = vrot.slane %v3186_v8, 2 }
 0x24e   : > { %v1579_v19 = vshrl.u32 %v7001_v22, 16  ;;  %v7026_v58 = vsel %vm1068_vm0, 4286644096, %v3170_v59  ;;  %v3253_v33 = vrot.slane %v3251_v48, 1  ;;  %v3553_v3 = vrot.slane %v3249_v60, 1 }
 0x24f   : > { %v3554_v54 = vrot.slane %v3251_v48, 2  ;;  %v3257_v2 = vrot.slane %v3255_v56, 1  ;;  %v3558_v46 = vrot.slane %v3556_v0, 1  ;;  %v3559_v43 = vrot.slane %v3255_v56, 2 }
 0x250   : > { %v3730_v13 = vrot.slane %v3233_v36, 2  ;;  %v3254_v25 = vor.u32 %v3253_v33, %v3249_v60  ;;  %v3475_v9 = vsel %vm1359_vm2, %v3473_v42, %v3474_v12  ;;  %v1290_v21 = vor.u32 %v1289_v24, %v1285_v52 }
 0x251   : > { %v1293_v14 = vrot.slane %v1291_v39, 1  ;;  %v3555_v18 = vor.u32 %v3554_v54, %v3553_v3  ;;  %v3560_v49 = vor.u32 %v3559_v43, %v3558_v46  ;;  %v1576_v38 = vrot.slane %v1285_v52, 1 }
 0x252   : > { %v3731_v40 = vsel %vm1617_vm3, %v3729_v28, %v3730_v13  ;;  %v3258_v10 = vsel %vm1134_vm1, %v3254_v25, %v3257_v2  ;;  %v1577_v55 = vrot.slane %v1287_v31, 2  ;;  %v1581_v48 = vrot.slane %v1579_v19, 1 }
 0x253   : > { %v1294_v11 = vsel %vm1134_vm1, %v1290_v21, %v1293_v14  ;;  %v3425_v23 = vmax.bf16 %v3258_v10, %v3186_v8  ;;  %v1407_v33 = vsel %vm1359_vm2, %v1405_v57, %v1406_v1  ;;  %v1582_v36 = vrot.slane %v1291_v39, 2 }
 0x254   : > { %v1326_v0 = vmax.bf16 %v1294_v11, %v6998_v35  ;;  %v1578_v60 = vor.u32 %v1577_v55, %v1576_v38  ;;  %v1663_v24 = vrot.slane %v6998_v35, 2  ;;  %v1664_v46 = vrot.slane %v7001_v22, 2 }
 0x255   : > { %v3234_v28 = vsel %vm1068_vm0, %v3170_v59, 4286644096  ;;  %v3537_v54 = vmax.bf16 %v3475_v9, %v3425_v23  ;;  %v1583_v2 = vor.u32 %v1582_v36, %v1581_v48  ;;  %v3259_v25 = vshrl.u32 %v7026_v58, 16 }
 0x256   : > { %v1439_v43 = vmax.bf16 %v1407_v33, %v1326_v0  ;;  %v3561_v21 = vsel %vm1440_vm4, %v3555_v18, %v3560_v49  ;;  %v3261_v10 = vshll.u32 %v7026_v58, 16  ;;  %v3265_v11 = vshll.u32 %v3234_v28, 16 }
 0x257   : > { %v3476_v19 = vrot.slane %v7026_v58, 1  ;;  %v3713_v14 = vmax.bf16 %v3561_v21, %v3537_v54  ;;  %v1584_v55 = vsel %vm1440_vm4, %v1578_v60, %v1583_v2  ;;  %v3477_v38 = vrot.slane %v3234_v28, 1 }
 0x258   : > { %v3562_v35 = vrot.slane %v3259_v25, 1  ;;  %v1616_v22 = vmax.bf16 %v1584_v55, %v1439_v43  ;;  %v1665_v3 = vsel %vm1617_vm3, %v1663_v24, %v1664_v46  ;;  %v3263_v23 = vrot.slane %v3261_v10, 1 }
 0x259   : > { %v3563_v9 = vrot.slane %v3261_v10, 2  ;;  %v3793_v31 = vmax.bf16 %v3731_v40, %v3713_v14  ;;  %v3267_v52 = vrot.slane %v3265_v11, 1  ;;  %v3565_v39 = vshrl.u32 %v3234_v28, 16 }
 0x25a   : > { %v3568_v57 = vrot.slane %v3265_v11, 2  ;;  %v1697_v18 = vmax.bf16 %v1665_v3, %v1616_v22  ;;  %v3264_v49 = vor.u32 %v3263_v23, %v3259_v25  ;;  %v3478_v1 = vsel %vm1359_vm2, %v3476_v19, %v3477_v38 }
 0x25b   : > { %v3732_v59 = vrot.slane %v7026_v58, 2  ;;  %4883 = vmatprep.mubr.bf16.mxu0 %v3793_v31  ;;  %v3564_v8 = vor.u32 %v3563_v9, %v3562_v35  ;;  %v3567_v56 = vrot.slane %v3565_v39, 1  ;;  %v3733_v42 = vrot.slane %v3234_v28, 2 }
 0x25c   : > { %v2462_v12 = vmax.bf16 %v7015_v27, %v8201_v16  ;;  %4768 = vmatmul.mubr.bf16.gmra.mxu1 %v1697_v18  ;;  %v8207_v40 = vmax.bf16 %v6878_v50, %v6822_v37  ;;  %v2173_v48 = vmax.bf16 %v6994_v63, %v1697_v18  ;;  %v8208_v0 = vmax.bf16 %v6985_v44, %v6878_v50  ;;  %v8209_v27 = vld [vmem:[#allocation20_spill] sm:$0xff] }
 0x25d   : > { %v3268_v36 = vsel %vm1134_vm1, %v3264_v49, %v3267_v52  ;;  %v3569_v24 = vor.u32 %v3568_v57, %v3567_v56  ;;  %v7057_v46 = vsel %vm1617_vm3, %v3732_v59, %v3733_v42  ;;  %4835 = vmatprep.mubr.bf16.mxu1 %v6959_v15  ;;  %v8210_v28 = vrot.slane %v8209_v27, 1 }
 0x25e   : > { %v2160_v13 = vmax.bf16 %v8207_v40, %v1697_v18  ;;  %v2185_v33 = vmax.bf16 %v8208_v0, %v1697_v18  ;;  %v3426_v60 = vmax.bf16 %v3268_v36, %v7026_v58  ;;  %v8211_v37 = vrot.slane %v8201_v16, 1 }
 0x25f   : > { %v2216_v43 = vrot.slane %v2173_v48, 7  ;;  %v8212_v44 = vshll.u32 %v8201_v16, 16  ;;  %v8213_v21 = vshll.u32 %v8209_v27, 16  ;;  %v7088_v55 = vsel %vm1440_vm4, %v3564_v8, %v3569_v24 }
 0x260   : > { %v2520_v63 = vsel %vm1359_vm2, %v8211_v37, %v8210_v28  ;;  %v2215_v54 = vrot.slane %v2185_v33, 7  ;;  %v2217_v50 = vrot.slane %v2160_v13, 7  ;;  %v7069_v58 = vmax.bf16 %v3478_v1, %v3426_v60 }
 0x261   : > { %v7067_v2 = vrot.slane %v8212_v44, 2  ;;  %v7071_v25 = vmax.bf16 %v2520_v63, %v2462_v12  ;;  %v7075_v15 = vrot.slane %v8213_v21, 2  ;;  %v7082_v19 = vsel %vm1068_vm0, 4286644096, %v2216_v43 }
 0x262   : > { %v7079_v11 = vsel %vm1068_vm0, 4286644096, %v2215_v54  ;;  %v7085_v14 = vsel %vm1068_vm0, 4286644096, %v2217_v50  ;;  %v7091_v38 = vsel %vm1068_vm0, %v2215_v54, 4286644096 }
 0x263   : > { %v7094_v35 = vsel %vm1068_vm0, %v2216_v43, 4286644096  ;;  %v7097_v22 = vsel %vm1068_vm0, %v2217_v50, 4286644096  ;;  %v2412_v23 = vshrl.u32 %v7079_v11, 16  ;;  %v2414_v9 = vshll.u32 %v7079_v11, 16 }
 0x264   : > { %v2418_v31 = vshll.u32 %v7091_v38, 16  ;;  %v2422_v39 = vshrl.u32 %v7082_v19, 16  ;;  %v2424_v57 = vshll.u32 %v7082_v19, 16  ;;  %v2428_v18 = vshll.u32 %v7094_v35, 16  ;;  %4836 = vmatmul.mubr.bf16.vlgmr.msra.gmra.mxu1 %v6962_v4 }
 0x265   : > { %v2434_v49 = vshll.u32 %v7085_v14, 16  ;;  %v2416_v1 = vrot.slane %v2414_v9, 1  ;;  %v2432_v59 = vshrl.u32 %v7085_v14, 16  ;;  %v2438_v8 = vshll.u32 %v7097_v22, 16  ;;  %4839 = vmatprep.mubr.bf16.mxu1 %v6964_v45 }
 0x266   : > { %v2545_v56 = vrot.slane %v7079_v11, 1  ;;  %v2420_v42 = vrot.slane %v2418_v31, 1  ;;  %v2426_v12 = vrot.slane %v2424_v57, 1  ;;  %v2546_v13 = vrot.slane %v7091_v38, 1 }
 0x267   : > { %v2436_v40 = vrot.slane %v2434_v49, 1  ;;  %v2417_v48 = vor.u32 %v2416_v1, %v2412_v23  ;;  %v2430_v0 = vrot.slane %v2428_v18, 1  ;;  %v2548_v33 = vrot.slane %v7082_v19, 1 }
 0x268   : > { %v2549_v36 = vrot.slane %v7094_v35, 1  ;;  %v2427_v60 = vor.u32 %v2426_v12, %v2422_v39  ;;  %v2440_v28 = vrot.slane %v2438_v8, 1  ;;  %v2551_v37 = vrot.slane %v7085_v14, 1 }
 0x269   : > { %v2437_v24 = vor.u32 %v2436_v40, %v2432_v59  ;;  %v2421_v63 = vsel %vm1134_vm1, %v2417_v48, %v2420_v42  ;;  %v2547_v54 = vsel %vm1359_vm2, %v2545_v56, %v2546_v13  ;;  %v2552_v43 = vrot.slane %v7097_v22, 1 }
 0x26a   : > { %v2703_v50 = vrot.slane %v2412_v23, 1  ;;  %v2431_v44 = vsel %vm1134_vm1, %v2427_v60, %v2430_v0  ;;  %v2471_v1 = vmax.bf16 %v2421_v63, %v7079_v11  ;;  %v2704_v10 = vrot.slane %v2414_v9, 2 }
 0x26b   : > { %v2441_v21 = vsel %vm1134_vm1, %v2437_v24, %v2440_v28  ;;  %v2472_v12 = vmax.bf16 %v2431_v44, %v7082_v19  ;;  %v2550_v3 = vsel %vm1359_vm2, %v2548_v33, %v2549_v36  ;;  %v2706_v42 = vshrl.u32 %v7091_v38, 16 }
 0x26c   : > { %v2473_v40 = vmax.bf16 %v2441_v21, %v7085_v14  ;;  %v2553_v56 = vsel %vm1359_vm2, %v2551_v37, %v2552_v43  ;;  %v2583_v13 = vmax.bf16 %v2547_v54, %v2471_v1  ;;  %v2709_v48 = vrot.slane %v2418_v31, 2  ;;  %4840 = vmatmul.mubr.bf16.gmra.mxu1 %v6974_v53 }
 0x26d   : > { %v2712_v23 = vrot.slane %v2422_v39, 1  ;;  %v7130_v52 = vmax.bf16 %v2550_v3, %v2472_v12  ;;  %v2705_v0 = vor.u32 %v2704_v10, %v2703_v50  ;;  %v2708_v60 = vrot.slane %v2706_v42, 1  ;;  %v8215_v42 = vld [vmem:[#allocation23_spill] sm:$0xff] }
 0x26e   : > { %v2713_v24 = vrot.slane %v2424_v57, 2  ;;  %v2715_v9 = vshrl.u32 %v7094_v35, 16  ;;  %v2718_v28 = vrot.slane %v2428_v18, 2  ;;  %v7134_v63 = vrot.slane %v2432_v59, 1 }
 0x26f   : > { %v7136_v33 = vrot.slane %v2434_v49, 2  ;;  %v7138_v36 = vmax.bf16 %v2553_v56, %v2473_v40  ;;  %v2710_v37 = vor.u32 %v2709_v48, %v2708_v60  ;;  %v2724_v31 = vshrl.u32 %v7097_v22, 16  ;;  %v8218_v60 = vld [vmem:[#allocation26_spill] sm:$0xff] }
 0x270   : > { %v7141_v39 = vrot.slane %v2438_v8, 2  ;;  %v2714_v3 = vor.u32 %v2713_v24, %v2712_v23  ;;  %v2717_v10 = vrot.slane %v2715_v9, 1  ;;  %v2801_v57 = vrot.slane %v7079_v11, 2  ;;  %v8216_v23 = vld [vmem:[#allocation24_spill] sm:$0xff] }
 0x271   : > { %v2802_v54 = vrot.slane %v7091_v38, 2  ;;  %v2711_v43 = vsel %vm1440_vm4, %v2705_v0, %v2710_v37  ;;  %v7146_v18 = vrot.slane %v2724_v31, 1  ;;  %v2804_v49 = vrot.slane %v7082_v19, 2  ;;  %v8222_v31 = vld [vmem:[#allocation25_spill] sm:$0xff] }
 0x272   : > { %v2805_v59 = vrot.slane %v7094_v35, 2  ;;  %v2719_v50 = vor.u32 %v2718_v28, %v2717_v10  ;;  %v2723_v44 = vor.u32 %v7136_v33, %v7134_v63  ;;  %v2759_v8 = vmax.bf16 %v2711_v43, %v2583_v13 }
 0x273   : > { %v2803_v21 = vsel %vm1617_vm3, %v2801_v57, %v2802_v54  ;;  %v2728_v11 = vor.u32 %v7141_v39, %v7146_v18  ;;  %v2807_v1 = vrot.slane %v7085_v14, 2  ;;  %v8214_v19 = vmax.bf16 %v7088_v55, %v7069_v58 }
 0x274   : > { %v7156_v38 = vsel %vm1617_vm3, %v2804_v49, %v2805_v59  ;;  %v7164_v12 = vsel %vm1440_vm4, %v2714_v3, %v2719_v50  ;;  %v2808_v40 = vrot.slane %v7097_v22, 2  ;;  %v2629_v56 = vor.u32 %v7075_v15, %v8215_v42  ;;  %v8225_v49 = vld [vmem:[#allocation27_spill] sm:$0xff] }
 0x275   : > { %v3794_v35 = vmax.bf16 %v7057_v46, %v8214_v19  ;;  %v2775_v13 = vrot.slane %v8209_v27, 2  ;;  %v7170_v48 = vmax.bf16 %v2803_v21, %v2759_v8  ;;  %v8217_v0 = vshrl.u32 %v8216_v23, 16  ;;  %v8227_v21 = vld [vmem:[#allocation28_spill] sm:$0xff] }
 0x276   : > { %v2521_v58 = vrot.slane %v8216_v23, 1  ;;  %v2760_v9 = vmax.bf16 %v7164_v12, %v7130_v52  ;;  %v8220_v15 = vor.u32 %v7067_v2, %v7007_v61  ;;  %v8221_v28 = vshll.u32 %v8216_v23, 16  ;;  %v8249_v12 = vld [vmem:[#allocation32_spill] sm:$0xff] }
 0x277   : > { %4884 = vmatmul.mubr.bf16.vlgmr.msra.gmra.mxu0 %v3794_v35  ;;  %v2337_v24 = vor.u32 %v8218_v60, %v8217_v0  ;;  %v8219_v46 = vmov %v8217_v0  ;;  %v8223_v3 = vshll.u32 %v8222_v31, 16  ;;  %v8224_v54 = vrot.slane %v8201_v16, 2 }
 0x278   : > { %v2631_v55 = vrot.slane %v8219_v46, 1  ;;  %v2630_v27 = vsel %vm1440_vm4, %v8220_v15, %v2629_v56  ;;  %v2632_v37 = vrot.slane %v8221_v28, 2  ;;  %v8226_v50 = vrot.slane %v8222_v31, 1 }
 0x279   : > { %v2637_v10 = vrot.slane %v8223_v3, 2  ;;  %v2750_v57 = vmax.bf16 %v2630_v27, %v7071_v25  ;;  %v2776_v43 = vsel %vm1617_vm3, %v8224_v54, %v2775_v13  ;;  %v2341_v59 = vsel %vm1134_vm1, %v2337_v24, %v8225_v49 }
 0x27a   : > { %v2523_v61 = vsel %vm1359_vm2, %v2521_v58, %v8226_v50  ;;  %v2463_v2 = vmax.bf16 %v2341_v59, %v8216_v23  ;;  %v2633_v8 = vor.u32 %v2632_v37, %v2631_v55  ;;  %v2777_v35 = vrot.slane %v8216_v23, 2 }
 0x27b   : > { %v2638_v19 = vor.u32 %v2637_v10, %v8227_v21  ;;  %v7200_v42 = vmax.bf16 %v2776_v43, %v2750_v57  ;;  %v2778_v16 = vrot.slane %v8222_v31, 2  ;;  %v3101_v25 = vmax.bf16 %v6964_v45, %v6962_v4 }
 0x27c   : > { %v8228_v56 = vshrl.u32 %v6610_v17, 16  ;;  %v2575_v0 = vmax.bf16 %v2523_v61, %v2463_v2  ;;  %v2524_v24 = vrot.slane %v6610_v17, 1  ;;  %v8230_v28 = vrot.slane %v6613_v7, 1 }
 0x27d   : > { %v2639_v60 = vsel %vm1440_vm4, %v2633_v8, %v2638_v19  ;;  %v3141_v23 = vmax.bf16 %v7010_v5, %v7200_v42  ;;  %v2779_v55 = vsel %vm1617_vm3, %v2777_v35, %v2778_v16  ;;  %v3115_v15 = vmax.bf16 %v3101_v25, %v6974_v53  ;;  %4843 = vmatprep.mubr.bf16.mxu1 %v7200_v42 }
 0x27e   : > { %v2347_v13 = vor.u32 %v6626_v29, %v8228_v56  ;;  %v8229_v58 = vmov %v8228_v56  ;;  %v2751_v29 = vmax.bf16 %v2639_v60, %v2575_v0  ;;  %v2526_v37 = vsel %vm1359_vm2, %v2524_v24, %v8230_v28 }
 0x27f   : > { %v2640_v46 = vrot.slane %v8229_v58, 1  ;;  %v8231_v31 = vshll.u32 %v6610_v17, 16  ;;  %v3171_v5 = vrot.slane %v3141_v23, 7  ;;  %v3129_v10 = vmax.bf16 %v3115_v15, %v7200_v42 }
 0x280   : > { %v2351_v4 = vsel %vm1134_vm1, %v2347_v13, %v6630_v20  ;;  %v8232_v57 = vshll.u32 %v6613_v7, 16  ;;  %v2780_v20 = vrot.slane %v6610_v17, 2  ;;  %v7229_v43 = vmax.bf16 %v2779_v55, %v2751_v29 }
 0x281   : > { %v2464_v27 = vmax.bf16 %v2351_v4, %v6610_v17  ;;  %v2641_v3 = vrot.slane %v8231_v31, 2  ;;  %v2781_v50 = vrot.slane %v6613_v7, 2  ;;  %v3192_v61 = vsel %vm1068_vm0, 4286644096, %v3171_v5 }
 0x282   : > { %v2646_v54 = vrot.slane %v8232_v57, 2  ;;  %v3235_v2 = vsel %vm1068_vm0, %v3171_v5, 4286644096  ;;  %v3102_v21 = vmax.bf16 %v6974_v53, %v6964_v45  ;;  %v3269_v19 = vshrl.u32 %v3192_v61, 16  ;;  %4844 = vmatmul.mubr.bf16.gmra.mxu1 %v7229_v43 }
 0x283   : > { %v2576_v49 = vmax.bf16 %v2526_v37, %v2464_v27  ;;  %v2642_v59 = vor.u32 %v2641_v3, %v2640_v46  ;;  %v3271_v35 = vshll.u32 %v3192_v61, 16  ;;  %v3275_v16 = vshll.u32 %v3235_v2, 16 }
 0x284   : > { %v2647_v8 = vor.u32 %v2646_v54, %v6659_v30  ;;  %v3479_v25 = vrot.slane %v3192_v61, 1  ;;  %v3480_v17 = vrot.slane %v3235_v2, 1  ;;  %v3574_v56 = vshrl.u32 %v3235_v2, 16 }
 0x285   : > { %v3735_v13 = vrot.slane %v3192_v61, 2  ;;  %v3736_v0 = vrot.slane %v3235_v2, 2  ;;  %v3273_v7 = vrot.slane %v3271_v35, 1  ;;  %v3277_v60 = vrot.slane %v3275_v16, 1 }
 0x286   : > { %v3571_v24 = vrot.slane %v3269_v19, 1  ;;  %v3572_v58 = vrot.slane %v3271_v35, 2  ;;  %v3481_v46 = vsel %vm1359_vm2, %v3479_v25, %v3480_v17  ;;  %v3576_v30 = vrot.slane %v3574_v56, 1 }
 0x287   : > { %v3577_v23 = vrot.slane %v3275_v16, 2  ;;  %v3737_v45 = vsel %vm1617_vm3, %v3735_v13, %v3736_v0  ;;  %v3274_v55 = vor.u32 %v3273_v7, %v3269_v19  ;;  %v3142_v4 = vmax.bf16 %v3129_v10, %v7229_v43 }
 0x288   : > { %v3573_v15 = vor.u32 %v3572_v58, %v3571_v24  ;;  %v2648_v29 = vsel %vm1440_vm4, %v2642_v59, %v2647_v8  ;;  %v2782_v37 = vsel %vm1617_vm3, %v2780_v20, %v2781_v50  ;;  %v3116_v31 = vmax.bf16 %v3102_v21, %v7200_v42 }
 0x289   : > { %v3578_v27 = vor.u32 %v3577_v23, %v3576_v30  ;;  %v2752_v28 = vmax.bf16 %v2648_v29, %v2576_v49  ;;  %v3278_v3 = vsel %vm1134_vm1, %v3274_v55, %v3277_v60  ;;  %v3172_v5 = vrot.slane %v3142_v4, 7 }
 0x28a   : > { %v8233_v57 = vshrl.u32 %v6665_v47, 16  ;;  %v2527_v2 = vrot.slane %v6665_v47, 1  ;;  %v3427_v19 = vmax.bf16 %v3278_v3, %v3192_v61  ;;  %v3130_v49 = vmax.bf16 %v3116_v31, %v7229_v43 }
 0x28b   : > { %v3579_v10 = vsel %vm1440_vm4, %v3573_v15, %v3578_v27  ;;  %v7250_v35 = vmax.bf16 %v2782_v37, %v2752_v28  ;;  %v3195_v20 = vsel %vm1068_vm0, 4286644096, %v3172_v5  ;;  %v3236_v59 = vsel %vm1068_vm0, %v3172_v5, 4286644096 }
 0x28c   : > { %v2357_v54 = vor.u32 %v6681_v51, %v8233_v57  ;;  %v8234_v8 = vrot.slane %v6668_v32, 1  ;;  %v3539_v21 = vmax.bf16 %v3481_v46, %v3427_v19  ;;  %v3279_v16 = vshrl.u32 %v3195_v20, 16 }
 0x28d   : > { %v3281_v61 = vshll.u32 %v3195_v20, 16  ;;  %v3285_v25 = vshll.u32 %v3236_v59, 16  ;;  %4847 = vmatprep.mubr.bf16.mxu1 %v7250_v35  ;;  %v3482_v17 = vrot.slane %v3195_v20, 1  ;;  %v3483_v56 = vrot.slane %v3236_v59, 1 }
 0x28e   : > { %v2361_v50 = vsel %vm1134_vm1, %v2357_v54, %v6686_v26  ;;  %v2529_v51 = vsel %vm1359_vm2, %v2527_v2, %v8234_v8  ;;  %v3583_v13 = vshrl.u32 %v3236_v59, 16  ;;  %v3738_v0 = vrot.slane %v3195_v20, 2 }
 0x28f   : > { %v3715_v7 = vmax.bf16 %v3579_v10, %v3539_v21  ;;  %v3283_v60 = vrot.slane %v3281_v61, 1  ;;  %v3287_v24 = vrot.slane %v3285_v25, 1  ;;  %v3580_v58 = vrot.slane %v3279_v16, 1 }
 0x290   : > { %v3484_v26 = vsel %vm1359_vm2, %v3482_v17, %v3483_v56  ;;  %v3581_v30 = vrot.slane %v3281_v61, 2  ;;  %v3585_v23 = vrot.slane %v3583_v13, 1  ;;  %v3586_v55 = vrot.slane %v3285_v25, 2 }
 0x291   : > { %v3795_v15 = vmax.bf16 %v3737_v45, %v3715_v7  ;;  %v3284_v46 = vor.u32 %v3283_v60, %v3279_v16  ;;  %v3739_v4 = vrot.slane %v3236_v59, 2  ;;  %v3143_v29 = vmax.bf16 %v3130_v49, %v7250_v35 }
 0x292   : > { %v3582_v27 = vor.u32 %v3581_v30, %v3580_v58  ;;  %v3587_v28 = vor.u32 %v3586_v55, %v3585_v23  ;;  %v2465_v37 = vmax.bf16 %v2361_v50, %v6665_v47  ;;  %v8235_v31 = vmov %v8233_v57 }
 0x293   : > { %v2649_v3 = vrot.slane %v8235_v31, 1  ;;  %4887 = vmatprep.mubr.bf16.mxu0 %v3795_v15  ;;  %v3288_v5 = vsel %vm1134_vm1, %v3284_v46, %v3287_v24  ;;  %v3740_v57 = vsel %vm1617_vm3, %v3738_v0, %v3739_v4  ;;  %v3173_v54 = vrot.slane %v3143_v29, 7 }
 0x294   : > { %v8236_v2 = vshll.u32 %v6665_v47, 16  ;;  %v3428_v19 = vmax.bf16 %v3288_v5, %v3195_v20  ;;  %v3588_v10 = vsel %vm1440_vm4, %v3582_v27, %v3587_v28  ;;  %v2577_v49 = vmax.bf16 %v2529_v51, %v2465_v37 }
 0x295   : > { %v8237_v59 = vshll.u32 %v6668_v32, 16  ;;  %v3198_v50 = vsel %vm1068_vm0, 4286644096, %v3173_v54  ;;  %v3237_v21 = vsel %vm1068_vm0, %v3173_v54, 4286644096  ;;  %v2783_v61 = vrot.slane %v6665_v47, 2 }
 0x296   : > { %v2650_v45 = vrot.slane %v8236_v2, 2  ;;  %v3540_v25 = vmax.bf16 %v3484_v26, %v3428_v19  ;;  %v3289_v17 = vshrl.u32 %v3198_v50, 16  ;;  %v3291_v56 = vshll.u32 %v3198_v50, 16 }
 0x297   : > { %v2655_v8 = vrot.slane %v8237_v59, 2  ;;  %v3295_v13 = vshll.u32 %v3237_v21, 16  ;;  %v3485_v0 = vrot.slane %v3198_v50, 1  ;;  %v3486_v7 = vrot.slane %v3237_v21, 1 }
 0x298   : > { %v2651_v16 = vor.u32 %v2650_v45, %v2649_v3  ;;  %v3592_v20 = vshrl.u32 %v3237_v21, 16  ;;  %v3741_v60 = vrot.slane %v3198_v50, 2  ;;  %v3716_v24 = vmax.bf16 %v3588_v10, %v3540_v25 }
 0x299   : > { %v3293_v51 = vrot.slane %v3291_v56, 1  ;;  %v3297_v58 = vrot.slane %v3295_v13, 1  ;;  %v3589_v30 = vrot.slane %v3289_v17, 1  ;;  %v3487_v23 = vsel %vm1359_vm2, %v3485_v0, %v3486_v7 }
 0x29a   : > { %v3590_v55 = vrot.slane %v3291_v56, 2  ;;  %v3594_v15 = vrot.slane %v3592_v20, 1  ;;  %v3595_v46 = vrot.slane %v3295_v13, 2  ;;  %v3796_v4 = vmax.bf16 %v3740_v57, %v3716_v24 }
 0x29b   : > { %v3294_v29 = vor.u32 %v3293_v51, %v3289_v17  ;;  %v3742_v47 = vrot.slane %v3237_v21, 2  ;;  %v2656_v26 = vor.u32 %v2655_v8, %v6706_v62  ;;  %v2784_v37 = vrot.slane %v6668_v32, 2  ;;  %v8241_v17 = vld [vmem:[#allocation29_spill] sm:$0xff] }
 0x29c   : > { %v3591_v27 = vor.u32 %v3590_v55, %v3589_v30  ;;  %v3596_v28 = vor.u32 %v3595_v46, %v3594_v15  ;;  %v3103_v31 = vmax.bf16 %v7200_v42, %v6974_v53  ;;  %4888 = vmatmul.mubr.bf16.gmra.mxu0 %v3796_v4  ;;  %v8238_v57 = vshrl.u32 %v6714_v6, 16  ;;  %v8244_v30 = vld [vmem:[#allocation30_spill] sm:$0xff]  ;;  %v8245_v15 = vld [vmem:[#allocation31_spill] sm:$0xff]  ;;  %v8247_v4 = vld [vmem:[#allocation33_spill] sm:$0xff] }
 0x29d   : > { %v3298_v3 = vsel %vm1134_vm1, %v3294_v29, %v3297_v58  ;;  %v3743_v5 = vsel %vm1617_vm3, %v3741_v60, %v3742_v47  ;;  %v2657_v54 = vsel %vm1440_vm4, %v2651_v16, %v2656_v26  ;;  %v2785_v32 = vsel %vm1617_vm3, %v2783_v61, %v2784_v37 }
 0x29e   : > { %v2367_v2 = vor.u32 %v6730_v41, %v8238_v57  ;;  %v3429_v45 = vmax.bf16 %v3298_v3, %v3198_v50  ;;  %v3597_v62 = vsel %vm1440_vm4, %v3591_v27, %v3596_v28  ;;  %v2753_v19 = vmax.bf16 %v2657_v54, %v2577_v49 }
 0x29f   : > { %v3117_v10 = vmax.bf16 %v3103_v31, %v7229_v43  ;;  %v2530_v59 = vrot.slane %v6714_v6, 1  ;;  %v8239_v8 = vmov %v8238_v57  ;;  %v8240_v50 = vshll.u32 %v6714_v6, 16  ;;  %v8248_v31 = vld [vmem:[#allocation34_spill] sm:$0xff] }
 0x2a0   : > { %v2371_v53 = vsel %vm1134_vm1, %v2367_v2, %v6737_v34  ;;  %v2658_v21 = vrot.slane %v8239_v8, 1  ;;  %v3541_v16 = vmax.bf16 %v3487_v23, %v3429_v45  ;;  %v7295_v25 = vmax.bf16 %v2785_v32, %v2753_v19 }
 0x2a1   : > { %v2466_v41 = vmax.bf16 %v2371_v53, %v6714_v6  ;;  %v2659_v49 = vrot.slane %v8240_v50, 2  ;;  %v3131_v61 = vmax.bf16 %v3117_v10, %v7250_v35  ;;  %v8242_v56 = vrot.slane %v8241_v17, 1 }
 0x2a2   : > { %v8243_v34 = vshll.u32 %v8241_v17, 16  ;;  %v2786_v7 = vrot.slane %v6714_v6, 2  ;;  %v3717_v20 = vmax.bf16 %v3597_v62, %v3541_v16  ;;  %v2787_v51 = vrot.slane %v8241_v17, 2  ;;  %4848 = vmatmul.mubr.bf16.gmra.mxu1 %v7295_v25 }
 0x2a3   : > { %v2532_v13 = vsel %vm1359_vm2, %v2530_v59, %v8242_v56  ;;  %v2660_v24 = vor.u32 %v2659_v49, %v2658_v21  ;;  %v3144_v58 = vmax.bf16 %v3131_v61, %v7295_v25  ;;  %v3104_v55 = vmax.bf16 %v7229_v43, %v7200_v42 }
 0x2a4   : > { %v2664_v0 = vrot.slane %v8243_v34, 2  ;;  %v2578_v60 = vmax.bf16 %v2532_v13, %v2466_v41  ;;  %v8246_v46 = vshrl.u32 %v8245_v15, 16  ;;  %v7320_v6 = vmax.bf16 %v7156_v38, %v2760_v9 }
 0x2a5   : > { %v3797_v47 = vmax.bf16 %v3743_v5, %v3717_v20  ;;  %v2788_v26 = vsel %vm1617_vm3, %v2786_v7, %v2787_v51  ;;  %v2533_v27 = vrot.slane %v8245_v15, 1  ;;  %v3174_v28 = vrot.slane %v3144_v58, 7 }
 0x2a6   : > { %v2665_v23 = vor.u32 %v2664_v0, %v8244_v30  ;;  %v2377_v29 = vor.u32 %v8247_v4, %v8246_v46  ;;  %v3118_v42 = vmax.bf16 %v3104_v55, %v7250_v35  ;;  %v8250_v38 = vrot.slane %v8249_v12, 1  ;;  %v7344_v30 = vpop.f32.mrf.mxu0 }
 0x2a7   : > { %4891 = vmatprep.mubr.bf16.mxu0 %v3797_v47  ;;  %v8251_v5 = vmov %v8246_v46  ;;  %v3201_v2 = vsel %vm1068_vm0, 4286644096, %v3174_v28  ;;  %v3238_v45 = vsel %vm1068_vm0, %v3174_v28, 4286644096  ;;  %v8252_v19 = vshll.u32 %v8245_v15, 16  ;;  %v8254_v46 = vld [vmem:[#allocation37_spill] sm:$0xff] }
 0x2a8   : > { %v2666_v37 = vsel %vm1440_vm4, %v2660_v24, %v2665_v23  ;;  %v2381_v3 = vsel %vm1134_vm1, %v2377_v29, %v8248_v31  ;;  %v2535_v9 = vsel %vm1359_vm2, %v2533_v27, %v8250_v38  ;;  %v2667_v57 = vrot.slane %v8251_v5, 1 }
 0x2a9   : > { %v2754_v54 = vmax.bf16 %v2666_v37, %v2578_v60  ;;  %v2467_v52 = vmax.bf16 %v2381_v3, %v8245_v15  ;;  %v3132_v62 = vmax.bf16 %v3118_v42, %v7295_v25  ;;  %v2668_v32 = vrot.slane %v8252_v19, 2  ;;  %v8255_v3 = vld [vmem:[#allocation35_spill] sm:$0xff] }
 0x2aa   : > { %v3299_v10 = vshrl.u32 %v3201_v2, 16  ;;  %v3301_v53 = vshll.u32 %v3201_v2, 16  ;;  %v3305_v59 = vshll.u32 %v3238_v45, 16  ;;  %v3488_v8 = vrot.slane %v3201_v2, 1 }
 0x2ab   : > { %v3489_v21 = vrot.slane %v3238_v45, 1  ;;  %v3601_v16 = vshrl.u32 %v3238_v45, 16  ;;  %v3744_v41 = vrot.slane %v3201_v2, 2  ;;  %v8253_v50 = vshll.u32 %v8249_v12, 16 }
 0x2ac   : > { %v3303_v61 = vrot.slane %v3301_v53, 1  ;;  %v3598_v17 = vrot.slane %v3299_v10, 1  ;;  %v3599_v56 = vrot.slane %v3301_v53, 2  ;;  %v3745_v13 = vrot.slane %v3238_v45, 2 }
 0x2ad   : > { %v2673_v49 = vrot.slane %v8253_v50, 2  ;;  %v3307_v34 = vrot.slane %v3305_v59, 1  ;;  %v3490_v0 = vsel %vm1359_vm2, %v3488_v8, %v3489_v21  ;;  %v3603_v7 = vrot.slane %v3601_v16, 1  ;;  %v7372_v8 = vpop.f32.mrf.mxu1 }
 0x2ae   : > { %v3604_v20 = vrot.slane %v3305_v59, 2  ;;  %v3304_v60 = vor.u32 %v3303_v61, %v3299_v10  ;;  %v3600_v24 = vor.u32 %v3599_v56, %v3598_v17  ;;  %v7342_v51 = vmax.bf16 %v2788_v26, %v2754_v54 }
 0x2af   : > { %v2579_v58 = vmax.bf16 %v2535_v9, %v2467_v52  ;;  %v2669_v55 = vor.u32 %v2668_v32, %v2667_v57  ;;  %v2674_v4 = vor.u32 %v2673_v49, %v8254_v46  ;;  %v2789_v29 = vrot.slane %v8245_v15, 2  ;;  %v8257_v52 = vld [vmem:[#allocation38_spill] sm:$0xff]  ;;  %v7361_v57 = vpop.f32.mrf.mxu0  ;;  %v7381_v46 = vpop.f32.mrf.mxu1 }
 0x2b0   : > { %v3605_v23 = vor.u32 %v3604_v20, %v3603_v7  ;;  %v3308_v47 = vsel %vm1134_vm1, %v3304_v60, %v3307_v34  ;;  %v3145_v27 = vmax.bf16 %v3132_v62, %v7342_v51  ;;  %v2790_v28 = vrot.slane %v8249_v12, 2  ;;  %4851 = vmatprep.mubr.bf16.mxu1 %v7342_v51 }
 0x2b1   : > { %v3105_v37 = vmax.bf16 %v7250_v35, %v7229_v43  ;;  %v3430_v26 = vmax.bf16 %v3308_v47, %v3201_v2  ;;  %v3746_v42 = vsel %vm1617_vm3, %v3744_v41, %v3745_v13  ;;  %v2675_v31 = vsel %vm1440_vm4, %v2669_v55, %v2674_v4  ;;  %v8258_v2 = vld [vmem:[#allocation39_spill] sm:$0xff]  ;;  %v7379_v34 = vpop.f32.mrf.mxu0 }
 0x2b2   : > { %v8256_v54 = vshrl.u32 %v8255_v3, 16  ;;  %v3606_v38 = vsel %vm1440_vm4, %v3600_v24, %v3605_v23  ;;  %v3175_v9 = vrot.slane %v3145_v27, 7  ;;  %v2755_v5 = vmax.bf16 %v2675_v31, %v2579_v58 }
 0x2b3   : > { %v3119_v12 = vmax.bf16 %v3105_v37, %v7295_v25  ;;  %v3542_v43 = vmax.bf16 %v3490_v0, %v3430_v26  ;;  %v2791_v45 = vsel %vm1617_vm3, %v2789_v29, %v2790_v28  ;;  %v2536_v19 = vrot.slane %v8255_v3, 1 }
 0x2b4   : > { %v2387_v15 = vor.u32 %v8257_v52, %v8256_v54  ;;  %v3204_v32 = vsel %vm1068_vm0, 4286644096, %v3175_v9  ;;  %v3239_v10 = vsel %vm1068_vm0, %v3175_v9, 4286644096  ;;  %v7369_v53 = vmax.bf16 %v2791_v45, %v2755_v5  ;;  %v8261_v9 = vld [vmem:[#allocation36_spill] sm:$0xff] }
 0x2b5   : > { %v3133_v59 = vmax.bf16 %v3119_v12, %v7342_v51  ;;  %v3718_v21 = vmax.bf16 %v3606_v38, %v3542_v43  ;;  %v3309_v16 = vshrl.u32 %v3204_v32, 16  ;;  %v3311_v41 = vshll.u32 %v3204_v32, 16 }
 0x2b6   : > { %v2391_v62 = vsel %vm1134_vm1, %v2387_v15, %v8258_v2  ;;  %v3315_v50 = vshll.u32 %v3239_v10, 16  ;;  %v3491_v49 = vrot.slane %v3204_v32, 1  ;;  %v3492_v61 = vrot.slane %v3239_v10, 1  ;;  %4852 = vmatmul.mubr.bf16.gmra.mxu1 %v7369_v53 }
 0x2b7   : > { %v3610_v17 = vshrl.u32 %v3239_v10, 16  ;;  %v8259_v56 = vmov %v8256_v54  ;;  %v3798_v0 = vmax.bf16 %v3746_v42, %v3718_v21  ;;  %v3313_v7 = vrot.slane %v3311_v41, 1  ;;  %v7388_v54 = vpop.f32.mrf.mxu0 }
 0x2b8   : > { %v7376_v13 = vrot.slane %v8259_v56, 1  ;;  %v3607_v20 = vrot.slane %v3309_v16, 1  ;;  %v3747_v60 = vrot.slane %v3204_v32, 2  ;;  %v3317_v24 = vrot.slane %v3315_v50, 1 }
 0x2b9   : > { %v3608_v58 = vrot.slane %v3311_v41, 2  ;;  %v3612_v23 = vrot.slane %v3610_v17, 1  ;;  %v3613_v55 = vrot.slane %v3315_v50, 2  ;;  %4892 = vmatmul.mubr.bf16.gmra.mxu0 %v3798_v0  ;;  %v3314_v4 = vor.u32 %v3313_v7, %v3309_v16  ;;  %v7404_v17 = vpop.f32.mrf.mxu0 }
 0x2ba   : > { %v3748_v29 = vrot.slane %v3239_v10, 2  ;;  %v3146_v47 = vmax.bf16 %v3133_v59, %v7369_v53  ;;  %v2468_v27 = vmax.bf16 %v2391_v62, %v8255_v3  ;;  %v3493_v28 = vsel %vm1359_vm2, %v3491_v49, %v3492_v61  ;;  %v7397_v10 = vpop.f32.mrf.mxu1 }
 0x2bb   : > { %v3609_v37 = vor.u32 %v3608_v58, %v3607_v20  ;;  %v3614_v26 = vor.u32 %v3613_v55, %v3612_v23  ;;  %v8260_v42 = vshll.u32 %v8255_v3, 16  ;;  %v3318_v52 = vsel %vm1134_vm1, %v3314_v4, %v3317_v24 }
 0x2bc   : > { %v3749_v15 = vsel %vm1617_vm3, %v3747_v60, %v3748_v29  ;;  %v3176_v38 = vrot.slane %v3146_v47, 7  ;;  %v8262_v5 = vrot.slane %v8261_v9, 1  ;;  %v3431_v43 = vmax.bf16 %v3318_v52, %v3204_v32  ;;  %v7407_v23 = vpop.f32.mrf.mxu1 }
 0x2bd   : > { %v2677_v31 = vrot.slane %v8260_v42, 2  ;;  %v3615_v45 = vsel %vm1440_vm4, %v3609_v37, %v3614_v26  ;;  %v8263_v16 = vshll.u32 %v8261_v9, 16  ;;  %v2792_v50 = vrot.slane %v8255_v3, 2  ;;  %v8264_v37 = vld [vmem:[#allocation40_spill] sm:$0xff]  ;;  %v7411_v42 = vpop.f32.mrf.mxu0 }
 0x2be   : > { %v2538_v12 = vsel %vm1359_vm2, %v2536_v19, %v8262_v5  ;;  %v3207_v59 = vsel %vm1068_vm0, 4286644096, %v3176_v38  ;;  %v3240_v21 = vsel %vm1068_vm0, %v3176_v38, 4286644096  ;;  %v3543_v49 = vmax.bf16 %v3493_v28, %v3431_v43  ;;  %v8265_v43 = vld [vmem:[#allocation41_spill] sm:$0xff] }
 0x2bf   : > { %v2580_v2 = vmax.bf16 %v2538_v12, %v2468_v27  ;;  %v2678_v62 = vor.u32 %v2677_v31, %v7376_v13  ;;  %v2682_v41 = vrot.slane %v8263_v16, 2  ;;  %v3319_v61 = vshrl.u32 %v3207_v59, 16  ;;  %v8267_v16 = vld [vmem:[#allocation43_spill] sm:$0xff] }
 0x2c0   : > { %v3321_v19 = vshll.u32 %v3207_v59, 16  ;;  %v3325_v32 = vshll.u32 %v3240_v21, 16  ;;  %v3494_v56 = vrot.slane %v3207_v59, 1  ;;  %v3495_v0 = vrot.slane %v3240_v21, 1 }
 0x2c1   : > { %v3619_v13 = vshrl.u32 %v3240_v21, 16  ;;  %v2793_v7 = vrot.slane %v8261_v9, 2  ;;  %v3719_v20 = vmax.bf16 %v3615_v45, %v3543_v49  ;;  %v3616_v24 = vrot.slane %v3319_v61, 1 }
 0x2c2   : > { %v3323_v60 = vrot.slane %v3321_v19, 1  ;;  %v3750_v58 = vrot.slane %v3207_v59, 2  ;;  %v3327_v55 = vrot.slane %v3325_v32, 1  ;;  %v3617_v4 = vrot.slane %v3321_v19, 2 }
 0x2c3   : > { %v3621_v3 = vrot.slane %v3619_v13, 1  ;;  %v3622_v29 = vrot.slane %v3325_v32, 2  ;;  %v3799_v47 = vmax.bf16 %v3749_v15, %v3719_v20  ;;  %v3496_v28 = vsel %vm1359_vm2, %v3494_v56, %v3495_v0  ;;  %v7432_v20 = vpop.f32.mrf.mxu0 }
 0x2c4   : > { %v3324_v27 = vor.u32 %v3323_v60, %v3319_v61  ;;  %v2683_v26 = vor.u32 %v2682_v41, %v8264_v37  ;;  %v3618_v31 = vor.u32 %v3617_v4, %v3616_v24  ;;  %v3751_v38 = vrot.slane %v3240_v21, 2  ;;  %v7421_v41 = vpop.f32.mrf.mxu1 }
 0x2c5   : > { %v3623_v52 = vor.u32 %v3622_v29, %v3621_v3  ;;  %v3106_v9 = vmax.bf16 %v7295_v25, %v7250_v35  ;;  %4895 = vmatprep.mubr.bf16.mxu0 %v3799_v47  ;;  %v2794_v15 = vsel %vm1617_vm3, %v2792_v50, %v2793_v7  ;;  %v8266_v45 = vshrl.u32 %v8265_v43, 16  ;;  %v8268_v35 = vld [vmem:[#allocation44_spill] sm:$0xff] }
 0x2c6   : > { %v3328_v5 = vsel %vm1134_vm1, %v3324_v27, %v3327_v55  ;;  %v2684_v12 = vsel %vm1440_vm4, %v2678_v62, %v2683_v26  ;;  %v2539_v0 = vrot.slane %v8265_v43, 1  ;;  %v8270_v13 = vshll.u32 %v8265_v43, 16  ;;  %v8271_v55 = vld [vmem:[#allocation42_spill] sm:$0xff]  ;;  %v7444_v26 = vpop.f32.mrf.mxu1 }
 0x2c7   : > { %v2397_v49 = vor.u32 %v8267_v16, %v8266_v45  ;;  %v3432_v61 = vmax.bf16 %v3328_v5, %v3207_v59  ;;  %v3624_v19 = vsel %vm1440_vm4, %v3618_v31, %v3623_v52  ;;  %v2756_v21 = vmax.bf16 %v2684_v12, %v2580_v2  ;;  %v8274_v12 = vld [vmem:[#allocation45_spill] sm:$0xff]  ;;  %v8275_v16 = vld [vmem:[#allocation47_spill] sm:$0xff] }
 0x2c8   : > { %v3120_v32 = vmax.bf16 %v3106_v9, %v7342_v51  ;;  %v8269_v62 = vmov %v8266_v45  ;;  %v2686_v7 = vrot.slane %v8270_v13, 2  ;;  %v8272_v4 = vrot.slane %v8271_v55, 1  ;;  %v8284_v13 = vld [vmem:[#allocation15_spill] sm:$0xff] }
 0x2c9   : > { %v2401_v56 = vsel %vm1134_vm1, %v2397_v49, %v8268_v35  ;;  %v2685_v50 = vrot.slane %v8269_v62, 1  ;;  %v3544_v60 = vmax.bf16 %v3496_v28, %v3432_v61  ;;  %v7434_v59 = vmax.bf16 %v2794_v15, %v2756_v21  ;;  %v8276_v49 = vld [vmem:[#allocation46_spill] sm:$0xff]  ;;  %v8279_v21 = vld [vmem:[#allocation17_spill] sm:$0xff]  ;;  %v7460_v35 = vpop.f32.mrf.mxu0 }
 0x2ca   : > { %v3134_v2 = vmax.bf16 %v3120_v32, %v7369_v53  ;;  %v2469_v24 = vmax.bf16 %v2401_v56, %v8265_v43  ;;  %v2541_v3 = vsel %vm1359_vm2, %v2539_v0, %v8272_v4  ;;  %v8273_v47 = vshll.u32 %v8271_v55, 16  ;;  %v8278_v61 = vld [vmem:[#allocation18_spill] sm:$0xff]  ;;  %v8281_v62 = vld [vmem:[#allocation13_spill] sm:$0xff]  ;;  %v7474_v4 = vpop.f32.mrf.mxu1 }
 0x2cb   : > { %v2687_v29 = vor.u32 %v2686_v7, %v2685_v50  ;;  %v2795_v37 = vrot.slane %v8265_v43, 2  ;;  %v3720_v31 = vmax.bf16 %v3624_v19, %v3544_v60  ;;  %v2796_v9 = vrot.slane %v8271_v55, 2  ;;  %4855 = vmatprep.mubr.bf16.mxu1 %v7434_v59 }
 0x2cc   : > { %v2691_v27 = vrot.slane %v8273_v47, 2  ;;  %v3147_v28 = vmax.bf16 %v3134_v2, %v7434_v59  ;;  %v2581_v52 = vmax.bf16 %v2541_v3, %v2469_v24  ;;  %v3752_v5 = vsel %vm1617_vm3, %v3750_v58, %v3751_v38  ;;  %v8282_v58 = vld [vmem:[#allocation16_spill] sm:$0xff] }
 0x2cd   : > { %v3107_v45 = vmax.bf16 %v7342_v51, %v7295_v25  ;;  %v8277_v43 = vor.u32 %v8275_v16, %v8276_v49  ;;  %v8280_v19 = vor.u32 %v8278_v61, %v8279_v21  ;;  %v3800_v56 = vmax.bf16 %v3752_v5, %v3720_v31 }
 0x2ce   : > { %v2692_v15 = vor.u32 %v2691_v27, %v8274_v12  ;;  %v3177_v0 = vrot.slane %v3147_v28, 7  ;;  %v8283_v38 = vrot.slane %v8282_v58, 2  ;;  %v8285_v7 = vrot.slane %v8284_v13, 2 }
 0x2cf   : > { %v2702_v32 = vsel %vm1440_vm4, %v8280_v19, %v8277_v43  ;;  %v3121_v2 = vmax.bf16 %v3107_v45, %v7369_v53  ;;  %v3108_v24 = vmax.bf16 %v7369_v53, %v7342_v51  ;;  %v3109_v55 = vmax.bf16 %v7434_v59, %v7369_v53  ;;  %4896 = vmatmul.mubr.bf16.gmra.mxu0 %v3800_v56  ;;  %v7483_v19 = vpop.f32.mrf.mxu1 }
 0x2d0   : > { %v2758_v50 = vmax.bf16 %v2702_v32, %v8281_v62  ;;  %v2800_v25 = vsel %vm1617_vm3, %v8285_v7, %v8283_v38  ;;  %v2693_v60 = vsel %vm1440_vm4, %v2687_v29, %v2692_v15  ;;  %v3210_v3 = vsel %vm1068_vm0, 4286644096, %v3177_v0  ;;  %v7479_v15 = vpop.f32.mrf.mxu0 }
 0x2d1   : > { %v3241_v47 = vsel %vm1068_vm0, %v3177_v0, 4286644096  ;;  %v2757_v27 = vmax.bf16 %v2693_v60, %v2581_v52  ;;  %v2797_v31 = vsel %vm1617_vm3, %v2795_v37, %v2796_v9  ;;  %v3329_v28 = vshrl.u32 %v3210_v3, 16 }
 0x2d2   : > { %v3331_v29 = vshll.u32 %v3210_v3, 16  ;;  %v3335_v5 = vshll.u32 %v3241_v47, 16  ;;  %v3497_v12 = vrot.slane %v3210_v3, 1  ;;  %v3498_v51 = vrot.slane %v3241_v47, 1  ;;  %v7488_v38 = vpop.f32.mrf.mxu0 }
 0x2d3   : > { %v3628_v45 = vshrl.u32 %v3241_v47, 16  ;;  %v3753_v16 = vrot.slane %v3210_v3, 2  ;;  %v3754_v53 = vrot.slane %v3241_v47, 2  ;;  %v3625_v43 = vrot.slane %v3329_v28, 1 }
 0x2d4   : > { %v3333_v49 = vrot.slane %v3331_v29, 1  ;;  %v3626_v61 = vrot.slane %v3331_v29, 2  ;;  %v7481_v21 = vmax.bf16 %v2800_v25, %v2758_v50  ;;  %v3337_v52 = vrot.slane %v3335_v5, 1 }
 0x2d5   : > { %v3499_v37 = vsel %vm1359_vm2, %v3497_v12, %v3498_v51  ;;  %v3630_v9 = vrot.slane %v3628_v45, 1  ;;  %v3631_v32 = vrot.slane %v3335_v5, 2  ;;  %v3755_v0 = vsel %vm1617_vm3, %v3753_v16, %v3754_v53 }
 0x2d6   : > { %v3334_v56 = vor.u32 %v3333_v49, %v3329_v28  ;;  %v2837_v62 = vmax.bf16 %v2797_v31, %v2757_v27  ;;  %v3135_v58 = vmax.bf16 %v3121_v2, %v7434_v59  ;;  %v3627_v13 = vor.u32 %v3626_v61, %v3625_v43  ;;  %v7500_v31 = vpop.f32.mrf.mxu1 }
 0x2d7   : > { %v3632_v7 = vor.u32 %v3631_v32, %v3630_v9  ;;  %v3122_v50 = vmax.bf16 %v3108_v24, %v7434_v59  ;;  %v2729_v25 = vsel %vm1440_vm4, %v2723_v44, %v2728_v11  ;;  %v2809_v63 = vsel %vm1617_vm3, %v2807_v1, %v2808_v40  ;;  %v7512_v11 = vpop.f32.mrf.mxu0 }
 0x2d8   : > { %v3338_v60 = vsel %vm1134_vm1, %v3334_v56, %v3337_v52  ;;  %v3148_v47 = vmax.bf16 %v3135_v58, %v2837_v62  ;;  %v3123_v27 = vmax.bf16 %v3109_v55, %v2837_v62  ;;  %v3110_v2 = vmax.bf16 %v2837_v62, %v7434_v59  ;;  %4856 = vmatmul.mubr.bf16.gmra.mxu1 %v2837_v62  ;;  %v7524_v5 = vpop.f32.mrf.mxu1 }
 0x2d9   : > { %v3433_v28 = vmax.bf16 %v3338_v60, %v3210_v3  ;;  %v3136_v29 = vmax.bf16 %v3122_v50, %v2837_v62  ;;  %v2761_v24 = vmax.bf16 %v2729_v25, %v7138_v36  ;;  %4859 = vmatprep.mubr.bf16.mxu1 %v7481_v21  ;;  %v3111_v44 = vmax.bf16 %v7481_v21, %v2837_v62  ;;  %v7528_v52 = vpop.f32.mrf.mxu0 }
 0x2da   : > { %v3178_v33 = vrot.slane %v3148_v47, 7  ;;  %v3137_v39 = vmax.bf16 %v3123_v27, %v7481_v21  ;;  %v3124_v18 = vmax.bf16 %v3110_v2, %v7481_v21  ;;  %v3633_v36 = vsel %vm1440_vm4, %v3627_v13, %v3632_v7  ;;  %v7531_v50 = vpop.f32.mrf.mxu1 }
 0x2db   : > { %v3545_v59 = vmax.bf16 %v3499_v37, %v3433_v28  ;;  %v3149_v22 = vmax.bf16 %v3136_v29, %v7481_v21  ;;  %v7526_v61 = vmax.bf16 %v2809_v63, %v2761_v24  ;;  %v7539_v29 = vmax.bf16 %v3111_v44, %v7170_v48  ;;  %v7541_v24 = vpop.f32.mrf.mxu0 }
 0x2dc   : > { %v3213_v1 = vsel %vm1068_vm0, 4286644096, %v3178_v33  ;;  %v3242_v40 = vsel %vm1068_vm0, %v3178_v33, 4286644096  ;;  %v7521_v55 = vmax.bf16 %v3137_v39, %v7170_v48  ;;  %v3138_v3 = vmax.bf16 %v3124_v18, %v7170_v48 }
 0x2dd   : > { %v3721_v12 = vmax.bf16 %v3633_v36, %v3545_v59  ;;  %v3339_v51 = vshrl.u32 %v3213_v1, 16  ;;  %v3341_v45 = vshll.u32 %v3213_v1, 16  ;;  %v3345_v16 = vshll.u32 %v3242_v40, 16 }
 0x2de   : > { %v3500_v53 = vrot.slane %v3213_v1, 1  ;;  %v3501_v49 = vrot.slane %v3242_v40, 1  ;;  %v3637_v43 = vshrl.u32 %v3242_v40, 16  ;;  %v3756_v56 = vrot.slane %v3213_v1, 2 }
 0x2df   : > { %v3801_v37 = vmax.bf16 %v3755_v0, %v3721_v12  ;;  %v3343_v9 = vrot.slane %v3341_v45, 1  ;;  %v3634_v32 = vrot.slane %v3339_v51, 1  ;;  %v3347_v62 = vrot.slane %v3345_v16, 1 }
 0x2e0   : > { %v3635_v58 = vrot.slane %v3341_v45, 2  ;;  %v3639_v13 = vrot.slane %v3637_v43, 1  ;;  %v3640_v7 = vrot.slane %v3345_v16, 2  ;;  %4860 = vmatmul.mubr.bf16.gmra.mxu1 %v7170_v48  ;;  %v3502_v60 = vsel %vm1359_vm2, %v3500_v53, %v3501_v49 }
 0x2e1   : > { %4899 = vmatprep.mubr.bf16.mxu0 %v3801_v37  ;;  %v3344_v25 = vor.u32 %v3343_v9, %v3339_v51  ;;  %v3757_v47 = vrot.slane %v3242_v40, 2  ;;  %v3179_v27 = vrot.slane %v3149_v22, 7  ;;  %4863 = vmatprep.mubr.bf16.mxu1 %v7320_v6  ;;  %v7536_v28 = vmax.bf16 %v3138_v3, %v7320_v6  ;;  %v7548_v3 = vpop.f32.mrf.mxu1  ;;  %v7551_v37 = vpop.f32.mrf.mxu0 }
 0x2e2   : > { %v3636_v0 = vor.u32 %v3635_v58, %v3634_v32  ;;  %v3641_v2 = vor.u32 %v3640_v7, %v3639_v13  ;;  %v3180_v18 = vrot.slane %v7521_v55, 7 }
 0x2e3   : > { %v3348_v63 = vsel %vm1134_vm1, %v3344_v25, %v3347_v62  ;;  %v3216_v33 = vsel %vm1068_vm0, 4286644096, %v3179_v27  ;;  %v3243_v39 = vsel %vm1068_vm0, %v3179_v27, 4286644096  ;;  %v3758_v36 = vsel %vm1617_vm3, %v3756_v56, %v3757_v47  ;;  %v7554_v7 = vpop.f32.mrf.mxu1 }
 0x2e4   : > { %v3434_v59 = vmax.bf16 %v3348_v63, %v3213_v1  ;;  %v3349_v22 = vshrl.u32 %v3216_v33, 16  ;;  %v3351_v40 = vshll.u32 %v3216_v33, 16  ;;  %v3642_v44 = vsel %vm1440_vm4, %v3636_v0, %v3641_v2 }
 0x2e5   : > { %v3355_v12 = vshll.u32 %v3243_v39, 16  ;;  %v3503_v51 = vrot.slane %v3216_v33, 1  ;;  %v3646_v45 = vshrl.u32 %v3243_v39, 16  ;;  %v3504_v55 = vrot.slane %v3243_v39, 1 }
 0x2e6   : > { %v3546_v16 = vmax.bf16 %v3502_v60, %v3434_v59  ;;  %v3353_v53 = vrot.slane %v3351_v40, 1  ;;  %v3643_v49 = vrot.slane %v3349_v22, 1  ;;  %v3644_v43 = vrot.slane %v3351_v40, 2  ;;  %v7559_v40 = vpop.f32.mrf.mxu0 }
 0x2e7   : > { %v3357_v9 = vrot.slane %v3355_v12, 1  ;;  %v3648_v1 = vrot.slane %v3646_v45, 1  ;;  %v3649_v32 = vrot.slane %v3355_v12, 2  ;;  %v3759_v13 = vrot.slane %v3216_v33, 2 }
 0x2e8   : > { %v3722_v56 = vmax.bf16 %v3642_v44, %v3546_v16  ;;  %v3354_v62 = vor.u32 %v3353_v53, %v3349_v22  ;;  %v3645_v58 = vor.u32 %v3644_v43, %v3643_v49  ;;  %4864 = vmatmul.mubr.bf16.gmra.mxu1 %v7526_v61  ;;  %v3760_v47 = vrot.slane %v3243_v39, 2  ;;  %v7563_v43 = vpop.f32.mrf.mxu1 }
 0x2e9   : > { %v3650_v25 = vor.u32 %v3649_v32, %v3648_v1  ;;  %v3219_v60 = vsel %vm1068_vm0, 4286644096, %v3180_v18  ;;  %v3244_v27 = vsel %vm1068_vm0, %v3180_v18, 4286644096  ;;  %v3505_v44 = vsel %vm1359_vm2, %v3503_v51, %v3504_v55  ;;  %v7567_v55 = vpop.f32.mrf.mxu0 }
 0x2ea   : > { %v3802_v0 = vmax.bf16 %v3758_v36, %v3722_v56  ;;  %v3358_v2 = vsel %vm1134_vm1, %v3354_v62, %v3357_v9  ;;  %v3359_v63 = vshrl.u32 %v3219_v60, 16  ;;  %v3361_v59 = vshll.u32 %v3219_v60, 16 }
 0x2eb   : > { %v3435_v22 = vmax.bf16 %v3358_v2, %v3216_v33  ;;  %v3651_v12 = vsel %vm1440_vm4, %v3645_v58, %v3650_v25  ;;  %v3365_v45 = vshll.u32 %v3244_v27, 16  ;;  %v3506_v39 = vrot.slane %v3219_v60, 1 }
 0x2ec   : > { %4900 = vmatmul.mubr.bf16.gmra.mxu0 %v3802_v0  ;;  %v3363_v16 = vrot.slane %v3361_v59, 1  ;;  %v3507_v53 = vrot.slane %v3244_v27, 1  ;;  %v3652_v49 = vrot.slane %v3359_v63, 1  ;;  %v3761_v36 = vsel %vm1617_vm3, %v3759_v13, %v3760_v47 }
 0x2ed   : > { %v3547_v18 = vmax.bf16 %v3505_v44, %v3435_v22  ;;  %v3653_v9 = vrot.slane %v3361_v59, 2  ;;  %v3655_v1 = vshrl.u32 %v3244_v27, 16  ;;  %v3367_v56 = vrot.slane %v3365_v45, 1  ;;  %v7577_v59 = vpop.f32.mrf.mxu1 }
 0x2ee   : > { %v3364_v32 = vor.u32 %v3363_v16, %v3359_v63  ;;  %v3508_v33 = vsel %vm1359_vm2, %v3506_v39, %v3507_v53  ;;  %v3658_v51 = vrot.slane %v3365_v45, 2  ;;  %v3762_v0 = vrot.slane %v3219_v60, 2 }
 0x2ef   : > { %v3723_v62 = vmax.bf16 %v3651_v12, %v3547_v18  ;;  %v3654_v58 = vor.u32 %v3653_v9, %v3652_v49  ;;  %v3657_v25 = vrot.slane %v3655_v1, 1  ;;  %v3181_v14 = vrot.slane %v7536_v28, 7  ;;  %v7586_v1 = vpop.f32.mrf.mxu1 }
 0x2f0   : > { %v3368_v2 = vsel %vm1134_vm1, %v3364_v32, %v3367_v56  ;;  %v3139_v13 = vmax.bf16 %v7539_v29, %v7320_v6  ;;  %v8286_v47 = vmax.bf16 %v7170_v48, %v7481_v21  ;;  %v3763_v45 = vrot.slane %v3244_v27, 2  ;;  %v7583_v29 = vpop.f32.mrf.mxu0 }
 0x2f1   : > { %v3803_v22 = vmax.bf16 %v3761_v36, %v3723_v62  ;;  %v3436_v44 = vmax.bf16 %v3368_v2, %v3219_v60  ;;  %v3659_v12 = vor.u32 %v3658_v51, %v3657_v25  ;;  %v3222_v16 = vsel %vm1068_vm0, 4286644096, %v3181_v14  ;;  %8287 = vst [vmem:[#allocation14_spill] sm:$0xff] %v7583_v29 }
 0x2f2   : > { %v3126_v63 = vmax.bf16 %v8286_v47, %v7320_v6  ;;  %v3245_v39 = vsel %vm1068_vm0, %v3181_v14, 4286644096  ;;  %v3152_v28 = vmax.bf16 %v3139_v13, %v7526_v61  ;;  %v3369_v21 = vshrl.u32 %v3222_v16, 16  ;;  %v7589_v13 = vpop.f32.mrf.mxu0 }
 0x2f3   : > { %4903 = vmatprep.mubr.bf16.mxu0 %v3803_v22  ;;  %v3548_v49 = vmax.bf16 %v3508_v33, %v3436_v44  ;;  %v3371_v18 = vshll.u32 %v3222_v16, 16  ;;  %v3660_v9 = vsel %vm1440_vm4, %v3654_v58, %v3659_v12  ;;  %v3375_v36 = vshll.u32 %v3245_v39, 16  ;;  %8288 = vst [vmem:[#allocation12_spill] sm:$0xff] %v7589_v13  ;;  %v7591_v44 = vpop.f32.mrf.mxu1 }
 0x2f4   : > { %v3140_v53 = vmax.bf16 %v3126_v63, %v7526_v61  ;;  %v3664_v60 = vshrl.u32 %v3245_v39, 16  ;;  %v3661_v56 = vrot.slane %v3369_v21, 1  ;;  %v3764_v51 = vsel %vm1617_vm3, %v3762_v0, %v3763_v45 }
 0x2f5   : > { %v3724_v27 = vmax.bf16 %v3660_v9, %v3548_v49  ;;  %v3373_v32 = vrot.slane %v3371_v18, 1  ;;  %v3662_v14 = vrot.slane %v3371_v18, 2  ;;  %v3509_v62 = vrot.slane %v3222_v16, 1 }
 0x2f6   : > { %v3666_v25 = vrot.slane %v3664_v60, 1  ;;  %v3667_v2 = vrot.slane %v3375_v36, 2  ;;  %v3377_v63 = vrot.slane %v3375_v36, 1  ;;  %v3510_v22 = vrot.slane %v3245_v39, 1 }
 0x2f7   : > { %v3804_v33 = vmax.bf16 %v3764_v51, %v3724_v27  ;;  %v3374_v47 = vor.u32 %v3373_v32, %v3369_v21  ;;  %v3182_v58 = vrot.slane %v3152_v28, 7  ;;  %v3663_v49 = vor.u32 %v3662_v14, %v3661_v56  ;;  %v7597_v27 = vpop.f32.mrf.mxu0 }
 0x2f8   : > { %v3668_v9 = vor.u32 %v3667_v2, %v3666_v25  ;;  %v3113_v0 = vmax.bf16 %v7320_v6, %v7170_v48  ;;  %v3765_v18 = vrot.slane %v3222_v16, 2  ;;  %v3766_v60 = vrot.slane %v3245_v39, 2  ;;  %8289 = vst [vmem:[#allocation19_spill] sm:$0xff] %v7597_v27  ;;  %v7601_v25 = vpop.f32.mrf.mxu1 }
 0x2f9   : > { %4904 = vmatmul.mubr.bf16.gmra.mxu0 %v3804_v33  ;;  %v3378_v12 = vsel %vm1134_vm1, %v3374_v47, %v3377_v63  ;;  %v3225_v13 = vsel %vm1068_vm0, 4286644096, %v3182_v58  ;;  %v3511_v21 = vsel %vm1359_vm2, %v3509_v62, %v3510_v22  ;;  %v3246_v28 = vsel %vm1068_vm0, %v3182_v58, 4286644096  ;;  %8290 = vst [vmem:[#allocation21_spill] sm:$0xff] %v7601_v25  ;;  %v7605_v22 = vpop.f32.mrf.mxu0 }
 0x2fa   : > { %v3437_v45 = vmax.bf16 %v3378_v12, %v3222_v16  ;;  %v3379_v36 = vshrl.u32 %v3225_v13, 16  ;;  %v3381_v32 = vshll.u32 %v3225_v13, 16  ;;  %v3385_v33 = vshll.u32 %v3246_v28, 16  ;;  %8291 = vst [vmem:[#allocation22_spill] sm:$0xff] %v7605_v22 }
 0x2fb   : > { %v3673_v56 = vshrl.u32 %v3246_v28, 16  ;;  %v3183_v14 = vrot.slane %v3140_v53, 7  ;;  %v3669_v48 = vsel %vm1440_vm4, %v3663_v49, %v3668_v9  ;;  %v3767_v47 = vsel %vm1617_vm3, %v3765_v18, %v3766_v60  ;;  %v7610_v9 = vpop.f32.mrf.mxu1 }
 0x2fc   : > { %v3549_v51 = vmax.bf16 %v3511_v21, %v3437_v45  ;;  %v3383_v6 = vrot.slane %v3381_v32, 1  ;;  %v3670_v16 = vrot.slane %v3379_v36, 1  ;;  %v3671_v39 = vrot.slane %v3381_v32, 2  ;;  %8292 = vst [vmem:[#allocation20_spill] sm:$0xff] %v7610_v9 }
 0x2fd   : > { %v3512_v63 = vrot.slane %v3225_v13, 1  ;;  %v3675_v62 = vrot.slane %v3673_v56, 1  ;;  %v3387_v12 = vrot.slane %v3385_v33, 1  ;;  %v3513_v45 = vrot.slane %v3246_v28, 1  ;;  %v7616_v29 = vpop.f32.mrf.mxu1 }
 0x2fe   : > { %v3725_v2 = vmax.bf16 %v3669_v48, %v3549_v51  ;;  %v3384_v58 = vor.u32 %v3383_v6, %v3379_v36  ;;  %v3676_v21 = vrot.slane %v3385_v33, 2  ;;  %v3228_v53 = vsel %vm1068_vm0, 4286644096, %v3183_v14  ;;  %v7613_v6 = vpop.f32.mrf.mxu0  ;;  %8294 = vst [vmem:[#allocation24_spill] sm:$0xff] %v7616_v29 }
 0x2ff   : > { %v3247_v25 = vsel %vm1068_vm0, %v3183_v14, 4286644096  ;;  %v3127_v49 = vmax.bf16 %v3113_v0, %v7526_v61  ;;  %v3672_v18 = vor.u32 %v3671_v39, %v3670_v16  ;;  %v3389_v51 = vshrl.u32 %v3228_v53, 16  ;;  %8293 = vst [vmem:[#allocation23_spill] sm:$0xff] %v7613_v6  ;;  %v7623_v29 = vpop.f32.mrf.mxu1 }
 0x300   : > { %v3805_v27 = vmax.bf16 %v3767_v47, %v3725_v2  ;;  %v3388_v32 = vsel %vm1134_vm1, %v3384_v58, %v3387_v12  ;;  %v3677_v60 = vor.u32 %v3676_v21, %v3675_v62  ;;  %v3391_v36 = vshll.u32 %v3228_v53, 16  ;;  %v7619_v6 = vpop.f32.mrf.mxu0 }
 0x301   : > { %v3438_v56 = vmax.bf16 %v3388_v32, %v3225_v13  ;;  %v3395_v48 = vshll.u32 %v3247_v25, 16  ;;  %v3514_v33 = vsel %vm1359_vm2, %v3512_v63, %v3513_v45  ;;  %v3768_v2 = vrot.slane %v3225_v13, 2 }
 0x302   : > { %4907 = vmatprep.mubr.bf16.mxu0 %v3805_v27  ;;  %v3769_v47 = vrot.slane %v3246_v28, 2  ;;  %v3682_v14 = vshrl.u32 %v3247_v25, 16  ;;  %v3393_v61 = vrot.slane %v3391_v36, 1  ;;  %v3679_v0 = vrot.slane %v3389_v51, 1 }
 0x303   : > { %v3550_v22 = vmax.bf16 %v3514_v33, %v3438_v56  ;;  %v3680_v9 = vrot.slane %v3391_v36, 2  ;;  %v3678_v16 = vsel %vm1440_vm4, %v3672_v18, %v3677_v60  ;;  %v3515_v39 = vrot.slane %v3228_v53, 1 }
 0x304   : > { %v3684_v27 = vrot.slane %v3682_v14, 1  ;;  %v3685_v62 = vrot.slane %v3395_v48, 2  ;;  %v3394_v12 = vor.u32 %v3393_v61, %v3389_v51  ;;  %v3397_v21 = vrot.slane %v3395_v48, 1 }
 0x305   : > { %v3726_v58 = vmax.bf16 %v3678_v16, %v3550_v22  ;;  %v3516_v32 = vrot.slane %v3247_v25, 1  ;;  %v3770_v13 = vsel %vm1617_vm3, %v3768_v2, %v3769_v47  ;;  %v3771_v28 = vrot.slane %v3228_v53, 2 }
 0x306   : > { %v3184_v63 = vrot.slane %v3127_v49, 7  ;;  %v3398_v56 = vsel %vm1134_vm1, %v3394_v12, %v3397_v21  ;;  %v3681_v36 = vor.u32 %v3680_v9, %v3679_v0  ;;  %v3686_v33 = vor.u32 %v3685_v62, %v3684_v27  ;;  %v7628_v49 = vpop.f32.mrf.mxu0 }
 0x307   : > { %v3806_v45 = vmax.bf16 %v3770_v13, %v3726_v58  ;;  %v3439_v18 = vmax.bf16 %v3398_v56, %v3228_v53  ;;  %v3772_v60 = vrot.slane %v3247_v25, 2  ;;  %v3517_v48 = vsel %vm1359_vm2, %v3515_v39, %v3516_v32  ;;  %v7631_v25 = vpop.f32.mrf.mxu1 }
 0x308   : > { %v3231_v22 = vsel %vm1068_vm0, 4286644096, %v3184_v63  ;;  %v3248_v51 = vsel %vm1068_vm0, %v3184_v63, 4286644096  ;;  %v3687_v9 = vsel %vm1440_vm4, %v3681_v36, %v3686_v33 }
 0x309   : > { %4908 = vmatmul.mubr.bf16.gmra.mxu0 %v3806_v45  ;;  %v3399_v14 = vshrl.u32 %v3231_v22, 16  ;;  %v3401_v2 = vshll.u32 %v3231_v22, 16  ;;  %v3405_v47 = vshll.u32 %v3248_v51, 16  ;;  %v3551_v61 = vmax.bf16 %v3517_v48, %v3439_v18  ;;  %v7634_v45 = vpop.f32.mrf.mxu0  ;;  %v7637_v48 = vpop.f32.mrf.mxu1 }
 0x30a   : > { %v3691_v16 = vshrl.u32 %v3248_v51, 16  ;;  %v3773_v58 = vsel %vm1617_vm3, %v3771_v28, %v3772_v60  ;;  %v3518_v13 = vrot.slane %v3231_v22, 1  ;;  %v3519_v63 = vrot.slane %v3248_v51, 1 }
 0x30b   : > { %v3403_v0 = vrot.slane %v3401_v2, 1  ;;  %v3688_v27 = vrot.slane %v3399_v14, 1  ;;  %v3689_v53 = vrot.slane %v3401_v2, 2  ;;  %v3727_v62 = vmax.bf16 %v3687_v9, %v3551_v61  ;;  %v7643_v9 = vpop.f32.mrf.mxu1 }
 0x30c   : > { %v3693_v12 = vrot.slane %v3691_v16, 1  ;;  %v3694_v21 = vrot.slane %v3405_v47, 2  ;;  %v3407_v32 = vrot.slane %v3405_v47, 1  ;;  %v3520_v61 = vsel %vm1359_vm2, %v3518_v13, %v3519_v63  ;;  %v7640_v16 = vpop.f32.mrf.mxu0 }
 0x30d   : > { %v3404_v39 = vor.u32 %v3403_v0, %v3399_v14  ;;  %v3807_v56 = vmax.bf16 %v3773_v58, %v3727_v62  ;;  %v3690_v36 = vor.u32 %v3689_v53, %v3688_v27  ;;  %v3774_v28 = vrot.slane %v3231_v22, 2  ;;  %v7648_v58 = vpop.f32.mrf.mxu1 }
 0x30e   : > { %v3695_v33 = vor.u32 %v3694_v21, %v3693_v12  ;;  %v3775_v60 = vrot.slane %v3248_v51, 2  ;;  %v7646_v27 = vpop.f32.mrf.mxu0 }
 0x30f   : > { %v3408_v18 = vsel %vm1134_vm1, %v3404_v39, %v3407_v32  ;;  %4911 = vmatprep.mubr.bf16.mxu0 %v3807_v56 }
 0x310   : > { %v3440_v2 = vmax.bf16 %v3408_v18, %v3231_v22  ;;  %v3696_v47 = vsel %vm1440_vm4, %v3690_v36, %v3695_v33  ;;  %v3776_v62 = vsel %vm1617_vm3, %v3774_v28, %v3775_v60  ;;  %v7650_v12 = vpop.f32.mrf.mxu0  ;;  %v7652_v22 = vpop.f32.mrf.mxu1 }
 0x312   : > { %v3552_v14 = vmax.bf16 %v3520_v61, %v3440_v2  ;;  %v7654_v51 = vpop.f32.mrf.mxu0  ;;  %v7656_v21 = vpop.f32.mrf.mxu1 }
 0x314   : > { %v3728_v0 = vmax.bf16 %v3696_v47, %v3552_v14  ;;  %v7658_v39 = vpop.f32.mrf.mxu0  ;;  %v7660_v32 = vpop.f32.mrf.mxu1  ;;  %v2015_v14 = vadd.f32 %v7344_v30, %v7372_v8 }
 0x315   : > { %8295 = vst [vmem:[#allocation26_spill] sm:$0xff] %v7658_v39 }
 0x316   : > { %v3808_v53 = vmax.bf16 %v3776_v62, %v3728_v0  ;;  %v7662_v13 = vpop.f32.mrf.mxu0  ;;  %v2007_v0 = vadd.f32 %v7361_v57, %v7381_v46  ;;  %v7690_v57 = vld [vmem:[%s8018_s6] ss:$0 sm:$0xff] }
 0x317   : > { %8296 = vst [vmem:[#allocation25_spill] sm:$0xff] %v7662_v13 }
 0x318   : > { %4912 = vmatmul.mubr.bf16.gmra.mxu0 %v3808_v53  ;;  %v7666_v56 = vpop.f32.mrf.mxu0  ;;  %v2018_v53 = vadd.f32 %v7379_v34, %v7397_v10 }
 0x319   : > { %8297 = vst [vmem:[#allocation27_spill] sm:$0xff] %v7666_v56 }
 0x31a   : > { %v2121_v33 = vpop.f32.mrf.mxu0 }
 0x31c   : > { %v7664_v63 = vpop.f32.mrf.mxu1 }
 0x31e   : > { %v7668_v18 = vpop.f32.mrf.mxu1 }
 0x31f   : > { %8298 = vst [vmem:[#allocation28_spill] sm:$0xff] %v7668_v18 }
 0x320   : > { %v7670_v36 = vpop.f32.mrf.mxu1 }
 0x321   : > { %8299 = vst [vmem:[#allocation29_spill] sm:$0xff] %v7670_v36 }
 0x322   : > { %v1912_v2 = vpop.f32.mrf.mxu1 }
 0x323   : > { %v7672_v61 = vadd.f32 %v2121_v33, %v1912_v2  ;;  %v7683_v33 = vld [vmem:[%s8017_s5] ss:$0 sm:$0xff] }
 0x324   : > { %v4837_v28 = vpop.f32.mrf.mxu1 }
 0x325   : > { %8300 = vst [vmem:[#allocation30_spill] sm:$0xff] %v7672_v61  ;;  %v3070_v62 = vadd.f32 %v4837_v28, %v2015_v14  ;;  %v2010_v61 = vadd.f32 %v7388_v54, %v7407_v23 }
 0x326   : > { %v2941_v60 = vpop.f32.mrf.mxu1 }
 0x327   : > { %v3068_v56 = vadd.f32 %v2941_v60, %v2007_v0 }
 0x328   : > { %v4838_v47 = vpop.f32.mrf.mxu1 }
 0x329   : > { %v3071_v8 = vadd.f32 %v4838_v47, %v2018_v53 }
 0x32a   : > { %v2944_v2 = vpop.f32.mrf.mxu1 }
 0x32b   : > { %v3069_v10 = vadd.f32 %v2944_v2, %v2010_v61 }
 0x337   : > { %v4885_v13 = vpop.f32.mrf.mxu0 }
 0x338   : > { %v4037_v30 = vadd.f32 %v4885_v13, %v3070_v62 }
 0x339   : > { %v3908_v36 = vpop.f32.mrf.mxu0 }
 0x33a   : > { %v4076_v34 = vmul.f32 %v7683_v33, %v4037_v30  ;;  %v4035_v46 = vadd.f32 %v3908_v36, %v3068_v56 }
 0x33b   : > { %v4886_v28 = vpop.f32.mrf.mxu0 }
 0x33c   : > { %v4115_v60 = vadd.f32 %v7690_v57, %v4076_v34  ;;  %v4074_v14 = vmul.f32 %v7683_v33, %v4035_v46  ;;  %v4038_v0 = vadd.f32 %v4886_v28, %v3071_v8  ;;  %v4841_v34 = vpop.f32.mrf.mxu1 }
 0x33d   : > { %v3911_v18 = vpop.f32.mrf.mxu0 }
 0x33e   : > { %v4147_v54 = vsub.f32 0.0, %v4115_v60  ;;  %v4113_v23 = vadd.f32 %v7690_v57, %v4074_v14  ;;  %v4077_v13 = vmul.f32 %v7683_v33, %v4038_v0  ;;  %v4036_v47 = vadd.f32 %v3911_v18, %v3069_v10  ;;  %v2957_v0 = vpop.f32.mrf.mxu1 }
 0x340   : > { %v4181_v62 = vmul.f32 1.442695, %v4147_v54  ;;  %v4145_v53 = vsub.f32 0.0, %v4113_v23  ;;  %v7698_v39 = vadd.f32 %v7690_v57, %v4077_v13  ;;  %v4075_v56 = vmul.f32 %v7683_v33, %v4036_v47 }
 0x342   : > { %5186 = vpow2.f32 %v4181_v62  ;;  %v4177_v36 = vmul.f32 1.442695, %v4145_v53  ;;  %v4148_v61 = vsub.f32 0.0, %v7698_v39  ;;  %v7703_v2 = vadd.f32 %v7690_v57, %v4075_v56  ;;  %v4842_v56 = vpop.f32.mrf.mxu1 }
 0x343   : > { %v2031_v62 = vadd.f32 %v7404_v17, %v7421_v41 }
 0x344   : > { %5188 = vpow2.f32 %v4177_v36  ;;  %v4183_v30 = vmul.f32 1.442695, %v4148_v61  ;;  %v4146_v8 = vsub.f32 0.0, %v7703_v2  ;;  %v2023_v36 = vadd.f32 %v7411_v42, %v7444_v26 }
 0x345   : > { %v3074_v61 = vadd.f32 %v4841_v34, %v2031_v62 }
 0x346   : > { %5190 = vpow2.f32 %v4183_v30  ;;  %v4179_v18 = vmul.f32 1.442695, %v4146_v8  ;;  %v2034_v30 = vadd.f32 %v7432_v20, %v7474_v4  ;;  %v3072_v8 = vadd.f32 %v2957_v0, %v2023_v36 }
 0x348   : > { %5192 = vpow2.f32 %v4179_v18 }
 0x34f   : > { %v5187_v46 = vpop.eup %5186 }
 0x350   : > { %v4243_v10 = vadd.f32 1.0, %v5187_v46  ;;  %v2960_v46 = vpop.f32.mrf.mxu1 }
 0x351   : > { %v5189_v28 = vpop.eup %5188 }
 0x352   : > { %5194 = vrcp.f32 %v4243_v10  ;;  %v4241_v14 = vadd.f32 1.0, %v5189_v28  ;;  %v2026_v10 = vadd.f32 %v7460_v35, %v7483_v19 }
 0x353   : > { %v5191_v54 = vpop.eup %5190 }
 0x354   : > { %5196 = vrcp.f32 %v4241_v14  ;;  %v4244_v13 = vadd.f32 1.0, %v5191_v54  ;;  %v3075_v14 = vadd.f32 %v4842_v56, %v2034_v30 }
 0x355   : > { %v5193_v47 = vpop.eup %5192 }
 0x356   : > { %5198 = vrcp.f32 %v4244_v13  ;;  %v4242_v53 = vadd.f32 1.0, %v5193_v47  ;;  %v3073_v13 = vadd.f32 %v2960_v46, %v2026_v10 }
 0x358   : > { %5200 = vrcp.f32 %v4242_v53 }
 0x35c   : > { %v4889_v18 = vpop.f32.mrf.mxu0 }
 0x35d   : > { %v4041_v28 = vadd.f32 %v4889_v18, %v3074_v61 }
 0x35e   : > { %v3924_v17 = vpop.f32.mrf.mxu0 }
 0x35f   : > { %v4080_v41 = vmul.f32 %v7683_v33, %v4041_v28  ;;  %v4039_v54 = vadd.f32 %v3924_v17, %v3072_v8  ;;  %v5195_v26 = vpop.eup %5194 }
 0x360   : > { %v4890_v42 = vpop.f32.mrf.mxu0  ;;  %v4307_v0 = vmul.f32 %v5195_v26, %v4115_v60  ;;  %v2047_v26 = vadd.f32 %v7479_v15, %v7500_v31 }
 0x361   : > { %v7717_v34 = vadd.f32 %v7690_v57, %v4080_v41  ;;  %v4078_v20 = vmul.f32 %v7683_v33, %v4039_v54  ;;  %v4042_v4 = vadd.f32 %v4890_v42, %v3075_v14  ;;  %v5197_v62 = vpop.eup %5196 }
 0x362   : > { %v3927_v47 = vpop.f32.mrf.mxu0  ;;  %4339 = vst [vmem:[%s7725_s16 + $0x10] sm:$0xff] %v4307_v0  ;;  %v4305_v36 = vmul.f32 %v5197_v62, %v4113_v23 }
 0x363   : > { %v4151_v35 = vsub.f32 0.0, %v7717_v34  ;;  %v7722_v19 = vadd.f32 %v7690_v57, %v4078_v20  ;;  %v4081_v53 = vmul.f32 %v7683_v33, %v4042_v4  ;;  %v4040_v56 = vadd.f32 %v3927_v47, %v3073_v13  ;;  %v5199_v61 = vpop.eup %5198  ;;  %v4845_v13 = vpop.f32.mrf.mxu1 }
 0x364   : > { %4337 = vst [vmem:[%s7725_s16] sm:$0xff] %v4305_v36  ;;  %v4308_v46 = vmul.f32 %v5199_v61, %v7698_v39  ;;  %v2039_v4 = vadd.f32 %v7488_v38, %v7524_v5  ;;  %v3078_v0 = vadd.f32 %v4845_v13, %v2047_v26  ;;  %v2042_v36 = vadd.f32 %v7528_v52, %v7548_v3 }
 0x365   : > { %v4189_v30 = vmul.f32 1.442695, %v4151_v35  ;;  %v4149_v60 = vsub.f32 0.0, %v7722_v19  ;;  %v7730_v8 = vadd.f32 %v7690_v57, %v4081_v53  ;;  %v4079_v18 = vmul.f32 %v7683_v33, %v4040_v56  ;;  %v5201_v10 = vpop.eup %5200  ;;  %v2973_v39 = vpop.f32.mrf.mxu1 }
 0x366   : > { %4340 = vst [vmem:[%s7725_s16 + $0x18] sm:$0xff] %v4308_v46  ;;  %v4306_v17 = vmul.f32 %v5201_v10, %v7703_v2  ;;  %v3076_v62 = vadd.f32 %v2973_v39, %v2039_v4  ;;  %v2050_v56 = vadd.f32 %v7512_v11, %v7531_v50 }
 0x367   : > { %5202 = vpow2.f32 %v4189_v30  ;;  %v4185_v28 = vmul.f32 1.442695, %v4149_v60  ;;  %v4152_v14 = vsub.f32 0.0, %v7730_v8  ;;  %v7737_v23 = vadd.f32 %v7690_v57, %v4079_v18  ;;  %v4846_v20 = vpop.f32.mrf.mxu1 }
 0x368   : > { %4338 = vst [vmem:[%s7725_s16 + $0x8] sm:$0xff] %v4306_v17  ;;  %v3079_v18 = vadd.f32 %v4846_v20, %v2050_v56 }
 0x369   : > { %5204 = vpow2.f32 %v4185_v28  ;;  %v4191_v41 = vmul.f32 1.442695, %v4152_v14  ;;  %v4150_v54 = vsub.f32 0.0, %v7737_v23  ;;  %v2976_v35 = vpop.f32.mrf.mxu1 }
 0x36a   : > { %v3077_v38 = vadd.f32 %v2976_v35, %v2042_v36 }
 0x36b   : > { %5206 = vpow2.f32 %v4191_v41  ;;  %v4187_v42 = vmul.f32 1.442695, %v4150_v54  ;;  %v4849_v4 = vpop.f32.mrf.mxu1 }
 0x36d   : > { %5208 = vpow2.f32 %v4187_v42 }
 0x374   : > { %v5203_v47 = vpop.eup %5202 }
 0x375   : > { %v4247_v2 = vadd.f32 1.0, %v5203_v47 }
 0x376   : > { %v5205_v53 = vpop.eup %5204 }
 0x377   : > { %5210 = vrcp.f32 %v4247_v2  ;;  %v4245_v30 = vadd.f32 1.0, %v5205_v53  ;;  %v2989_v53 = vpop.f32.mrf.mxu1 }
 0x378   : > { %v5207_v31 = vpop.eup %5206 }
 0x379   : > { %v4893_v61 = vpop.f32.mrf.mxu0  ;;  %5212 = vrcp.f32 %v4245_v30  ;;  %v4248_v5 = vadd.f32 1.0, %v5207_v31 }
 0x37a   : > { %v4045_v15 = vadd.f32 %v4893_v61, %v3078_v0  ;;  %v5209_v28 = vpop.eup %5208  ;;  %v2063_v61 = vadd.f32 %v7541_v24, %v7554_v7  ;;  %v2066_v24 = vadd.f32 %v7559_v40, %v7577_v59 }
 0x37b   : > { %v3940_v60 = vpop.f32.mrf.mxu0  ;;  %5214 = vrcp.f32 %v4248_v5  ;;  %v4246_v11 = vadd.f32 1.0, %v5209_v28  ;;  %v4850_v5 = vpop.f32.mrf.mxu1 }
 0x37c   : > { %v4084_v46 = vmul.f32 %v7683_v33, %v4045_v15  ;;  %v4043_v10 = vadd.f32 %v3940_v60, %v3076_v62  ;;  %v2055_v60 = vadd.f32 %v7551_v37, %v7563_v43 }
 0x37d   : > { %v4894_v14 = vpop.f32.mrf.mxu0  ;;  %5216 = vrcp.f32 %v4246_v11  ;;  %v2058_v11 = vadd.f32 %v7567_v55, %v7586_v1 }
 0x37e   : > { %v7753_v50 = vadd.f32 %v7690_v57, %v4084_v46  ;;  %v4082_v52 = vmul.f32 %v7683_v33, %v4043_v10  ;;  %v4046_v17 = vadd.f32 %v4894_v14, %v3079_v18  ;;  %v3083_v14 = vadd.f32 %v4850_v5, %v2066_v24 }
 0x37f   : > { %v3943_v3 = vpop.f32.mrf.mxu0 }
 0x380   : > { %v4155_v41 = vsub.f32 0.0, %v7753_v50  ;;  %v7758_v54 = vadd.f32 %v7690_v57, %v4082_v52  ;;  %v4044_v13 = vadd.f32 %v3943_v3, %v3077_v38  ;;  %v4085_v42 = vmul.f32 %v7683_v33, %v4046_v17 }
 0x381   : > { %v3082_v38 = vadd.f32 %v4849_v4, %v2063_v61 }
 0x382   : > { %v4197_v39 = vmul.f32 1.442695, %v4155_v41  ;;  %v4153_v26 = vsub.f32 0.0, %v7758_v54  ;;  %v4083_v20 = vmul.f32 %v7683_v33, %v4044_v13  ;;  %v7764_v0 = vadd.f32 %v7690_v57, %v4085_v42 }
 0x384   : > { %5218 = vpow2.f32 %v4197_v39  ;;  %v4193_v47 = vmul.f32 1.442695, %v4153_v26  ;;  %v7767_v2 = vadd.f32 %v7690_v57, %v4083_v20  ;;  %v4156_v62 = vsub.f32 0.0, %v7764_v0  ;;  %v5211_v56 = vpop.eup %5210 }
 0x385   : > { %v4311_v30 = vmul.f32 %v5211_v56, %v7717_v34  ;;  %v3080_v34 = vadd.f32 %v2989_v53, %v2055_v60 }
 0x386   : > { %5220 = vpow2.f32 %v4193_v47  ;;  %v4154_v35 = vsub.f32 0.0, %v7767_v2  ;;  %v4199_v36 = vmul.f32 1.442695, %v4156_v62  ;;  %v5213_v31 = vpop.eup %5212 }
 0x387   : > { %4343 = vst [vmem:[%s7725_s16 + $0x30] sm:$0xff] %v4311_v30  ;;  %v4309_v18 = vmul.f32 %v5213_v31, %v7722_v19  ;;  %v2992_v19 = vpop.f32.mrf.mxu1 }
 0x388   : > { %v4195_v15 = vmul.f32 1.442695, %v4154_v35  ;;  %5222 = vpow2.f32 %v4199_v36  ;;  %v5215_v46 = vpop.eup %5214 }
 0x389   : > { %4341 = vst [vmem:[%s7725_s16 + $0x20] sm:$0xff] %v4309_v18  ;;  %v4312_v7 = vmul.f32 %v5215_v46, %v7730_v8  ;;  %v3081_v8 = vadd.f32 %v2992_v19, %v2058_v11 }
 0x38a   : > { %5224 = vpow2.f32 %v4195_v15  ;;  %v5217_v10 = vpop.eup %5216 }
 0x38b   : > { %4344 = vst [vmem:[%s7725_s16 + $0x38] sm:$0xff] %v4312_v7  ;;  %v4310_v37 = vmul.f32 %v5217_v10, %v7737_v23 }
 0x38d   : > { %4342 = vst [vmem:[%s7725_s16 + $0x28] sm:$0xff] %v4310_v37 }
 0x38f   : > { %v4897_v28 = vpop.f32.mrf.mxu0 }
 0x390   : > { %v4049_v43 = vadd.f32 %v4897_v28, %v3082_v38  ;;  %v4853_v38 = vpop.f32.mrf.mxu1 }
 0x391   : > { %v3956_v52 = vpop.f32.mrf.mxu0  ;;  %v5219_v59 = vpop.eup %5218 }
 0x392   : > { %v4088_v3 = vmul.f32 %v7683_v33, %v4049_v43  ;;  %v4047_v40 = vadd.f32 %v3956_v52, %v3080_v34  ;;  %v4251_v41 = vadd.f32 1.0, %v5219_v59  ;;  %v3005_v7 = vpop.f32.mrf.mxu1  ;;  %v8301_v43 = vld [vmem:[#allocation14_spill] sm:$0xff]  ;;  %v8302_v52 = vld [vmem:[#allocation21_spill] sm:$0xff] }
 0x393   : > { %v4898_v17 = vpop.f32.mrf.mxu0  ;;  %v5221_v39 = vpop.eup %5220 }
 0x394   : > { %v7789_v13 = vadd.f32 %v7690_v57, %v4088_v3  ;;  %v4086_v23 = vmul.f32 %v7683_v33, %v4047_v40  ;;  %v4050_v42 = vadd.f32 %v4898_v17, %v3083_v14  ;;  %5226 = vrcp.f32 %v4251_v41  ;;  %v4854_v10 = vpop.f32.mrf.mxu1  ;;  %v8303_v3 = vld [vmem:[#allocation12_spill] sm:$0xff] }
 0x395   : > { %v4249_v26 = vadd.f32 1.0, %v5221_v39  ;;  %v3959_v20 = vpop.f32.mrf.mxu0  ;;  %v5223_v62 = vpop.eup %5222  ;;  %v2079_v14 = vadd.f32 %v8301_v43, %v7591_v44  ;;  %v2071_v40 = vadd.f32 %v8303_v3, %v8302_v52  ;;  %v8304_v44 = vld [vmem:[#allocation20_spill] sm:$0xff] }
 0x396   : > { %v4159_v55 = vsub.f32 0.0, %v7789_v13  ;;  %v7794_v1 = vadd.f32 %v7690_v57, %v4086_v23  ;;  %v4089_v4 = vmul.f32 %v7683_v33, %v4050_v42  ;;  %v4048_v47 = vadd.f32 %v3959_v20, %v3081_v8  ;;  %v3008_v17 = vpop.f32.mrf.mxu1 }
 0x397   : > { %5228 = vrcp.f32 %v4249_v26  ;;  %v5225_v56 = vpop.eup %5224  ;;  %v4252_v36 = vadd.f32 1.0, %v5223_v62  ;;  %v3086_v59 = vadd.f32 %v4853_v38, %v2079_v14  ;;  %v3084_v42 = vadd.f32 %v3005_v7, %v2071_v40  ;;  %v8305_v26 = vld [vmem:[#allocation19_spill] sm:$0xff] }
 0x398   : > { %v4205_v35 = vmul.f32 1.442695, %v4159_v55  ;;  %v4157_v53 = vsub.f32 0.0, %v7794_v1  ;;  %v7799_v61 = vadd.f32 %v7690_v57, %v4089_v4  ;;  %v4087_v30 = vmul.f32 %v7683_v33, %v4048_v47  ;;  %v8307_v55 = vld [vmem:[#allocation22_spill] sm:$0xff] }
 0x399   : > { %v4250_v15 = vadd.f32 1.0, %v5225_v56  ;;  %v2082_v20 = vadd.f32 %v8305_v26, %v8304_v44  ;;  %v4857_v56 = vpop.f32.mrf.mxu1 }
 0x39a   : > { %5230 = vpow2.f32 %v4205_v35  ;;  %v4201_v31 = vmul.f32 1.442695, %v4157_v53  ;;  %v4160_v60 = vsub.f32 0.0, %v7799_v61  ;;  %v7804_v18 = vadd.f32 %v7690_v57, %v4087_v30 }
 0x39b   : > { %5232 = vrcp.f32 %v4252_v36 }
 0x39c   : > { %5234 = vrcp.f32 %v4250_v15  ;;  %v4207_v5 = vmul.f32 1.442695, %v4160_v60  ;;  %v4158_v46 = vsub.f32 0.0, %v7804_v18 }
 0x39d   : > { %5236 = vpow2.f32 %v4201_v31 }
 0x39e   : > { %5238 = vpow2.f32 %v4207_v5  ;;  %v4203_v24 = vmul.f32 1.442695, %v4158_v46 }
 0x3a0   : > { %5240 = vpow2.f32 %v4203_v24 }
 0x3a1   : > { %v5227_v34 = vpop.eup %5226 }
 0x3a2   : > { %v4315_v28 = vmul.f32 %v5227_v34, %v7753_v50  ;;  %v3021_v34 = vpop.f32.mrf.mxu1 }
 0x3a4   : > { %v5229_v37 = vpop.eup %5228  ;;  %4347 = vst [vmem:[%s7725_s16 + $0x50] sm:$0xff] %v4315_v28 }
 0x3a5   : > { %v4313_v19 = vmul.f32 %v5229_v37, %v7758_v54  ;;  %v8306_v54 = vld [vmem:[#allocation24_spill] sm:$0xff] }
 0x3a6   : > { %v2074_v4 = vadd.f32 %v8307_v55, %v8306_v54 }
 0x3a7   : > { %v5231_v11 = vpop.eup %5230  ;;  %4345 = vst [vmem:[%s7725_s16 + $0x40] sm:$0xff] %v4313_v19  ;;  %v8308_v19 = vld [vmem:[#allocation23_spill] sm:$0xff] }
 0x3a8   : > { %v5233_v8 = vpop.eup %5232  ;;  %v4255_v41 = vadd.f32 1.0, %v5231_v11  ;;  %v3085_v15 = vadd.f32 %v3008_v17, %v2074_v4  ;;  %v2095_v11 = vadd.f32 %v8308_v19, %v7623_v29  ;;  %v4858_v17 = vpop.f32.mrf.mxu1  ;;  %v2098_v29 = vadd.f32 %v7628_v49, %v7637_v48 }
 0x3a9   : > { %v5235_v23 = vpop.eup %5234  ;;  %v4316_v50 = vmul.f32 %v5233_v8, %v7764_v0  ;;  %v3087_v0 = vadd.f32 %v4854_v10, %v2082_v20  ;;  %v2087_v8 = vadd.f32 %v7619_v6, %v7631_v25  ;;  %v2090_v6 = vadd.f32 %v7634_v45, %v7643_v9 }
 0x3aa   : > { %v5237_v39 = vpop.eup %5236  ;;  %v4314_v47 = vmul.f32 %v5235_v23, %v7767_v2  ;;  %5242 = vrcp.f32 %v4255_v41  ;;  %v3090_v23 = vadd.f32 %v4857_v56, %v2095_v11  ;;  %v3024_v54 = vpop.f32.mrf.mxu1 }
 0x3ab   : > { %4348 = vst [vmem:[%s7725_s16 + $0x58] sm:$0xff] %v4316_v50  ;;  %v4253_v35 = vadd.f32 1.0, %v5237_v39  ;;  %v5239_v36 = vpop.eup %5238  ;;  %v3088_v44 = vadd.f32 %v3021_v34, %v2087_v8  ;;  %v3089_v45 = vadd.f32 %v3024_v54, %v2090_v6  ;;  %v2114_v6 = vadd.f32 %v7650_v12, %v7656_v21 }
 0x3ac   : > { %v4901_v62 = vpop.f32.mrf.mxu0  ;;  %4346 = vst [vmem:[%s7725_s16 + $0x48] sm:$0xff] %v4314_v47  ;;  %v4256_v31 = vadd.f32 1.0, %v5239_v36 }
 0x3ad   : > { %v4053_v53 = vadd.f32 %v4901_v62, %v3086_v59  ;;  %5244 = vrcp.f32 %v4253_v35  ;;  %v5241_v5 = vpop.eup %5240  ;;  %v3091_v62 = vadd.f32 %v4858_v17, %v2098_v29 }
 0x3ae   : > { %v3972_v30 = vpop.f32.mrf.mxu0  ;;  %5246 = vrcp.f32 %v4256_v31  ;;  %v4254_v2 = vadd.f32 1.0, %v5241_v5 }
 0x3af   : > { %v4092_v60 = vmul.f32 %v7683_v33, %v4053_v53  ;;  %v4051_v38 = vadd.f32 %v3972_v30, %v3084_v42  ;;  %v4861_v30 = vpop.f32.mrf.mxu1 }
 0x3b0   : > { %v4902_v46 = vpop.f32.mrf.mxu0  ;;  %5248 = vrcp.f32 %v4254_v2 }
 0x3b1   : > { %v7825_v24 = vadd.f32 %v7690_v57, %v4092_v60  ;;  %v4090_v7 = vmul.f32 %v7683_v33, %v4051_v38  ;;  %v4054_v37 = vadd.f32 %v4902_v46, %v3087_v0 }
 0x3b2   : > { %v3975_v28 = vpop.f32.mrf.mxu0 }
 0x3b3   : > { %v4163_v10 = vsub.f32 0.0, %v7825_v24  ;;  %v7830_v43 = vadd.f32 %v7690_v57, %v4090_v7  ;;  %v4052_v14 = vadd.f32 %v3975_v28, %v3085_v15  ;;  %v4093_v52 = vmul.f32 %v7683_v33, %v4054_v37  ;;  %v3037_v28 = vpop.f32.mrf.mxu1 }
 0x3b5   : > { %v4213_v3 = vmul.f32 1.442695, %v4163_v10  ;;  %v4161_v40 = vsub.f32 0.0, %v7830_v43  ;;  %v4091_v59 = vmul.f32 %v7683_v33, %v4052_v14  ;;  %v7840_v41 = vadd.f32 %v7690_v57, %v4093_v52 }
 0x3b7   : > { %5250 = vpow2.f32 %v4213_v3  ;;  %v4209_v50 = vmul.f32 1.442695, %v4161_v40  ;;  %v7843_v42 = vadd.f32 %v7690_v57, %v4091_v59  ;;  %v4164_v39 = vsub.f32 0.0, %v7840_v41  ;;  %v5243_v26 = vpop.eup %5242  ;;  %v4862_v59 = vpop.f32.mrf.mxu1 }
 0x3b8   : > { %v4319_v55 = vmul.f32 %v5243_v26, %v7789_v13 }
 0x3b9   : > { %v4905_v25 = vpop.f32.mrf.mxu0  ;;  %5252 = vpow2.f32 %v4209_v50  ;;  %v4162_v20 = vsub.f32 0.0, %v7843_v42  ;;  %v4215_v4 = vmul.f32 1.442695, %v4164_v39  ;;  %v2103_v50 = vadd.f32 %v7646_v27, %v7652_v22 }
 0x3ba   : > { %v4057_v47 = vadd.f32 %v4905_v25, %v3090_v23  ;;  %v5245_v48 = vpop.eup %5244  ;;  %4351 = vst [vmem:[%s7725_s16 + $0x70] sm:$0xff] %v4319_v55  ;;  %v2106_v55 = vadd.f32 %v7654_v51, %v7660_v32 }
 0x3bb   : > { %v3988_v35 = vpop.f32.mrf.mxu0  ;;  %v4211_v49 = vmul.f32 1.442695, %v4162_v20  ;;  %5254 = vpow2.f32 %v4215_v4  ;;  %v4317_v9 = vmul.f32 %v5245_v48, %v7794_v1  ;;  %v5247_v13 = vpop.eup %5246  ;;  %v3095_v4 = vadd.f32 %v4862_v59, %v2114_v6 }
 0x3bc   : > { %v4096_v53 = vmul.f32 %v7683_v33, %v4057_v47  ;;  %v4055_v56 = vadd.f32 %v3988_v35, %v3088_v44  ;;  %v4320_v60 = vmul.f32 %v5247_v13, %v7799_v61 }
 0x3bd   : > { %v4906_v36 = vpop.f32.mrf.mxu0  ;;  %5256 = vpow2.f32 %v4211_v49  ;;  %4349 = vst [vmem:[%s7725_s16 + $0x60] sm:$0xff] %v4317_v9  ;;  %v5249_v5 = vpop.eup %5248 }
 0x3be   : > { %v7856_v0 = vadd.f32 %v7690_v57, %v4096_v53  ;;  %v4094_v15 = vmul.f32 %v7683_v33, %v4055_v56  ;;  %v4058_v31 = vadd.f32 %v4906_v36, %v3091_v62  ;;  %4352 = vst [vmem:[%s7725_s16 + $0x78] sm:$0xff] %v4320_v60  ;;  %v4318_v34 = vmul.f32 %v5249_v5, %v7804_v18 }
 0x3bf   : > { %v3991_v38 = vpop.f32.mrf.mxu0  ;;  %v2111_v18 = vadd.f32 %v7640_v16, %v7648_v58  ;;  %v3092_v16 = vadd.f32 %v3037_v28, %v2103_v50  ;;  %v3040_v58 = vpop.f32.mrf.mxu1  ;;  %v8310_v28 = vld [vmem:[#allocation28_spill] sm:$0xff]  ;;  %v8312_v50 = vld [vmem:[#allocation29_spill] sm:$0xff] }
 0x3c0   : > { %v4167_v46 = vsub.f32 0.0, %v7856_v0  ;;  %v7863_v1 = vadd.f32 %v7690_v57, %v4094_v15  ;;  %v4097_v2 = vmul.f32 %v7683_v33, %v4058_v31  ;;  %v4056_v7 = vadd.f32 %v3991_v38, %v3089_v45  ;;  %4350 = vst [vmem:[%s7725_s16 + $0x68] sm:$0xff] %v4318_v34 }
 0x3c1   : > { %v3094_v39 = vadd.f32 %v4861_v30, %v2111_v18  ;;  %v3093_v12 = vadd.f32 %v3040_v58, %v2106_v55  ;;  %v4865_v21 = vpop.f32.mrf.mxu1 }
 0x3c2   : > { %v4221_v37 = vmul.f32 1.442695, %v4167_v46  ;;  %v4165_v10 = vsub.f32 0.0, %v7863_v1  ;;  %v7870_v14 = vadd.f32 %v7690_v57, %v4097_v2  ;;  %v4095_v61 = vmul.f32 %v7683_v33, %v4056_v7  ;;  %v8309_v7 = vld [vmem:[#allocation26_spill] sm:$0xff] }
 0x3c3   : > { %v3053_v13 = vpop.f32.mrf.mxu1  ;;  %v2127_v34 = vadd.f32 %v8309_v7, %v7664_v63 }
 0x3c4   : > { %v5251_v19 = vpop.eup %5250  ;;  %5258 = vpow2.f32 %v4221_v37  ;;  %v4217_v11 = vmul.f32 1.442695, %v4165_v10  ;;  %v4168_v52 = vsub.f32 0.0, %v7870_v14  ;;  %v7876_v3 = vadd.f32 %v7690_v57, %v4095_v61  ;;  %v8311_v37 = vld [vmem:[#allocation25_spill] sm:$0xff] }
 0x3c5   : > { %v4259_v40 = vadd.f32 1.0, %v5251_v19  ;;  %v2119_v10 = vadd.f32 %v8311_v37, %v8310_v28 }
 0x3c6   : > { %v5253_v17 = vpop.eup %5252  ;;  %5260 = vpow2.f32 %v4217_v11  ;;  %v4223_v8 = vmul.f32 1.442695, %v4168_v52  ;;  %v4166_v23 = vsub.f32 0.0, %v7876_v3 }
 0x3c7   : > { %5262 = vrcp.f32 %v4259_v40  ;;  %v4257_v29 = vadd.f32 1.0, %v5253_v17  ;;  %v4866_v40 = vpop.f32.mrf.mxu1 }
 0x3c8   : > { %5264 = vpow2.f32 %v4223_v8  ;;  %v4219_v44 = vmul.f32 1.442695, %v4166_v23  ;;  %v5255_v26 = vpop.eup %5254  ;;  %v3098_v8 = vadd.f32 %v4865_v21, %v2127_v34 }
 0x3c9   : > { %5266 = vrcp.f32 %v4257_v29  ;;  %v4260_v20 = vadd.f32 1.0, %v5255_v26  ;;  %v4909_v54 = vpop.f32.mrf.mxu0  ;;  %v8313_v29 = vld [vmem:[#allocation27_spill] sm:$0xff] }
 0x3ca   : > { %v5257_v25 = vpop.eup %5256  ;;  %5268 = vpow2.f32 %v4219_v44  ;;  %v4061_v22 = vadd.f32 %v4909_v54, %v3094_v39  ;;  %v2130_v39 = vadd.f32 %v8313_v29, %v8312_v50  ;;  %v3056_v54 = vpop.f32.mrf.mxu1 }
 0x3cb   : > { %v4258_v27 = vadd.f32 1.0, %v5257_v25  ;;  %5270 = vrcp.f32 %v4260_v20  ;;  %v4004_v47 = vpop.f32.mrf.mxu0 }
 0x3cc   : > { %v4100_v62 = vmul.f32 %v7683_v33, %v4061_v22  ;;  %v4059_v35 = vadd.f32 %v4004_v47, %v3092_v16  ;;  %v3096_v16 = vadd.f32 %v3053_v13, %v2119_v10  ;;  %v3099_v20 = vadd.f32 %v4866_v40, %v2130_v39 }
 0x3cd   : > { %5272 = vrcp.f32 %v4258_v27  ;;  %v4910_v49 = vpop.f32.mrf.mxu0 }
 0x3ce   : > { %v7889_v48 = vadd.f32 %v7690_v57, %v4100_v62  ;;  %v4098_v53 = vmul.f32 %v7683_v33, %v4059_v35  ;;  %v4062_v56 = vadd.f32 %v4910_v49, %v3095_v4 }
 0x3cf   : > { %v4007_v45 = vpop.f32.mrf.mxu0 }
 0x3d0   : > { %v4171_v32 = vsub.f32 0.0, %v7889_v48  ;;  %v7894_v9 = vadd.f32 %v7690_v57, %v4098_v53  ;;  %v4101_v36 = vmul.f32 %v7683_v33, %v4062_v56  ;;  %v4060_v30 = vadd.f32 %v4007_v45, %v3093_v12  ;;  %v8314_v12 = vld [vmem:[#allocation30_spill] sm:$0xff] }
 0x3d1   : > { %v5259_v51 = vpop.eup %5258  ;;  %v3097_v21 = vadd.f32 %v3056_v54, %v8314_v12 }
 0x3d2   : > { %v4263_v15 = vadd.f32 1.0, %v5259_v51  ;;  %v4229_v60 = vmul.f32 1.442695, %v4171_v32  ;;  %v4169_v38 = vsub.f32 0.0, %v7894_v9  ;;  %v7899_v5 = vadd.f32 %v7690_v57, %v4101_v36 }
 0x3d3   : > { %v5261_v31 = vpop.eup %5260  ;;  %v4099_v46 = vmul.f32 %v7683_v33, %v4060_v30 }
 0x3d4   : > { %v5263_v2 = vpop.eup %5262  ;;  %5274 = vrcp.f32 %v4263_v15  ;;  %v4261_v61 = vadd.f32 1.0, %v5261_v31  ;;  %v4225_v52 = vmul.f32 1.442695, %v4169_v38  ;;  %v4172_v18 = vsub.f32 0.0, %v7899_v5 }
 0x3d5   : > { %v5265_v19 = vpop.eup %5264  ;;  %v4323_v11 = vmul.f32 %v5263_v2, %v7825_v24  ;;  %5276 = vpow2.f32 %v4229_v60  ;;  %v7909_v63 = vadd.f32 %v7690_v57, %v4099_v46 }
 0x3d6   : > { %v5267_v59 = vpop.eup %5266  ;;  %5278 = vrcp.f32 %v4261_v61  ;;  %v4264_v17 = vadd.f32 1.0, %v5265_v19  ;;  %v4231_v44 = vmul.f32 1.442695, %v4172_v18 }
 0x3d7   : > { %v5269_v23 = vpop.eup %5268  ;;  %4355 = vst [vmem:[%s7725_s16 + $0x90] sm:$0xff] %v4323_v11  ;;  %v4321_v24 = vmul.f32 %v5267_v59, %v7830_v43  ;;  %5280 = vpow2.f32 %v4225_v52  ;;  %v4170_v6 = vsub.f32 0.0, %v7909_v63 }
 0x3d8   : > { %5282 = vrcp.f32 %v4264_v17  ;;  %v4262_v26 = vadd.f32 1.0, %v5269_v23  ;;  %v5271_v58 = vpop.eup %5270  ;;  %v4913_v25 = vpop.f32.mrf.mxu0 }
 0x3d9   : > { %4353 = vst [vmem:[%s7725_s16 + $0x80] sm:$0xff] %v4321_v24  ;;  %5284 = vpow2.f32 %v4231_v44  ;;  %v4324_v27 = vmul.f32 %v5271_v58, %v7840_v41  ;;  %v4227_v43 = vmul.f32 1.442695, %v4170_v6  ;;  %v4065_v22 = vadd.f32 %v4913_v25, %v3098_v8 }
 0x3da   : > { %v5273_v55 = vpop.eup %5272  ;;  %5286 = vrcp.f32 %v4262_v26  ;;  %v4020_v47 = vpop.f32.mrf.mxu0 }
 0x3db   : > { %v4322_v4 = vmul.f32 %v5273_v55, %v7843_v42  ;;  %4356 = vst [vmem:[%s7725_s16 + $0x98] sm:$0xff] %v4324_v27  ;;  %5288 = vpow2.f32 %v4227_v43  ;;  %v4104_v62 = vmul.f32 %v7683_v33, %v4065_v22  ;;  %v4063_v35 = vadd.f32 %v4020_v47, %v3096_v16 }
 0x3dc   : > { %v4914_v49 = vpop.f32.mrf.mxu0 }
 0x3dd   : > { %4354 = vst [vmem:[%s7725_s16 + $0x88] sm:$0xff] %v4322_v4  ;;  %v7924_v53 = vadd.f32 %v7690_v57, %v4104_v62  ;;  %v4102_v41 = vmul.f32 %v7683_v33, %v4063_v35  ;;  %v4066_v56 = vadd.f32 %v4914_v49, %v3099_v20 }
 0x3de   : > { %v4023_v45 = vpop.f32.mrf.mxu0 }
 0x3df   : > { %v4175_v42 = vsub.f32 0.0, %v7924_v53  ;;  %v7929_v51 = vadd.f32 %v7690_v57, %v4102_v41  ;;  %v4105_v32 = vmul.f32 %v7683_v33, %v4066_v56  ;;  %v4064_v36 = vadd.f32 %v4023_v45, %v3097_v21 }
 0x3e1   : > { %v5275_v30 = vpop.eup %5274  ;;  %v4237_v31 = vmul.f32 1.442695, %v4175_v42  ;;  %v4173_v60 = vsub.f32 0.0, %v7929_v51  ;;  %v7935_v38 = vadd.f32 %v7690_v57, %v4105_v32  ;;  %v4103_v7 = vmul.f32 %v7683_v33, %v4064_v36 }
 0x3e2   : > { %v5277_v13 = vpop.eup %5276  ;;  %v4327_v15 = vmul.f32 %v5275_v30, %v7856_v0 }
 0x3e3   : > { %v5279_v46 = vpop.eup %5278  ;;  %v4267_v2 = vadd.f32 1.0, %v5277_v13  ;;  %5290 = vpow2.f32 %v4237_v31  ;;  %v4233_v37 = vmul.f32 1.442695, %v4173_v60  ;;  %v4176_v0 = vsub.f32 0.0, %v7935_v38 }
 0x3e4   : > { %v5281_v34 = vpop.eup %5280  ;;  %4359 = vst [vmem:[%s7725_s16 + $0xb0] sm:$0xff] %v4327_v15  ;;  %v4325_v28 = vmul.f32 %v5279_v46, %v7863_v1  ;;  %v4142_v19 = vadd.f32 %v7690_v57, %v4103_v7 }
 0x3e5   : > { %v5283_v10 = vpop.eup %5282  ;;  %5292 = vrcp.f32 %v4267_v2  ;;  %v4265_v61 = vadd.f32 1.0, %v5281_v34  ;;  %v4239_v33 = vmul.f32 1.442695, %v4176_v0 }
 0x3e6   : > { %v5285_v11 = vpop.eup %5284  ;;  %4357 = vst [vmem:[%s7725_s16 + $0xa0] sm:$0xff] %v4325_v28  ;;  %v4328_v52 = vmul.f32 %v5283_v10, %v7870_v14  ;;  %5294 = vpow2.f32 %v4233_v37  ;;  %v4174_v40 = vsub.f32 0.0, %v4142_v19 }
 0x3e7   : > { %v5287_v18 = vpop.eup %5286  ;;  %5296 = vrcp.f32 %v4265_v61  ;;  %v4268_v1 = vadd.f32 1.0, %v5285_v11 }
 0x3e8   : > { %4360 = vst [vmem:[%s7725_s16 + $0xb8] sm:$0xff] %v4328_v52  ;;  %v4326_v59 = vmul.f32 %v5287_v18, %v7876_v3  ;;  %5298 = vpow2.f32 %v4239_v33  ;;  %v5289_v17 = vpop.eup %5288  ;;  %v4235_v8 = vmul.f32 1.442695, %v4174_v40 }
 0x3e9   : > { %5300 = vrcp.f32 %v4268_v1  ;;  %v4266_v57 = vadd.f32 1.0, %v5289_v17 }
 0x3ea   : > { %4358 = vst [vmem:[%s7725_s16 + $0xa8] sm:$0xff] %v4326_v59  ;;  %5302 = vpow2.f32 %v4235_v8 }
 0x3eb   : > { %5304 = vrcp.f32 %v4266_v57 }
 0x3f0   : > { %v5291_v14 = vpop.eup %5290 }
 0x3f1   : > { %v4271_v50 = vadd.f32 1.0, %v5291_v14 }
 0x3f2   : > { %v5293_v23 = vpop.eup %5292 }
 0x3f3   : > { %v5295_v29 = vpop.eup %5294  ;;  %v4331_v39 = vmul.f32 %v5293_v23, %v7889_v48  ;;  %5306 = vrcp.f32 %v4271_v50 }
 0x3f4   : > { %v5297_v24 = vpop.eup %5296  ;;  %v4269_v3 = vadd.f32 1.0, %v5295_v29 }
 0x3f5   : > { %v5299_v44 = vpop.eup %5298  ;;  %4363 = vst [vmem:[%s7725_s16 + $0xd0] sm:$0xff] %v4331_v39  ;;  %v4329_v26 = vmul.f32 %v5297_v24, %v7894_v9 }
 0x3f6   : > { %v5301_v6 = vpop.eup %5300  ;;  %5308 = vrcp.f32 %v4269_v3  ;;  %v4272_v16 = vadd.f32 1.0, %v5299_v44 }
 0x3f7   : > { %4361 = vst [vmem:[%s7725_s16 + $0xc0] sm:$0xff] %v4329_v26  ;;  %v4332_v58 = vmul.f32 %v5301_v6, %v7899_v5  ;;  %v5303_v25 = vpop.eup %5302 }
 0x3f8   : > { %5310 = vrcp.f32 %v4272_v16  ;;  %v5305_v48 = vpop.eup %5304  ;;  %v4270_v20 = vadd.f32 1.0, %v5303_v25 }
 0x3f9   : > { %4364 = vst [vmem:[%s7725_s16 + $0xd8] sm:$0xff] %v4332_v58  ;;  %v4330_v54 = vmul.f32 %v5305_v48, %v7909_v63 }
 0x3fa   : > { %5312 = vrcp.f32 %v4270_v20 }
 0x3fb   : > { %4362 = vst [vmem:[%s7725_s16 + $0xc8] sm:$0xff] %v4330_v54 }
 0x400   : > { %v5307_v9 = vpop.eup %5306 }
 0x401   : > { %v4335_v55 = vmul.f32 %v5307_v9, %v7924_v53 }
 0x403   : > { %v5309_v27 = vpop.eup %5308  ;;  %4367 = vst [vmem:[%s7725_s16 + $0xf0] sm:$0xff] %v4335_v55 }
 0x404   : > { %v4333_v5 = vmul.f32 %v5309_v27, %v7929_v51 }
 0x405   : > { %v5311_v43 = vpop.eup %5310 }
 0x406   : > { %4365 = vst [vmem:[%s7725_s16 + $0xe0] sm:$0xff] %v4333_v5  ;;  %v4336_v22 = vmul.f32 %v5311_v43, %v7935_v38 }
 0x407   : > { %v5313_v4 = vpop.eup %5312 }
 0x408   : > { %4368 = vst [vmem:[%s7725_s16 + $0xf8] sm:$0xff] %v4336_v22  ;;  %v4334_v63 = vmul.f32 %v5313_v4, %v4142_v19 }
 0x40a   : > { %4366 = vst [vmem:[%s7725_s16 + $0xe8] sm:$0xff] %v4334_v63 }
 0x40b   : > { %5408 = shalt.err (!%p5405_p3)
}
 0x40c   : > { %s5409_s29 = scalar_lea.hbm %s7966_s30, 4096  ;;  %s5413_s14 = scalar_lea.hbm %s8019_s7, 8192 }
 0x40d   : > { %p5410_p11 = scmp.ne.s32.totalorder %s7966_s30, %s5409_s29  ;;  %p5414_p4 = scmp.lt.s32.totalorder %s7966_s30, %s8019_s7 }
 0x40e   : > { %p5415_p6 = scmp.lt.s32.totalorder %s5413_s14, %s5409_s29 }
 0x40f   : > { %p5411_p9 = pnand %p5410_p11, %p8315_p2 }
 0x410   : > { %p5416_p8 = por %p5415_p6, %p5414_p4 }
 0x411   : > { %p5412_p1 = pneg %p5411_p9 }
 0x413   : > { %p5417_p5 = pnand %p5416_p8, %p5412_p1 }
 0x415   : > { %5420 = shalt.err (!%p5417_p5)
}
 0x416   : > { %s5471_s15 = smov 128   ;;  %s5472_s19 = smov 8  }
 0x417   : > { %4941 = dma.vmem_to_hbm [thread:$0]  (%p8315_p2), %s7968_s1, 4096, %s7966_s30, %s4370_s9, %s5471_s15, %s5471_s15, %s5472_s19  }
 0x418 PF: > { %s4398_s28 = sand.u32 1, %s5451_s24   ;;  %p8316_p7 = scmp.ne.s32.totalorder %s8087_s8, 0 }
 0x419   : > { %p8317_p12 = scmp.ge.s32.totalorder %s5463_s27, 2  ;;  %s4399_s20 = scalar_lea.sflag [#allocation4], %s4398_s28 }
 0x41b   : > { %p4955_p13 = pnand %p8317_p12, %p8316_p7 }
 0x41d   : > { %p4956_p0 = pneg %p4955_p13 }
 0x41f   : > { %5446 = dma.done.wait (%p4956_p0), %s4399_s20, 4096  }
 0x420   : > { %5448 = vsyncadd (%p4956_p0), %s4399_s20, 4294963200  ;;  %p21_p10 = scmp.ge.s32.totalorder %s5591_s23, 4   ;;  %s8318_s24 = smov %s5455_s25 }
 0x421   : > { %s8319_s25 = smov %s5459_s26  ;;  %s8320_s26 = smov %s5607_s12 }
 0x422   : > { %s8321_s27 = smov %s5591_s23  ;;  %23 = sbr.rel (!%p21_p10) target bundleno = 8 (0x8), region = 104 }
 0x427   :  { %4404 = vsyncpa [#allocation3], 1 }
 0x428   :  { %4406 = vsyncpa [#allocation3 + $0x1], 1 }
 0x429   :  { %4407 = vsyncpa [#allocation6], 1 }
 0x42a   :  { %4408 = vsyncpa [#allocation4], 1 }
 0x42b   :  { %4410 = vsyncpa [#allocation4 + $0x1], 1 }

</bundles_post_ra>
